<compile_context>
chip_gen: v6e
topology: v6e:2x2x1
jax: 0.10.0
libtpu: 0.0.40
codegen_flags: <defaults>
</compile_context>

<pallas_src>
import functools
import math

import jax
import jax.numpy as jnp
from jax.experimental import pallas as pl
from jax.experimental.pallas import tpu as pltpu


def _attention_kernel(qkv_ref, gate_ref, maskadd_ref, headmask_ref, segsum_ref,
                      wcat_ref, bcat_ref, wo_ref, bo_ref, o_ref,
                      *, num_heads, approx_recip, mxu_dtype):
    tm, n_nodes, d3 = qkv_ref.shape
    d = d3 // 3
    hn = headmask_ref.shape[0]                      # num_heads * n_nodes
    f32 = jnp.float32

    def mx(x):                                      # optional bf16 MXU operands
        return x if mxu_dtype is None else x.astype(mxu_dtype)

    # ---- Fused QKV projection: ONE (tm*N, 3D) @ (3D, 3D) block-diag GEMM ----
    x = qkv_ref[...].astype(f32).reshape(tm * n_nodes, d3)
    proj = jnp.dot(mx(x), mx(wcat_ref[...]),
                   preferred_element_type=f32) + bcat_ref[...]
    q = proj[:, :d].reshape(tm, n_nodes, d)         # pre-scaled by 1/sqrt(hd)
    k = proj[:, d:2 * d].reshape(tm, n_nodes, d)
    v = proj[:, 2 * d:].reshape(tm, n_nodes, d)

    # ---- Head-banded K / V: (tm, H*N, D); row h*N + m holds node m masked to
    #      head h's feature band.  Replaces the per-head matmul unroll. ----
    hmask = headmask_ref[...][None]                 # (1, H*N, D)
    k_blk = jnp.concatenate([k] * num_heads, axis=1) * hmask
    v_blk = jnp.concatenate([v] * num_heads, axis=1) * hmask

    # ---- Scores for all heads in one batched matmul: (tm, N, H*N) ----
    s = jnp.einsum("bnd,bmd->bnm", mx(q), mx(k_blk),
                   preferred_element_type=f32)
    s = s + maskadd_ref[...][None]                  # additive causal mask (or 0)

    # Per-head softmax.  Subtracting the row-global max keeps each per-head
    # softmax mathematically exact (same constant within every segment); the
    # per-head denominators come from a single GEMM with a block-diagonal ones
    # matrix and arrive already broadcast to all H*N columns.
    m_row = jnp.max(s, axis=-1, keepdims=True)
    e = jnp.exp(s - m_row)
    denom = jnp.dot(e.reshape(tm * n_nodes, hn), segsum_ref[...],
                    preferred_element_type=f32).reshape(tm, n_nodes, hn)
    p = e * pl.reciprocal(denom, approx=approx_recip)
    p = p * gate_ref[...][None]                     # sigmoid gate after softmax

    # ---- Attention output for all heads at once; the head-banded V makes the
    #      result come out already head-interleaved along the feature axis. ----
    attn_out = jnp.einsum("bnm,bmd->bnd", mx(p), mx(v_blk),
                          preferred_element_type=f32)

    # ---- Output projection ----
    out = jnp.dot(mx(attn_out.reshape(tm * n_nodes, d)), mx(wo_ref[...]),
                  preferred_element_type=f32) + bo_ref[...]
    o_ref[...] = out.reshape(tm, n_nodes, d).astype(o_ref.dtype)


def attention_layer(query, key, value, attn_embedding, params, num_heads=8,
                    mask=False, block_m=128, approx_recip=True, mxu_dtype=None,
                    vmem_limit_bytes=32 * 1024 * 1024):
    """Pallas implementation of AttentionLayer.forward.

    query/key/value: (B, T, N, D);  attn_embedding: (N, E);
    params: dict with wq,bq,wk,bk,wv,bv,wo,bo (weights already (D_in, D_out)).
    block_m: number of (batch, step) slices per grid step (v5e/v6e can go much
      larger with a raised vmem_limit_bytes; keep <= ~512 on v7x).
    mxu_dtype: optional (e.g. jnp.bfloat16) dtype for MXU GEMM operands;
      softmax / mask / gate math stays f32.
    """
    B, T, N, D = query.shape
    Ns = key.shape[-2]
    assert value.shape == key.shape
    assert D % num_heads == 0
    assert Ns == N, "node-embedding gate requires tgt_len == src_len"
    head_dim = D // num_heads
    HN = num_heads * N
    M = B * T
    f32 = jnp.float32

    # Lane-denser fused input: (M, N, 3D) instead of three 32-lane streams.
    qkv = jnp.concatenate([query.reshape(M, N, D),
                           key.reshape(M, N, D),
                           value.reshape(M, N, D)], axis=-1).astype(f32)

    # ---- grid-invariant constants, hoisted out of the kernel ----
    emb = attn_embedding.astype(f32)
    gate = jax.nn.sigmoid(emb @ emb.T)                          # (N, N)
    gate_tiled = jnp.tile(gate, (1, num_heads))                 # (N, H*N)

    if mask:
        row = jnp.arange(N)[:, None]
        col = jnp.arange(N)[None, :]
        base = jnp.where(col <= row, 0.0, -1e30).astype(f32)    # additive, finite
    else:
        base = jnp.zeros((N, N), f32)
    maskadd = jnp.tile(base, (1, num_heads))                    # (N, H*N)

    r = jnp.arange(HN)
    headmask = (r[:, None] // N ==
                jnp.arange(D)[None, :] // head_dim).astype(f32)  # (HN, D)
    segsum = (r[:, None] // N == r[None, :] // N).astype(f32)    # (HN, HN)

    # ---- packed block-diagonal QKV weight; score scale folded into Q block ----
    scale = 1.0 / math.sqrt(head_dim)
    wq = params["wq"].astype(f32) * scale
    bq = params["bq"].astype(f32) * scale
    wk, bk = params["wk"].astype(f32), params["bk"].astype(f32)
    wv, bv = params["wv"].astype(f32), params["bv"].astype(f32)
    wcat = jnp.zeros((3 * D, 3 * D), f32)
    wcat = (wcat.at[:D, :D].set(wq)
                 .at[D:2 * D, D:2 * D].set(wk)
                 .at[2 * D:, 2 * D:].set(wv))
    bcat = jnp.concatenate([bq, bk, bv]).reshape(1, 3 * D)
    wo = params["wo"].astype(f32)
    bo = params["bo"].astype(f32).reshape(1, D)

    # ---- tile the flattened (batch*step) axis ----
    tm = max(1, min(int(block_m), M))
    grid_m = pl.cdiv(M, tm)
    Mp = grid_m * tm
    if Mp != M:
        qkv = jnp.pad(qkv, ((0, Mp - M), (0, 0), (0, 0)))

    kernel = functools.partial(_attention_kernel, num_heads=num_heads,
                               approx_recip=approx_recip, mxu_dtype=mxu_dtype)

    def rep(shape):
        return pl.BlockSpec(shape, lambda i: (0,) * len(shape))

    out = pl.pallas_call(
        kernel,
        out_shape=jax.ShapeDtypeStruct((Mp, N, D), query.dtype),
        grid=(grid_m,),
        in_specs=[
            pl.BlockSpec((tm, N, 3 * D), lambda i: (i, 0, 0)),  # fused q|k|v
            rep((N, HN)),          # sigmoid gate, tiled per head
            rep((N, HN)),          # additive causal mask (zeros when mask=False)
            rep((HN, D)),          # head band mask for K/V expansion
            rep((HN, HN)),         # block-diagonal ones (per-head softmax denom)
            rep((3 * D, 3 * D)),   # block-diagonal packed QKV weight
            rep((1, 3 * D)),       # packed QKV bias
            rep((D, D)),           # out_proj weight
            rep((1, D)),           # out_proj bias
        ],
        out_specs=pl.BlockSpec((tm, N, D), lambda i: (i, 0, 0)),
        compiler_params=pltpu.CompilerParams(
            dimension_semantics=("parallel",),
            vmem_limit_bytes=vmem_limit_bytes),
    )(qkv, gate_tiled, maskadd, headmask, segsum, wcat, bcat, wo, bo)

    if Mp != M:
        out = out[:M]
    return out.reshape(B, T, N, D)


def reference_attention_layer(query, key, value, attn_embedding, params,
                              num_heads=8, mask=False):
    """Pure-JAX reference reproducing the PyTorch semantics exactly."""
    wq, bq = params["wq"], params["bq"]
    wk, bk = params["wk"], params["bk"]
    wv, bv = params["wv"], params["bv"]
    wo, bo = params["wo"], params["bo"]

    Q = query @ wq + bq
    K = key @ wk + bk
    V = value @ wv + bv
    B, T, N, D = Q.shape
    hd = D // num_heads

    Qh = jnp.stack(jnp.split(Q, num_heads, axis=-1), axis=0)   # (H,B,T,N,hd)
    Kh = jnp.stack(jnp.split(K, num_heads, axis=-1), axis=0)
    Vh = jnp.stack(jnp.split(V, num_heads, axis=-1), axis=0)

    s = jnp.einsum("hbtnd,hbtmd->hbtnm", Qh, Kh) / (hd ** 0.5)
    if mask:
        tril = jnp.tril(jnp.ones((N, K.shape[-2]), dtype=bool))
        s = jnp.where(tril, s, -jnp.inf)

    attn1 = jax.nn.sigmoid(attn_embedding @ attn_embedding.T)
    p = jax.nn.softmax(s, axis=-1) * attn1
    o = jnp.einsum("hbtnm,hbtmd->hbtnd", p, Vh)                # (H,B,T,N,hd)
    o = jnp.concatenate(jnp.split(o, num_heads, axis=0), axis=-1)[0]
    return o @ wo + bo


if __name__ == "__main__":
    B, T, N, D = 2, 8, 8, 32     # batch, in_steps, num_nodes, model_dim
    H = 8                        # num_heads -> head_dim = 4
    E = 16                       # attn_embedding feature dim

    key0 = jax.random.PRNGKey(0)
    keys = jax.random.split(key0, 12)

    query = jax.random.normal(keys[0], (B, T, N, D), dtype=jnp.float32)
    key_in = jax.random.normal(keys[1], (B, T, N, D), dtype=jnp.float32)
    value = jax.random.normal(keys[2], (B, T, N, D), dtype=jnp.float32)
    attn_embedding = jax.random.normal(keys[3], (N, E), dtype=jnp.float32)

    scale = 1.0 / (D ** 0.5)
    params = {
        "wq": jax.random.normal(keys[4], (D, D), dtype=jnp.float32) * scale,
        "bq": jax.random.normal(keys[5], (D,), dtype=jnp.float32) * 0.1,
        "wk": jax.random.normal(keys[6], (D, D), dtype=jnp.float32) * scale,
        "bk": jax.random.normal(keys[7], (D,), dtype=jnp.float32) * 0.1,
        "wv": jax.random.normal(keys[8], (D, D), dtype=jnp.float32) * scale,
        "bv": jax.random.normal(keys[9], (D,), dtype=jnp.float32) * 0.1,
        "wo": jax.random.normal(keys[10], (D, D), dtype=jnp.float32) * scale,
        "bo": jax.random.normal(keys[11], (D,), dtype=jnp.float32) * 0.1,
    }

    # Exact-arithmetic validation runs (exact reciprocal, f32 MXU).
    # block_m=128 -> single grid step for M=16 (per review); block_m=8 also
    # exercises the 2-step tiled/pipelined path for correctness.
    for use_mask, bm in ((False, 128), (True, 128), (True, 8)):
        out = attention_layer(query, key_in, value, attn_embedding, params,
                              num_heads=H, mask=use_mask, block_m=bm,
                              approx_recip=False)
        out = jax.block_until_ready(out)
        ref = reference_attention_layer(query, key_in, value, attn_embedding,
                                        params, num_heads=H, mask=use_mask)
        assert out.shape == (B, T, N, D)
        max_err = float(jnp.max(jnp.abs(out - ref)))
        assert jnp.allclose(out, ref, atol=1e-4, rtol=1e-4), max_err

    # "Production" configuration: approx reciprocal (EUP) + bf16 MXU operands.
    out = attention_layer(query, key_in, value, attn_embedding, params,
                          num_heads=H, mask=True, block_m=128,
                          approx_recip=True, mxu_dtype=jnp.bfloat16)
    out = jax.block_until_ready(out)
    ref = reference_attention_layer(query, key_in, value, attn_embedding,
                                    params, num_heads=H, mask=True)
    assert out.shape == (B, T, N, D)
    assert bool(jnp.all(jnp.isfinite(out)))
    max_err = float(jnp.max(jnp.abs(out - ref)))
    assert max_err < 0.2, max_err

    print("KERNEL_OK")
</pallas_src>

<mosaic_0001>
module attributes {stable_mosaic.version = 11 : i64} {
  func.func @_attention_kernel(%arg0: i32, %arg1: memref<16x8x96xf32, #tpu.memory_space<vmem>>, %arg2: memref<8x64xf32, #tpu.memory_space<vmem>>, %arg3: memref<8x64xf32, #tpu.memory_space<vmem>>, %arg4: memref<64x32xf32, #tpu.memory_space<vmem>>, %arg5: memref<64x64xf32, #tpu.memory_space<vmem>>, %arg6: memref<96x96xf32, #tpu.memory_space<vmem>>, %arg7: memref<1x96xf32, #tpu.memory_space<vmem>>, %arg8: memref<32x32xf32, #tpu.memory_space<vmem>>, %arg9: memref<1x32xf32, #tpu.memory_space<vmem>>, %arg10: memref<16x8x32xf32, #tpu.memory_space<vmem>>) attributes {dimension_semantics = [#tpu.dimension_semantics<parallel>], iteration_bounds = array<i64: 1>, scalar_prefetch = 0 : i64, scratch_operands = 0 : i64, tpu.core_type = #tpu.core_type<tc>, window_params = [{transform_indices = @transform_0, window_bounds = array<i64: 16, 8, 96>}, {pipeline_mode = #tpu.pipeline_mode<synchronous>, transform_indices = @transform_1, window_bounds = array<i64: 8, 64>}, {pipeline_mode = #tpu.pipeline_mode<synchronous>, transform_indices = @transform_2, window_bounds = array<i64: 8, 64>}, {pipeline_mode = #tpu.pipeline_mode<synchronous>, transform_indices = @transform_3, window_bounds = array<i64: 64, 32>}, {pipeline_mode = #tpu.pipeline_mode<synchronous>, transform_indices = @transform_4, window_bounds = array<i64: 64, 64>}, {pipeline_mode = #tpu.pipeline_mode<synchronous>, transform_indices = @transform_5, window_bounds = array<i64: 96, 96>}, {pipeline_mode = #tpu.pipeline_mode<synchronous>, transform_indices = @transform_6, window_bounds = array<i64: 1, 96>}, {pipeline_mode = #tpu.pipeline_mode<synchronous>, transform_indices = @transform_7, window_bounds = array<i64: 32, 32>}, {pipeline_mode = #tpu.pipeline_mode<synchronous>, transform_indices = @transform_8, window_bounds = array<i64: 1, 32>}, {transform_indices = @transform_9, window_bounds = array<i64: 16, 8, 32>}]} {
    %c0 = arith.constant 0 : index
    %c0_0 = arith.constant 0 : index
    %c0_1 = arith.constant 0 : index
    %0 = vector.load %arg1[%c0, %c0_0, %c0_1] : memref<16x8x96xf32, #tpu.memory_space<vmem>>, vector<16x8x96xf32>
    %1 = vector.shape_cast %0 : vector<16x8x96xf32> to vector<128x96xf32>
    %c0_2 = arith.constant 0 : index
    %c0_3 = arith.constant 0 : index
    %2 = vector.load %arg6[%c0_2, %c0_3] : memref<96x96xf32, #tpu.memory_space<vmem>>, vector<96x96xf32>
    %cst = arith.constant dense<0.000000e+00> : vector<128x96xf32>
    %3 = tpu.matmul %1, %2, %cst {dimension_numbers = #tpu.dot_dimension_numbers<[1], [0], [0], [1], [0, 0, 1, 1], [], []>} : vector<128x96xf32>, vector<96x96xf32>, vector<128x96xf32> -> vector<128x96xf32>
    %c0_4 = arith.constant 0 : index
    %c0_5 = arith.constant 0 : index
    %4 = vector.load %arg7[%c0_4, %c0_5] : memref<1x96xf32, #tpu.memory_space<vmem>>, vector<1x96xf32>
    %5 = vector.broadcast %4 : vector<1x96xf32> to vector<128x96xf32>
    %6 = arith.addf %3, %5 : vector<128x96xf32>
    %7 = vector.extract_strided_slice %6 {offsets = [0, 0], sizes = [128, 32], strides = [1, 1]} : vector<128x96xf32> to vector<128x32xf32>
    %8 = vector.shape_cast %7 : vector<128x32xf32> to vector<16x8x32xf32>
    %9 = vector.extract_strided_slice %6 {offsets = [0, 32], sizes = [128, 32], strides = [1, 1]} : vector<128x96xf32> to vector<128x32xf32>
    %10 = vector.shape_cast %9 : vector<128x32xf32> to vector<16x8x32xf32>
    %11 = vector.extract_strided_slice %6 {offsets = [0, 64], sizes = [128, 32], strides = [1, 1]} : vector<128x96xf32> to vector<128x32xf32>
    %12 = vector.shape_cast %11 : vector<128x32xf32> to vector<16x8x32xf32>
    %c0_6 = arith.constant 0 : index
    %c0_7 = arith.constant 0 : index
    %13 = vector.load %arg4[%c0_6, %c0_7] : memref<64x32xf32, #tpu.memory_space<vmem>>, vector<64x32xf32>
    %14 = vector.shape_cast %13 : vector<64x32xf32> to vector<1x64x32xf32>
    %15 = tpu.concatenate %10, %10, %10, %10, %10, %10, %10, %10 in 1 : vector<16x8x32xf32>, vector<16x8x32xf32>, vector<16x8x32xf32>, vector<16x8x32xf32>, vector<16x8x32xf32>, vector<16x8x32xf32>, vector<16x8x32xf32>, vector<16x8x32xf32> -> vector<16x64x32xf32>
    %16 = vector.broadcast %14 : vector<1x64x32xf32> to vector<16x64x32xf32>
    %17 = arith.mulf %15, %16 : vector<16x64x32xf32>
    %18 = tpu.concatenate %12, %12, %12, %12, %12, %12, %12, %12 in 1 : vector<16x8x32xf32>, vector<16x8x32xf32>, vector<16x8x32xf32>, vector<16x8x32xf32>, vector<16x8x32xf32>, vector<16x8x32xf32>, vector<16x8x32xf32>, vector<16x8x32xf32> -> vector<16x64x32xf32>
    %19 = vector.broadcast %14 : vector<1x64x32xf32> to vector<16x64x32xf32>
    %20 = arith.mulf %18, %19 : vector<16x64x32xf32>
    "tpu.trace_start"() <{level = 10 : i32, message = "bnd,bmd->bnm"}> : () -> ()
    %cst_8 = arith.constant dense<0.000000e+00> : vector<16x8x64xf32>
    %21 = tpu.matmul %8, %17, %cst_8 {dimension_numbers = #tpu.dot_dimension_numbers<[2], [2], [1], [1], [0, 0, 0, 1, 1, 1], [0], [0]>} : vector<16x8x32xf32>, vector<16x64x32xf32>, vector<16x8x64xf32> -> vector<16x8x64xf32>
    "tpu.trace_stop"() : () -> ()
    %c0_9 = arith.constant 0 : index
    %c0_10 = arith.constant 0 : index
    %22 = vector.load %arg3[%c0_9, %c0_10] : memref<8x64xf32, #tpu.memory_space<vmem>>, vector<8x64xf32>
    %23 = vector.shape_cast %22 : vector<8x64xf32> to vector<1x8x64xf32>
    %24 = vector.broadcast %23 : vector<1x8x64xf32> to vector<16x8x64xf32>
    %25 = arith.addf %21, %24 : vector<16x8x64xf32>
    %cst_11 = arith.constant dense<0xFF800000> : vector<16x8xf32>
    %26 = vector.multi_reduction <maximumf>, %25, %cst_11 [2] : vector<16x8x64xf32> to vector<16x8xf32>
    %27 = vector.shape_cast %26 : vector<16x8xf32> to vector<16x8x1xf32>
    %28 = vector.broadcast %27 : vector<16x8x1xf32> to vector<16x8x64xf32>
    %29 = arith.subf %25, %28 : vector<16x8x64xf32>
    %30 = math.exp %29 : vector<16x8x64xf32>
    %31 = vector.shape_cast %30 : vector<16x8x64xf32> to vector<128x64xf32>
    %c0_12 = arith.constant 0 : index
    %c0_13 = arith.constant 0 : index
    %32 = vector.load %arg5[%c0_12, %c0_13] : memref<64x64xf32, #tpu.memory_space<vmem>>, vector<64x64xf32>
    %cst_14 = arith.constant dense<0.000000e+00> : vector<128x64xf32>
    %33 = tpu.matmul %31, %32, %cst_14 {dimension_numbers = #tpu.dot_dimension_numbers<[1], [0], [0], [1], [0, 0, 1, 1], [], []>} : vector<128x64xf32>, vector<64x64xf32>, vector<128x64xf32> -> vector<128x64xf32>
    %34 = vector.shape_cast %33 : vector<128x64xf32> to vector<16x8x64xf32>
    %35 = tpu.reciprocal %34 : vector<16x8x64xf32> -> vector<16x8x64xf32>
    %36 = arith.mulf %30, %35 : vector<16x8x64xf32>
    %c0_15 = arith.constant 0 : index
    %c0_16 = arith.constant 0 : index
    %37 = vector.load %arg2[%c0_15, %c0_16] : memref<8x64xf32, #tpu.memory_space<vmem>>, vector<8x64xf32>
    %38 = vector.shape_cast %37 : vector<8x64xf32> to vector<1x8x64xf32>
    %39 = vector.broadcast %38 : vector<1x8x64xf32> to vector<16x8x64xf32>
    %40 = arith.mulf %36, %39 : vector<16x8x64xf32>
    "tpu.trace_start"() <{level = 10 : i32, message = "bnm,bmd->bnd"}> : () -> ()
    %cst_17 = arith.constant dense<0.000000e+00> : vector<16x8x32xf32>
    %41 = tpu.matmul %40, %20, %cst_17 {dimension_numbers = #tpu.dot_dimension_numbers<[2], [1], [1], [2], [0, 0, 0, 1, 1, 2], [0], [0]>} : vector<16x8x64xf32>, vector<16x64x32xf32>, vector<16x8x32xf32> -> vector<16x8x32xf32>
    "tpu.trace_stop"() : () -> ()
    %42 = vector.shape_cast %41 : vector<16x8x32xf32> to vector<128x32xf32>
    %c0_18 = arith.constant 0 : index
    %c0_19 = arith.constant 0 : index
    %43 = vector.load %arg8[%c0_18, %c0_19] : memref<32x32xf32, #tpu.memory_space<vmem>>, vector<32x32xf32>
    %cst_20 = arith.constant dense<0.000000e+00> : vector<128x32xf32>
    %44 = tpu.matmul %42, %43, %cst_20 {dimension_numbers = #tpu.dot_dimension_numbers<[1], [0], [0], [1], [0, 0, 1, 1], [], []>} : vector<128x32xf32>, vector<32x32xf32>, vector<128x32xf32> -> vector<128x32xf32>
    %c0_21 = arith.constant 0 : index
    %c0_22 = arith.constant 0 : index
    %45 = vector.load %arg9[%c0_21, %c0_22] : memref<1x32xf32, #tpu.memory_space<vmem>>, vector<1x32xf32>
    %46 = vector.broadcast %45 : vector<1x32xf32> to vector<128x32xf32>
    %47 = arith.addf %44, %46 : vector<128x32xf32>
    %48 = vector.shape_cast %47 : vector<128x32xf32> to vector<16x8x32xf32>
    %c0_23 = arith.constant 0 : index
    %c0_24 = arith.constant 0 : index
    %c0_25 = arith.constant 0 : index
    %49 = vector.load %arg10[%c0_23, %c0_24, %c0_25] : memref<16x8x32xf32, #tpu.memory_space<vmem>>, vector<16x8x32xf32>
    tpu.vector_store %arg10[%c0_23, %c0_24, %c0_25], %48 {strides = array<i32>} : memref<16x8x32xf32, #tpu.memory_space<vmem>>, vector<16x8x32xf32>,
    return
  }
  func.func @transform_0(%arg0: i32) -> (i32, i32, i32) {
    %c0_i32 = arith.constant 0 : i32
    %c0_i32_0 = arith.constant 0 : i32
    %c0_i32_1 = arith.constant 0 : i32
    return %arg0, %c0_i32, %c0_i32_0 : i32, i32, i32
  }
  func.func @transform_1(%arg0: i32) -> (i32, i32) {
    %c0_i32 = arith.constant 0 : i32
    %c0_i32_0 = arith.constant 0 : i32
    %c0_i32_1 = arith.constant 0 : i32
    return %c0_i32, %c0_i32_0 : i32, i32
  }
  func.func @transform_2(%arg0: i32) -> (i32, i32) {
    %c0_i32 = arith.constant 0 : i32
    %c0_i32_0 = arith.constant 0 : i32
    %c0_i32_1 = arith.constant 0 : i32
    return %c0_i32, %c0_i32_0 : i32, i32
  }
  func.func @transform_3(%arg0: i32) -> (i32, i32) {
    %c0_i32 = arith.constant 0 : i32
    %c0_i32_0 = arith.constant 0 : i32
    %c0_i32_1 = arith.constant 0 : i32
    return %c0_i32, %c0_i32_0 : i32, i32
  }
  func.func @transform_4(%arg0: i32) -> (i32, i32) {
    %c0_i32 = arith.constant 0 : i32
    %c0_i32_0 = arith.constant 0 : i32
    %c0_i32_1 = arith.constant 0 : i32
    return %c0_i32, %c0_i32_0 : i32, i32
  }
  func.func @transform_5(%arg0: i32) -> (i32, i32) {
    %c0_i32 = arith.constant 0 : i32
    %c0_i32_0 = arith.constant 0 : i32
    %c0_i32_1 = arith.constant 0 : i32
    return %c0_i32, %c0_i32_0 : i32, i32
  }
  func.func @transform_6(%arg0: i32) -> (i32, i32) {
    %c0_i32 = arith.constant 0 : i32
    %c0_i32_0 = arith.constant 0 : i32
    %c0_i32_1 = arith.constant 0 : i32
    return %c0_i32, %c0_i32_0 : i32, i32
  }
  func.func @transform_7(%arg0: i32) -> (i32, i32) {
    %c0_i32 = arith.constant 0 : i32
    %c0_i32_0 = arith.constant 0 : i32
    %c0_i32_1 = arith.constant 0 : i32
    return %c0_i32, %c0_i32_0 : i32, i32
  }
  func.func @transform_8(%arg0: i32) -> (i32, i32) {
    %c0_i32 = arith.constant 0 : i32
    %c0_i32_0 = arith.constant 0 : i32
    %c0_i32_1 = arith.constant 0 : i32
    return %c0_i32, %c0_i32_0 : i32, i32
  }
  func.func @transform_9(%arg0: i32) -> (i32, i32, i32) {
    %c0_i32 = arith.constant 0 : i32
    %c0_i32_0 = arith.constant 0 : i32
    %c0_i32_1 = arith.constant 0 : i32
    return %arg0, %c0_i32, %c0_i32_0 : i32, i32, i32
  }
}

</mosaic_0001>

<bundles_post_ra>
// kernel: tpu_custom_call.1
= control target key start
LH: loop header
LB: loop body
LE: loop exit
PB: predicated region body
PF: predicated region fallthrough
CT: control target
= control target key end

     0   :  { %14 = vsyncpa [#allocation3], 0  ;;  %s8268_s0 = inlined_call_operand.hbm [shape: f32[16,8,96], index: 0, kind: input, shape index: {}]   ;;  %s8269_s1 = inlined_call_operand.vmem [shape: f32[8,64], index: 1, kind: input, shape index: {}]   ;;  %s8270_s2 = inlined_call_operand.hbm [shape: f32[8,64], index: 2, kind: input, shape index: {}]   ;;  %s8271_s3 = inlined_call_operand.vmem [shape: f32[64,32], index: 3, kind: input, shape index: {}]   ;;  %s8272_s4 = inlined_call_operand.hbm [shape: f32[64,64], index: 4, kind: input, shape index: {}]   ;;  %s8273_s5 = inlined_call_operand.vmem [shape: f32[96,96], index: 5, kind: input, shape index: {}]   ;;  %s8274_s6 = inlined_call_operand.vmem [shape: f32[1,96], index: 6, kind: input, shape index: {}]   ;;  %s8275_s7 = inlined_call_operand.hbm [shape: f32[32,32], index: 7, kind: input, shape index: {}]   ;;  %s8276_s8 = inlined_call_operand.vmem [shape: f32[1,32], index: 8, kind: input, shape index: {}]   ;;  %s8277_s9 = inlined_call_operand.hbm [shape: f32[16,8,32], index: 9, kind: output, shape index: {}]  }
   0x1   :  { %15 = vsyncpa [#allocation6], 0 }
   0x2   :  { %16 = vsyncpa [#allocation9], 0 }
   0x3   :  { %17 = vsyncpa [#allocation4], 0  ;;  %s6201_s30 = smov [#allocation5]   ;;  %s6202_s11 = smov [#allocation2]  }
   0x4   :  { %s38_s10 = sshll.u32 %s6201_s30, 4  ;;  %s23_s12 = sshll.u32 %s6202_s11, 4  ;;  %s39_s10 = int_to_ptr.vmem [resolvable:$true] %s38_s10  ;;  %s24_s12 = int_to_ptr.vmem [resolvable:$true] %s23_s12 }
   0x5   :  { %s6101_s13 = scalar_lea.vmem %s39_s10, 128  ;;  %p6106_p1 = scmp.lt.s32.totalorder %s39_s10, %s39_s10 }
   0x6   :  { %p6102_p0 = scmp.ne.s32.totalorder %s39_s10, %s6101_s13  ;;  %p6107_p2 = scmp.lt.s32.totalorder %s6101_s13, %s6101_s13 }
   0x8   :  { %p6108_p3 = por %p6107_p2, %p6106_p1 }
   0xa   :  { %p6109_p4 = pnand %p6108_p3, %p6102_p0 }
   0xc   :  { %6112 = shalt.err (!%p6109_p4)
}
   0xd   :  { %41 = dma.hbm_to_vmem [thread:$0]  %s8270_s2, 128, %s39_s10, [#allocation6]  }
   0xe   :  { %s6121_s16 = scalar_lea.vmem %s24_s12, 2048  ;;  %p6126_p6 = scmp.lt.s32.totalorder %s24_s12, %s24_s12 }
   0xf   :  { %p6122_p5 = scmp.ne.s32.totalorder %s24_s12, %s6121_s16  ;;  %p6127_p7 = scmp.lt.s32.totalorder %s6121_s16, %s6121_s16 }
  0x11   :  { %p6128_p8 = por %p6127_p7, %p6126_p6 }
  0x13   :  { %p6129_p9 = pnand %p6128_p8, %p6122_p5 }
  0x15   :  { %6132 = shalt.err (!%p6129_p9)
}
  0x16   :  { %s6203_s17 = smov 128   ;;  %s6204_s18 = smov 8  }
  0x17   :  { %29 = dma.hbm_to_vmem [thread:$0]  %s8268_s0, 2048, %s24_s12, [#allocation3], %s6203_s17, %s6203_s17, %s6204_s18  }
  0x18   :  { %s6205_s21 = smov [#allocation7]   ;;  %s6206_s23 = smov [#allocation8]  }
  0x19   :  { %s49_s22 = sshll.u32 %s6205_s21, 4  ;;  %s65_s2 = sshll.u32 %s6206_s23, 4  ;;  %s50_s22 = int_to_ptr.vmem [resolvable:$true] %s49_s22  ;;  %s66_s2 = int_to_ptr.vmem [resolvable:$true] %s65_s2 }
  0x1a   :  { %s6141_s24 = scalar_lea.vmem %s50_s22, 1024  ;;  %p6146_p11 = scmp.lt.s32.totalorder %s50_s22, %s50_s22 }
  0x1b   :  { %p6142_p10 = scmp.ne.s32.totalorder %s50_s22, %s6141_s24  ;;  %p6147_p12 = scmp.lt.s32.totalorder %s6141_s24, %s6141_s24 }
  0x1d   :  { %p6148_p13 = por %p6147_p12, %p6146_p11 }
  0x1f   :  { %p6149_p0 = pnand %p6148_p13, %p6142_p10 }
  0x21   :  { %6152 = shalt.err (!%p6149_p0)
}
  0x22   :  { %55 = dma.hbm_to_vmem [thread:$0]  %s8272_s4, 1024, %s50_s22, [#allocation6], %s6203_s17, %s6203_s17, %s6204_s18  }
  0x23   :  { %s6161_s0 = scalar_lea.vmem %s66_s2, 512  ;;  %p6166_p2 = scmp.lt.s32.totalorder %s66_s2, %s66_s2 }
  0x24   :  { %p6162_p1 = scmp.ne.s32.totalorder %s66_s2, %s6161_s0  ;;  %p6167_p3 = scmp.lt.s32.totalorder %s6161_s0, %s6161_s0 }
  0x26   :  { %p6168_p4 = por %p6167_p3, %p6166_p2 }
  0x28   :  { %p6169_p5 = pnand %p6168_p4, %p6162_p1 }
  0x2a   :  { %6172 = shalt.err (!%p6169_p5)
}
  0x2b   :  { %71 = dma.hbm_to_vmem [thread:$0]  %s8275_s7, 512, %s66_s2, [#allocation9], %s6203_s17, %s6203_s17, %s6204_s18  }
  0x2c   :  { %6193 = dma.done.wait [#allocation3], 2048  }
  0x2d   :  { %6194 = vsyncadd [#allocation3], 4294965248 }
  0x2e   :  { %6195 = dma.done.wait [#allocation6], 1152  }
  0x2f   :  { %6196 = vsyncadd [#allocation6], 4294966144 }
  0x30   :  { %6197 = dma.done.wait [#allocation9], 512  }
  0x31   :  { %6198 = vsyncadd [#allocation9], 4294966784  ;;  %v113_v0 = vld [vmem:[%s8273_s5 + $0x58] sm:$0xff]  ;;  %v112_v1 = vld [vmem:[%s8273_s5 + $0x50] sm:$0xff]  ;;  %vm121_vm0 = vcmask 785408   ;;  %s6207_s25 = smov 32  }
  0x32   :  { %5281 = vmatprep.subr.mxu0 %v113_v0  ;;  %v111_v2 = vld [vmem:[%s8273_s5 + $0x48] sm:$0xff]  ;;  %v110_v3 = vld [vmem:[%s8273_s5 + $0x40] sm:$0xff]  ;;  %v109_v5 = vld [vmem:[%s8273_s5 + $0x38] sm:$0xff]  ;;  %v8278_v36 = vmov 0.0   ;;  %s6209_s26 = smov 96   ;;  %vm6210_vm1 = vmmov 0  }
  0x33   :  { %5282 = vmatpush3.msra.mxu0 %v113_v0  ;;  %v86_v4 = vld [vmem:[#allocation2] sm:$0xff]  ;;  %v108_v6 = vld [vmem:[%s8273_s5 + $0x30] sm:$0xff]  ;;  %v322_v7 = vld [vmem:[%s8271_s3 + $0x38] sm:$0xff]  ;;  %5329 = vmatprep.subr.mxu1 %v8278_v36  ;;  %vm660_vm2 = vcmask 261120   ;;  %s6211_s27 = smov 64   ;;  %vm2445_vm3 = vcmask 523264  }
  0x34   :  { %5283 = vmatprep.subr.mxu0 %v112_v1  ;;  %5305 = vmatprep.mubr.msk.f32.mxu0 %vm121_vm0, %v86_v4  ;;  %v320_v8 = vld [vmem:[%s8271_s3 + $0x28] sm:$0xff]  ;;  %v321_v10 = vld [vmem:[%s8271_s3 + $0x30] sm:$0xff]  ;;  %v106_v11 = vld [vmem:[%s8273_s5 + $0x20] sm:$0xff] }
  0x35   :  { %5284 = vmatpush3.msra.mxu0 %v112_v1  ;;  %v107_v9 = vld [vmem:[%s8273_s5 + $0x28] sm:$0xff]  ;;  %345 = vrot.lane.b32.xlu0 %v322_v7, %s6207_s25  ;;  %v319_v12 = vld [vmem:[%s8271_s3 + $0x20] sm:$0xff]  ;;  %v105_v13 = vld [vmem:[%s8273_s5 + $0x18] sm:$0xff] }
  0x36   :  { %5285 = vmatprep.subr.mxu0 %v111_v2  ;;  %341 = vrot.lane.b32.xlu1 %v320_v8, %s6207_s25  ;;  %v318_v14 = vld [vmem:[%s8271_s3 + $0x18] sm:$0xff]  ;;  %v104_v15 = vld [vmem:[%s8273_s5 + $0x10] sm:$0xff]  ;;  %v103_v17 = vld [vmem:[%s8273_s5 + $0x8] sm:$0xff] }
  0x37   :  { %5286 = vmatpush3.msra.mxu0 %v111_v2  ;;  %v317_v16 = vld [vmem:[%s8271_s3 + $0x10] sm:$0xff]  ;;  %v316_v18 = vld [vmem:[%s8271_s3 + $0x8] sm:$0xff]  ;;  %v102_v19 = vld [vmem:[%s8273_s5] sm:$0xff]  ;;  %5345 = vmatprep.mubr.msk.f32.mxu1 %vm6210_vm1, %v8278_v36 }
  0x38   :  { %5287 = vmatprep.subr.mxu0 %v110_v3  ;;  %v315_v20 = vld [vmem:[%s8271_s3] sm:$0xff]  ;;  %v87_v21 = vld [vmem:[#allocation2 + $0x8] sm:$0xff]  ;;  %v88_v22 = vld [vmem:[#allocation2 + $0x10] sm:$0xff] }
  0x39   :  { %5288 = vmatpush3.msra.mxu0 %v110_v3  ;;  %343 = vrot.lane.b32.xlu0 %v321_v10, %s6207_s25  ;;  %v89_v23 = vld [vmem:[#allocation2 + $0x18] sm:$0xff]  ;;  %v90_v24 = vld [vmem:[#allocation2 + $0x20] sm:$0xff]  ;;  %v91_v25 = vld [vmem:[#allocation2 + $0x28] sm:$0xff] }
  0x3a   :  { %5289 = vmatprep.subr.mxu0 %v109_v5  ;;  %339 = vrot.lane.b32.xlu1 %v319_v12, %s6207_s25  ;;  %v92_v26 = vld [vmem:[#allocation2 + $0x30] sm:$0xff]  ;;  %v93_v27 = vld [vmem:[#allocation2 + $0x38] sm:$0xff]  ;;  %v94_v28 = vld [vmem:[#allocation2 + $0x40] sm:$0xff] }
  0x3b   :  { %5290 = vmatpush3.msra.mxu0 %v109_v5  ;;  %v95_v29 = vld [vmem:[#allocation2 + $0x48] sm:$0xff]  ;;  %v96_v30 = vld [vmem:[#allocation2 + $0x50] sm:$0xff]  ;;  %v97_v31 = vld [vmem:[#allocation2 + $0x58] sm:$0xff] }
  0x3c   :  { %5291 = vmatprep.subr.mxu0 %v108_v6  ;;  %v98_v32 = vld [vmem:[#allocation2 + $0x60] sm:$0xff]  ;;  %v99_v33 = vld [vmem:[#allocation2 + $0x68] sm:$0xff]  ;;  %v100_v34 = vld [vmem:[#allocation2 + $0x70] sm:$0xff] }
  0x3d   :  { %5292 = vmatpush3.msra.mxu0 %v108_v6  ;;  %337 = vrot.lane.b32.xlu0 %v318_v14, %s6207_s25  ;;  %v101_v35 = vld [vmem:[#allocation2 + $0x78] sm:$0xff]  ;;  %v6373_v37 = vld [vmem:[%s8274_s6] ss:$0 sm:$0xff] }
  0x3e   :  { %5293 = vmatprep.subr.mxu0 %v107_v9  ;;  %335 = vrot.lane.b32.xlu1 %v317_v16, %s6207_s25 }
  0x3f   :  { %5294 = vmatpush3.msra.mxu0 %v107_v9 }
  0x40   :  { %5295 = vmatprep.subr.mxu0 %v106_v11 }
  0x41   :  { %5296 = vmatpush3.msra.mxu0 %v106_v11  ;;  %333 = vrot.lane.b32.xlu0 %v316_v18, %s6207_s25 }
  0x42   :  { %5297 = vmatprep.subr.mxu0 %v105_v13  ;;  %331 = vrot.lane.b32.xlu1 %v315_v20, %s6207_s25 }
  0x43   :  { %5298 = vmatpush3.msra.mxu0 %v105_v13 }
  0x44   :  { %5299 = vmatprep.subr.mxu0 %v104_v15 }
  0x45   :  { %5300 = vmatpush3.msra.mxu0 %v104_v15 }
  0x46   :  { %5301 = vmatprep.subr.mxu0 %v103_v17 }
  0x47   :  { %5302 = vmatpush3.msra.mxu0 %v103_v17 }
  0x48   :  { %5303 = vmatprep.subr.mxu0 %v102_v19 }
  0x49   :  { %5304 = vmatpush3.msra.mxu0 %v102_v19 }
  0x4a   :  { %5306 = vmatmul.mubr.msk.f32.vlgmr.msra.gmra.mxu0 %vm121_vm0, %v87_v21  ;;  %5348 = vmatprep.subr.mxu0 %v8278_v36 }
  0x4b   :  { %5308 = vmatprep.mubr.msk.f32.mxu0 %vm121_vm0, %v88_v22 }
  0x4e   :  { %5309 = vmatmul.mubr.msk.f32.gmra.mxu0 %vm121_vm0, %v89_v23 }
  0x4f   :  { %5311 = vmatprep.mubr.msk.f32.mxu0 %vm121_vm0, %v90_v24 }
  0x52   :  { %5312 = vmatmul.mubr.msk.f32.gmra.mxu0 %vm121_vm0, %v91_v25 }
  0x53   :  { %5314 = vmatprep.mubr.msk.f32.mxu0 %vm121_vm0, %v92_v26 }
  0x56   :  { %5315 = vmatmul.mubr.msk.f32.gmra.mxu0 %vm121_vm0, %v93_v27 }
  0x57   :  { %5317 = vmatprep.mubr.msk.f32.mxu0 %vm121_vm0, %v94_v28 }
  0x5a   :  { %5318 = vmatmul.mubr.msk.f32.gmra.mxu0 %vm121_vm0, %v95_v29 }
  0x5b   :  { %5320 = vmatprep.mubr.msk.f32.mxu0 %vm121_vm0, %v96_v30 }
  0x5e   :  { %5321 = vmatmul.mubr.msk.f32.gmra.mxu0 %vm121_vm0, %v97_v31 }
  0x5f   :  { %5323 = vmatprep.mubr.msk.f32.mxu0 %vm121_vm0, %v98_v32 }
  0x62   :  { %5324 = vmatmul.mubr.msk.f32.gmra.mxu0 %vm121_vm0, %v99_v33 }
  0x63   :  { %5326 = vmatprep.mubr.msk.f32.mxu0 %vm121_vm0, %v100_v34 }
  0x66   :  { %5327 = vmatmul.mubr.msk.f32.gmra.mxu0 %vm121_vm0, %v101_v35 }
  0x67   :  { %5364 = vmatprep.mubr.msk.f32.mxu0 %vm6210_vm1, %v8278_v36 }
  0xa7   :  { %v6375_v38 = vpop.permute.xlu0 %345 }
  0xa8   :  { %v6393_v47 = vpop.permute.xlu1 %341 }
  0xab   :  { %v6388_v45 = vpop.permute.xlu0 %343 }
  0xac   :  { %v6404_v51 = vpop.permute.xlu1 %339 }
  0xaf   :  { %v6412_v54 = vpop.permute.xlu0 %337 }
  0xb0   :  { %v6420_v57 = vpop.permute.xlu1 %335 }
  0xb3   :  { %v6425_v59 = vpop.permute.xlu0 %333 }
  0xb4   :  { %v6437_v63 = vpop.permute.xlu1 %331 }
 0x10a   :  { %v5307_v39 = vpop.f32.mrf.mxu0 }
 0x10b   :  { %v6378_v40 = vadd.f32 %v5307_v39, %v6373_v37 }
 0x10c   :  { %v236_v41 = vpop.f32.mrf.mxu0 }
 0x10d   :  { %v6381_v42 = vadd.f32 %v6373_v37, %v236_v41  ;;  %v370_v43 = vmul.f32 %v6375_v38, %v6378_v40  ;;  %v369_v46 = vmul.f32 %v6388_v45, %v6378_v40  ;;  %v368_v49 = vmul.f32 %v6393_v47, %v6378_v40 }
 0x10e   :  { %v367_v52 = vmul.f32 %v6404_v51, %v6378_v40  ;;  %v366_v55 = vmul.f32 %v6412_v54, %v6378_v40  ;;  %v365_v58 = vmul.f32 %v6420_v57, %v6378_v40  ;;  %v5310_v61 = vpop.f32.mrf.mxu0  ;;  %v364_v62 = vmul.f32 %v6425_v59, %v6378_v40 }
 0x10f   :  { %772 = vrot.lane.b32.xlu1 %v370_v43, %s6209_s26  ;;  %v362_v44 = vmul.f32 %v6375_v38, %v6381_v42  ;;  %v361_v48 = vmul.f32 %v6388_v45, %v6381_v42  ;;  %v360_v50 = vmul.f32 %v6393_v47, %v6381_v42  ;;  %v359_v53 = vmul.f32 %v6404_v51, %v6381_v42 }
 0x110   :  { %v358_v56 = vmul.f32 %v6412_v54, %v6381_v42  ;;  %v357_v60 = vmul.f32 %v6420_v57, %v6381_v42  ;;  %v356_v0 = vmul.f32 %v6425_v59, %v6381_v42  ;;  %v246_v1 = vpop.f32.mrf.mxu0  ;;  %v6443_v2 = vadd.f32 %v5310_v61, %v6373_v37 }
 0x111   :  { %658 = vrot.lane.b32.xlu0 %v362_v44, %s6209_s26  ;;  %v363_v3 = vmul.f32 %v6437_v63, %v6378_v40  ;;  %v6449_v4 = vadd.f32 %v6373_v37, %v246_v1  ;;  %v355_v5 = vmul.f32 %v6437_v63, %v6381_v42 }
 0x112   :  { %v386_v6 = vmul.f32 %v6375_v38, %v6443_v2  ;;  %v385_v8 = vmul.f32 %v6388_v45, %v6443_v2  ;;  %v384_v10 = vmul.f32 %v6393_v47, %v6443_v2  ;;  %v383_v12 = vmul.f32 %v6404_v51, %v6443_v2  ;;  %v5313_v18 = vpop.f32.mrf.mxu0 }
 0x113   :  { %770 = vrot.lane.b32.xlu1 %v369_v46, %s6209_s26  ;;  %v378_v7 = vmul.f32 %v6375_v38, %v6449_v4  ;;  %v377_v9 = vmul.f32 %v6388_v45, %v6449_v4  ;;  %v376_v11 = vmul.f32 %v6393_v47, %v6449_v4  ;;  %v375_v13 = vmul.f32 %v6404_v51, %v6449_v4 }
 0x114   :  { %v382_v14 = vmul.f32 %v6412_v54, %v6443_v2  ;;  %v374_v15 = vmul.f32 %v6412_v54, %v6449_v4  ;;  %v381_v16 = vmul.f32 %v6420_v57, %v6443_v2  ;;  %v373_v17 = vmul.f32 %v6420_v57, %v6449_v4  ;;  %v256_v21 = vpop.f32.mrf.mxu0 }
 0x115   :  { %656 = vrot.lane.b32.xlu0 %v361_v48, %s6209_s26  ;;  %v380_v19 = vmul.f32 %v6425_v59, %v6443_v2  ;;  %v372_v20 = vmul.f32 %v6425_v59, %v6449_v4  ;;  %v6497_v22 = vadd.f32 %v5313_v18, %v6373_v37  ;;  %v379_v23 = vmul.f32 %v6437_v63, %v6443_v2 }
 0x116   :  { %v6503_v24 = vadd.f32 %v6373_v37, %v256_v21  ;;  %v371_v25 = vmul.f32 %v6437_v63, %v6449_v4  ;;  %v5316_v43 = vpop.f32.mrf.mxu0 }
 0x117   :  { %768 = vrot.lane.b32.xlu1 %v368_v49, %s6209_s26  ;;  %v402_v26 = vmul.f32 %v6375_v38, %v6497_v22  ;;  %v401_v28 = vmul.f32 %v6388_v45, %v6497_v22  ;;  %v400_v30 = vmul.f32 %v6393_v47, %v6497_v22  ;;  %v399_v32 = vmul.f32 %v6404_v51, %v6497_v22 }
 0x118   :  { %v394_v27 = vmul.f32 %v6375_v38, %v6503_v24  ;;  %v393_v29 = vmul.f32 %v6388_v45, %v6503_v24  ;;  %v392_v31 = vmul.f32 %v6393_v47, %v6503_v24  ;;  %v391_v33 = vmul.f32 %v6404_v51, %v6503_v24  ;;  %v266_v48 = vpop.f32.mrf.mxu0 }
 0x119   :  { %654 = vrot.lane.b32.xlu0 %v360_v50, %s6209_s26  ;;  %v398_v34 = vmul.f32 %v6412_v54, %v6497_v22  ;;  %v390_v35 = vmul.f32 %v6412_v54, %v6503_v24  ;;  %v397_v39 = vmul.f32 %v6420_v57, %v6497_v22  ;;  %v389_v41 = vmul.f32 %v6420_v57, %v6503_v24 }
 0x11a   :  { %v396_v44 = vmul.f32 %v6425_v59, %v6497_v22  ;;  %v388_v46 = vmul.f32 %v6425_v59, %v6503_v24  ;;  %v6551_v49 = vadd.f32 %v5316_v43, %v6373_v37  ;;  %v395_v50 = vmul.f32 %v6437_v63, %v6497_v22 }
 0x11b   :  { %766 = vrot.lane.b32.xlu1 %v367_v52, %s6209_s26  ;;  %v6557_v52 = vadd.f32 %v6373_v37, %v266_v48 }
 0x11c   :  { %v416_v61 = vmul.f32 %v6393_v47, %v6551_v49  ;;  %v411_v18 = vmul.f32 %v6437_v63, %v6551_v49 }
 0x11d   :  { %652 = vrot.lane.b32.xlu0 %v359_v53, %s6209_s26  ;;  %v387_v53 = vmul.f32 %v6437_v63, %v6503_v24  ;;  %v407_v1 = vmul.f32 %v6404_v51, %v6557_v52  ;;  %v403_v21 = vmul.f32 %v6437_v63, %v6557_v52 }
 0x11f   :  { %764 = vrot.lane.b32.xlu1 %v366_v55, %s6209_s26  ;;  %v418_v55 = vmul.f32 %v6375_v38, %v6551_v49 }
 0x121   :  { %650 = vrot.lane.b32.xlu0 %v358_v56, %s6209_s26  ;;  %v410_v56 = vmul.f32 %v6375_v38, %v6557_v52 }
 0x123   :  { %762 = vrot.lane.b32.xlu1 %v365_v58, %s6209_s26  ;;  %v417_v58 = vmul.f32 %v6388_v45, %v6551_v49 }
 0x125   :  { %648 = vrot.lane.b32.xlu0 %v357_v60, %s6209_s26  ;;  %v409_v60 = vmul.f32 %v6388_v45, %v6557_v52 }
 0x127   :  { %760 = vrot.lane.b32.xlu1 %v364_v62, %s6209_s26  ;;  %v408_v62 = vmul.f32 %v6393_v47, %v6557_v52 }
 0x129   :  { %646 = vrot.lane.b32.xlu0 %v356_v0, %s6209_s26  ;;  %v415_v0 = vmul.f32 %v6404_v51, %v6551_v49 }
 0x12b   :  { %758 = vrot.lane.b32.xlu1 %v363_v3, %s6209_s26  ;;  %v414_v3 = vmul.f32 %v6412_v54, %v6551_v49 }
 0x12d   :  { %644 = vrot.lane.b32.xlu0 %v355_v5, %s6209_s26  ;;  %v406_v5 = vmul.f32 %v6412_v54, %v6557_v52 }
 0x12f   :  { %998 = vrot.lane.b32.xlu1 %v386_v6, %s6209_s26 }
 0x131   :  { %885 = vrot.lane.b32.xlu0 %v378_v7, %s6209_s26  ;;  %v413_v7 = vmul.f32 %v6420_v57, %v6551_v49 }
 0x133   :  { %996 = vrot.lane.b32.xlu1 %v385_v8, %s6209_s26 }
 0x135   :  { %883 = vrot.lane.b32.xlu0 %v377_v9, %s6209_s26  ;;  %v405_v9 = vmul.f32 %v6420_v57, %v6557_v52 }
 0x137   :  { %994 = vrot.lane.b32.xlu1 %v384_v10, %s6209_s26  ;;  %v5319_v10 = vpop.f32.mrf.mxu0 }
 0x139   :  { %881 = vrot.lane.b32.xlu0 %v376_v11, %s6209_s26 }
 0x13b   :  { %992 = vrot.lane.b32.xlu1 %v383_v12, %s6209_s26  ;;  %v412_v12 = vmul.f32 %v6425_v59, %v6551_v49 }
 0x13d   :  { %879 = vrot.lane.b32.xlu0 %v375_v13, %s6209_s26 }
 0x13f   :  { %990 = vrot.lane.b32.xlu1 %v382_v14, %s6209_s26  ;;  %v404_v14 = vmul.f32 %v6425_v59, %v6557_v52 }
 0x141   :  { %877 = vrot.lane.b32.xlu0 %v374_v15, %s6209_s26  ;;  %v276_v15 = vpop.f32.mrf.mxu0 }
 0x143   :  { %988 = vrot.lane.b32.xlu1 %v381_v16, %s6209_s26  ;;  %v6612_v16 = vadd.f32 %v5319_v10, %v6373_v37 }
 0x145   :  { %875 = vrot.lane.b32.xlu0 %v373_v17, %s6209_s26  ;;  %v430_v48 = vmul.f32 %v6412_v54, %v6612_v16 }
 0x147   :  { %986 = vrot.lane.b32.xlu1 %v380_v19, %s6209_s26  ;;  %v6620_v19 = vadd.f32 %v6373_v37, %v276_v15 }
 0x149   :  { %873 = vrot.lane.b32.xlu0 %v372_v20, %s6209_s26 }
 0x14b   :  { %984 = vrot.lane.b32.xlu1 %v379_v23, %s6209_s26 }
 0x14d   :  { %871 = vrot.lane.b32.xlu0 %v371_v25, %s6209_s26  ;;  %v434_v25 = vmul.f32 %v6375_v38, %v6612_v16 }
 0x14f   :  { %1224 = vrot.lane.b32.xlu1 %v402_v26, %s6209_s26 }
 0x151   :  { %1111 = vrot.lane.b32.xlu0 %v394_v27, %s6209_s26  ;;  %v426_v27 = vmul.f32 %v6375_v38, %v6620_v19 }
 0x153   :  { %1222 = vrot.lane.b32.xlu1 %v401_v28, %s6209_s26 }
 0x155   :  { %1109 = vrot.lane.b32.xlu0 %v393_v29, %s6209_s26  ;;  %v433_v29 = vmul.f32 %v6388_v45, %v6612_v16 }
 0x157   :  { %1220 = vrot.lane.b32.xlu1 %v400_v30, %s6209_s26 }
 0x159   :  { %1107 = vrot.lane.b32.xlu0 %v392_v31, %s6209_s26  ;;  %v425_v31 = vmul.f32 %v6388_v45, %v6620_v19 }
 0x15b   :  { %1218 = vrot.lane.b32.xlu1 %v399_v32, %s6209_s26 }
 0x15d   :  { %1105 = vrot.lane.b32.xlu0 %v391_v33, %s6209_s26  ;;  %v432_v33 = vmul.f32 %v6393_v47, %v6612_v16 }
 0x15f   :  { %1216 = vrot.lane.b32.xlu1 %v398_v34, %s6209_s26 }
 0x161   :  { %1103 = vrot.lane.b32.xlu0 %v390_v35, %s6209_s26  ;;  %v424_v35 = vmul.f32 %v6393_v47, %v6620_v19 }
 0x163   :  { %1214 = vrot.lane.b32.xlu1 %v397_v39, %s6209_s26 }
 0x165   :  { %1101 = vrot.lane.b32.xlu0 %v389_v41, %s6209_s26  ;;  %v431_v41 = vmul.f32 %v6404_v51, %v6612_v16 }
 0x167   :  { %1212 = vrot.lane.b32.xlu1 %v396_v44, %s6209_s26  ;;  %v423_v44 = vmul.f32 %v6404_v51, %v6620_v19 }
 0x169   :  { %1099 = vrot.lane.b32.xlu0 %v388_v46, %s6209_s26 }
 0x16b   :  { %1210 = vrot.lane.b32.xlu1 %v395_v50, %s6209_s26 }
 0x16d   :  { %1097 = vrot.lane.b32.xlu0 %v387_v53, %s6209_s26  ;;  %v422_v53 = vmul.f32 %v6412_v54, %v6620_v19 }
 0x16f   :  { %1450 = vrot.lane.b32.xlu1 %v418_v55, %s6209_s26 }
 0x171   :  { %1337 = vrot.lane.b32.xlu0 %v410_v56, %s6209_s26  ;;  %v429_v56 = vmul.f32 %v6420_v57, %v6612_v16 }
 0x173   :  { %1448 = vrot.lane.b32.xlu1 %v417_v58, %s6209_s26 }
 0x175   :  { %1335 = vrot.lane.b32.xlu0 %v409_v60, %s6209_s26  ;;  %v421_v60 = vmul.f32 %v6420_v57, %v6620_v19 }
 0x177   :  { %1446 = vrot.lane.b32.xlu1 %v416_v61, %s6209_s26  ;;  %v5322_v61 = vpop.f32.mrf.mxu0 }
 0x179   :  { %1333 = vrot.lane.b32.xlu0 %v408_v62, %s6209_s26 }
 0x17b   :  { %1444 = vrot.lane.b32.xlu1 %v415_v0, %s6209_s26  ;;  %v428_v0 = vmul.f32 %v6425_v59, %v6612_v16 }
 0x17d   :  { %1331 = vrot.lane.b32.xlu0 %v407_v1, %s6209_s26 }
 0x17f   :  { %1442 = vrot.lane.b32.xlu1 %v414_v3, %s6209_s26  ;;  %v420_v3 = vmul.f32 %v6425_v59, %v6620_v19 }
 0x181   :  { %v773_v6 = vpop.permute.xlu1 %772  ;;  %1329 = vrot.lane.b32.xlu0 %v406_v5, %s6209_s26  ;;  %v286_v5 = vpop.f32.mrf.mxu0 }
 0x182   :  { %5349 = vmatpush3.xpose.msk.msra.mxu0 %vm660_vm2, %v773_v6  ;;  %v6706_v6 = vadd.f32 %v5322_v61, %v6373_v37 }
 0x183   :  { %1440 = vrot.lane.b32.xlu1 %v413_v7, %s6209_s26  ;;  %v659_v8 = vpop.permute.xlu0 %658  ;;  %5350 = vmatprep.subr.mxu0 %v8278_v36 }
 0x184   :  { %5330 = vmatpush3.xpose.msk.msra.mxu1 %vm660_vm2, %v659_v8  ;;  %v427_v8 = vmul.f32 %v6437_v63, %v6612_v16  ;;  %v443_v61 = vmul.f32 %v6437_v63, %v6706_v6 }
 0x185   :  { %v771_v11 = vpop.permute.xlu1 %770  ;;  %1327 = vrot.lane.b32.xlu0 %v405_v9, %s6209_s26  ;;  %5331 = vmatprep.subr.mxu1 %v8278_v36  ;;  %v6714_v9 = vadd.f32 %v6373_v37, %v286_v5 }
 0x186   :  { %5351 = vmatpush3.xpose.msk.msra.mxu0 %vm660_vm2, %v771_v11  ;;  %v419_v11 = vmul.f32 %v6437_v63, %v6620_v19 }
 0x187   :  { %1438 = vrot.lane.b32.xlu1 %v412_v12, %s6209_s26  ;;  %v657_v13 = vpop.permute.xlu0 %656  ;;  %5352 = vmatprep.subr.mxu0 %v8278_v36  ;;  %v442_v15 = vmul.f32 %v6375_v38, %v6714_v9 }
 0x188   :  { %5332 = vmatpush3.xpose.msk.msra.mxu1 %vm660_vm2, %v657_v13  ;;  %v450_v13 = vmul.f32 %v6375_v38, %v6706_v6 }
 0x189   :  { %v769_v17 = vpop.permute.xlu1 %768  ;;  %1325 = vrot.lane.b32.xlu0 %v404_v14, %s6209_s26  ;;  %5333 = vmatprep.subr.mxu1 %v8278_v36 }
 0x18a   :  { %5353 = vmatpush3.xpose.msk.msra.mxu0 %vm660_vm2, %v769_v17 }
 0x18b   :  { %1436 = vrot.lane.b32.xlu1 %v411_v18, %s6209_s26  ;;  %v655_v20 = vpop.permute.xlu0 %654  ;;  %5354 = vmatprep.subr.mxu0 %v8278_v36  ;;  %v449_v18 = vmul.f32 %v6388_v45, %v6706_v6 }
 0x18c   :  { %5334 = vmatpush3.xpose.msk.msra.mxu1 %vm660_vm2, %v655_v20 }
 0x18d   :  { %v767_v23 = vpop.permute.xlu1 %766  ;;  %1323 = vrot.lane.b32.xlu0 %v403_v21, %s6209_s26  ;;  %5335 = vmatprep.subr.mxu1 %v8278_v36  ;;  %v441_v21 = vmul.f32 %v6388_v45, %v6714_v9 }
 0x18e   :  { %5355 = vmatpush3.xpose.msk.msra.mxu0 %vm660_vm2, %v767_v23 }
 0x18f   :  { %1676 = vrot.lane.b32.xlu1 %v434_v25, %s6209_s26  ;;  %v653_v26 = vpop.permute.xlu0 %652  ;;  %5356 = vmatprep.subr.mxu0 %v8278_v36  ;;  %v448_v25 = vmul.f32 %v6393_v47, %v6706_v6 }
 0x190   :  { %5336 = vmatpush3.xpose.msk.msra.mxu1 %vm660_vm2, %v653_v26 }
 0x191   :  { %v765_v28 = vpop.permute.xlu1 %764  ;;  %1563 = vrot.lane.b32.xlu0 %v426_v27, %s6209_s26  ;;  %5337 = vmatprep.subr.mxu1 %v8278_v36  ;;  %v440_v27 = vmul.f32 %v6393_v47, %v6714_v9 }
 0x192   :  { %5357 = vmatpush3.xpose.msk.msra.mxu0 %vm660_vm2, %v765_v28 }
 0x193   :  { %1674 = vrot.lane.b32.xlu1 %v433_v29, %s6209_s26  ;;  %v651_v30 = vpop.permute.xlu0 %650  ;;  %5358 = vmatprep.subr.mxu0 %v8278_v36  ;;  %v447_v29 = vmul.f32 %v6404_v51, %v6706_v6 }
 0x194   :  { %5338 = vmatpush3.xpose.msk.msra.mxu1 %vm660_vm2, %v651_v30 }
 0x195   :  { %v763_v32 = vpop.permute.xlu1 %762  ;;  %1561 = vrot.lane.b32.xlu0 %v425_v31, %s6209_s26  ;;  %5339 = vmatprep.subr.mxu1 %v8278_v36  ;;  %v439_v31 = vmul.f32 %v6404_v51, %v6714_v9 }
 0x196   :  { %5359 = vmatpush3.xpose.msk.msra.mxu0 %vm660_vm2, %v763_v32 }
 0x197   :  { %1672 = vrot.lane.b32.xlu1 %v432_v33, %s6209_s26  ;;  %v649_v34 = vpop.permute.xlu0 %648  ;;  %5360 = vmatprep.subr.mxu0 %v8278_v36  ;;  %v446_v33 = vmul.f32 %v6412_v54, %v6706_v6 }
 0x198   :  { %5340 = vmatpush3.xpose.msk.msra.mxu1 %vm660_vm2, %v649_v34 }
 0x199   :  { %v761_v39 = vpop.permute.xlu1 %760  ;;  %1559 = vrot.lane.b32.xlu0 %v424_v35, %s6209_s26  ;;  %5341 = vmatprep.subr.mxu1 %v8278_v36  ;;  %v438_v35 = vmul.f32 %v6412_v54, %v6714_v9 }
 0x19a   :  { %5361 = vmatpush3.xpose.msk.msra.mxu0 %vm660_vm2, %v761_v39 }
 0x19b   :  { %1670 = vrot.lane.b32.xlu1 %v431_v41, %s6209_s26  ;;  %v647_v43 = vpop.permute.xlu0 %646  ;;  %5362 = vmatprep.subr.mxu0 %v8278_v36  ;;  %v445_v41 = vmul.f32 %v6420_v57, %v6706_v6 }
 0x19c   :  { %5342 = vmatpush3.xpose.msk.msra.mxu1 %vm660_vm2, %v647_v43 }
 0x19d   :  { %v759_v46 = vpop.permute.xlu1 %758  ;;  %1557 = vrot.lane.b32.xlu0 %v423_v44, %s6209_s26  ;;  %5343 = vmatprep.subr.mxu1 %v8278_v36  ;;  %v437_v44 = vmul.f32 %v6420_v57, %v6714_v9 }
 0x19e   :  { %5363 = vmatpush3.xpose.msk.msra.mxu0 %vm660_vm2, %v759_v46  ;;  %v5325_v46 = vpop.f32.mrf.mxu0 }
 0x19f   :  { %1668 = vrot.lane.b32.xlu1 %v430_v48, %s6209_s26  ;;  %v645_v50 = vpop.permute.xlu0 %644  ;;  %5386 = vmatprep.subr.mxu0 %v8278_v36 }
 0x1a0   :  { %5344 = vmatpush3.xpose.msk.msra.mxu1 %vm660_vm2, %v645_v50  ;;  %v444_v50 = vmul.f32 %v6425_v59, %v6706_v6 }
 0x1a1   :  { %5365 = vmatmul.mubr.msk.f32.vlgmr.msra.gmra.mxu0 %vm660_vm2, %v6378_v40  ;;  %v999_v55 = vpop.permute.xlu1 %998  ;;  %1555 = vrot.lane.b32.xlu0 %v422_v53, %s6209_s26 }
 0x1a2   :  { %5387 = vmatpush3.xpose.msk.msra.mxu0 %vm660_vm2, %v999_v55  ;;  %5367 = vmatprep.subr.mxu1 %v8278_v36  ;;  %v436_v55 = vmul.f32 %v6425_v59, %v6714_v9 }
 0x1a3   :  { %1666 = vrot.lane.b32.xlu1 %v429_v56, %s6209_s26  ;;  %5346 = vmatmul.mubr.msk.f32.vlgmr.msra.gmra.mxu1 %vm660_vm2, %v6381_v42  ;;  %v886_v58 = vpop.permute.xlu0 %885  ;;  %v296_v56 = vpop.f32.mrf.mxu0 }
 0x1a4   :  { %5368 = vmatpush3.xpose.msk.msra.mxu1 %vm660_vm2, %v886_v58  ;;  %5388 = vmatprep.subr.mxu0 %v8278_v36  ;;  %v6800_v58 = vadd.f32 %v5325_v46, %v6373_v37 }
 0x1a5   :  { %v997_v62 = vpop.permute.xlu1 %996  ;;  %1553 = vrot.lane.b32.xlu0 %v421_v60, %s6209_s26  ;;  %5369 = vmatprep.subr.mxu1 %v8278_v36 }
 0x1a6   :  { %5389 = vmatpush3.xpose.msk.msra.mxu0 %vm660_vm2, %v997_v62  ;;  %5402 = vmatprep.mubr.msk.f32.mxu0 %vm6210_vm1, %v8278_v36  ;;  %v6808_v62 = vadd.f32 %v6373_v37, %v296_v56  ;;  %v466_v5 = vmul.f32 %v6375_v38, %v6800_v58 }
 0x1a7   :  { %1664 = vrot.lane.b32.xlu1 %v428_v0, %s6209_s26  ;;  %v884_v1 = vpop.permute.xlu0 %883  ;;  %5390 = vmatprep.subr.mxu0 %v8278_v36 }
 0x1a8   :  { %5370 = vmatpush3.xpose.msk.msra.mxu1 %vm660_vm2, %v884_v1  ;;  %5383 = vmatprep.mubr.msk.f32.mxu1 %vm6210_vm1, %v8278_v36  ;;  %v435_v1 = vmul.f32 %v6437_v63, %v6714_v9  ;;  %v451_v56 = vmul.f32 %v6437_v63, %v6808_v62 }
 0x1a9   :  { %v995_v7 = vpop.permute.xlu1 %994  ;;  %1551 = vrot.lane.b32.xlu0 %v420_v3, %s6209_s26  ;;  %5371 = vmatprep.subr.mxu1 %v8278_v36 }
 0x1aa   :  { %5391 = vmatpush3.xpose.msk.msra.mxu0 %vm660_vm2, %v995_v7 }
 0x1ab   :  { %1662 = vrot.lane.b32.xlu1 %v427_v8, %s6209_s26  ;;  %v882_v10 = vpop.permute.xlu0 %881  ;;  %5392 = vmatprep.subr.mxu0 %v8278_v36  ;;  %v458_v8 = vmul.f32 %v6375_v38, %v6808_v62 }
 0x1ac   :  { %5372 = vmatpush3.xpose.msk.msra.mxu1 %vm660_vm2, %v882_v10 }
 0x1ad   :  { %v993_v12 = vpop.permute.xlu1 %992  ;;  %1549 = vrot.lane.b32.xlu0 %v419_v11, %s6209_s26  ;;  %5373 = vmatprep.subr.mxu1 %v8278_v36  ;;  %v465_v11 = vmul.f32 %v6388_v45, %v6800_v58 }
 0x1ae   :  { %5393 = vmatpush3.xpose.msk.msra.mxu0 %vm660_vm2, %v993_v12 }
 0x1af   :  { %1902 = vrot.lane.b32.xlu1 %v450_v13, %s6209_s26  ;;  %v880_v14 = vpop.permute.xlu0 %879  ;;  %5394 = vmatprep.subr.mxu0 %v8278_v36  ;;  %v457_v13 = vmul.f32 %v6388_v45, %v6808_v62 }
 0x1b0   :  { %5374 = vmatpush3.xpose.msk.msra.mxu1 %vm660_vm2, %v880_v14 }
 0x1b1   :  { %v991_v17 = vpop.permute.xlu1 %990  ;;  %1789 = vrot.lane.b32.xlu0 %v442_v15, %s6209_s26  ;;  %5375 = vmatprep.subr.mxu1 %v8278_v36  ;;  %v464_v15 = vmul.f32 %v6393_v47, %v6800_v58 }
 0x1b2   :  { %5395 = vmatpush3.xpose.msk.msra.mxu0 %vm660_vm2, %v991_v17 }
 0x1b3   :  { %1900 = vrot.lane.b32.xlu1 %v449_v18, %s6209_s26  ;;  %v878_v20 = vpop.permute.xlu0 %877  ;;  %5396 = vmatprep.subr.mxu0 %v8278_v36  ;;  %v456_v18 = vmul.f32 %v6393_v47, %v6808_v62 }
 0x1b4   :  { %5376 = vmatpush3.xpose.msk.msra.mxu1 %vm660_vm2, %v878_v20 }
 0x1b5   :  { %v989_v23 = vpop.permute.xlu1 %988  ;;  %1787 = vrot.lane.b32.xlu0 %v441_v21, %s6209_s26  ;;  %5377 = vmatprep.subr.mxu1 %v8278_v36  ;;  %v463_v21 = vmul.f32 %v6404_v51, %v6800_v58 }
 0x1b6   :  { %5397 = vmatpush3.xpose.msk.msra.mxu0 %vm660_vm2, %v989_v23 }
 0x1b7   :  { %1898 = vrot.lane.b32.xlu1 %v448_v25, %s6209_s26  ;;  %v876_v26 = vpop.permute.xlu0 %875  ;;  %5398 = vmatprep.subr.mxu0 %v8278_v36  ;;  %v455_v25 = vmul.f32 %v6404_v51, %v6808_v62 }
 0x1b8   :  { %5378 = vmatpush3.xpose.msk.msra.mxu1 %vm660_vm2, %v876_v26 }
 0x1b9   :  { %v987_v28 = vpop.permute.xlu1 %986  ;;  %1785 = vrot.lane.b32.xlu0 %v440_v27, %s6209_s26  ;;  %5379 = vmatprep.subr.mxu1 %v8278_v36  ;;  %v462_v27 = vmul.f32 %v6412_v54, %v6800_v58 }
 0x1ba   :  { %5399 = vmatpush3.xpose.msk.msra.mxu0 %vm660_vm2, %v987_v28 }
 0x1bb   :  { %1896 = vrot.lane.b32.xlu1 %v447_v29, %s6209_s26  ;;  %v874_v30 = vpop.permute.xlu0 %873  ;;  %5400 = vmatprep.subr.mxu0 %v8278_v36  ;;  %v454_v29 = vmul.f32 %v6412_v54, %v6808_v62 }
 0x1bc   :  { %5380 = vmatpush3.xpose.msk.msra.mxu1 %vm660_vm2, %v874_v30 }
 0x1bd   :  { %v985_v32 = vpop.permute.xlu1 %984  ;;  %1783 = vrot.lane.b32.xlu0 %v439_v31, %s6209_s26  ;;  %5381 = vmatprep.subr.mxu1 %v8278_v36  ;;  %v461_v31 = vmul.f32 %v6420_v57, %v6800_v58 }
 0x1be   :  { %5401 = vmatpush3.xpose.msk.msra.mxu0 %vm660_vm2, %v985_v32 }
 0x1bf   :  { %1894 = vrot.lane.b32.xlu1 %v446_v33, %s6209_s26  ;;  %v872_v34 = vpop.permute.xlu0 %871  ;;  %5424 = vmatprep.subr.mxu0 %v8278_v36  ;;  %v453_v33 = vmul.f32 %v6420_v57, %v6808_v62 }
 0x1c0   :  { %5382 = vmatpush3.xpose.msk.msra.mxu1 %vm660_vm2, %v872_v34  ;;  %v5328_v34 = vpop.f32.mrf.mxu0 }
 0x1c1   :  { %5403 = vmatmul.mubr.msk.f32.vlgmr.msra.gmra.mxu0 %vm660_vm2, %v6443_v2  ;;  %v1225_v39 = vpop.permute.xlu1 %1224  ;;  %1781 = vrot.lane.b32.xlu0 %v438_v35, %s6209_s26  ;;  %v6894_v46 = vadd.f32 %v5328_v34, %v6373_v37  ;;  %v6087_v34 = vld [vmem:[%s8271_s3 + $0x28] sm:$0xff] }
 0x1c2   :  { %5425 = vmatpush3.xpose.msk.msra.mxu0 %vm660_vm2, %v1225_v39  ;;  %5405 = vmatprep.subr.mxu1 %v8278_v36  ;;  %v460_v39 = vmul.f32 %v6425_v59, %v6800_v58 }
 0x1c3   :  { %1892 = vrot.lane.b32.xlu1 %v445_v41, %s6209_s26  ;;  %5384 = vmatmul.mubr.msk.f32.vlgmr.msra.gmra.mxu1 %vm660_vm2, %v6449_v4  ;;  %v1112_v43 = vpop.permute.xlu0 %1111 }
 0x1c4   :  { %5406 = vmatpush3.xpose.msk.msra.mxu1 %vm660_vm2, %v1112_v43  ;;  %5426 = vmatprep.subr.mxu0 %v8278_v36  ;;  %v452_v43 = vmul.f32 %v6425_v59, %v6808_v62 }
 0x1c5   :  { %v1223_v48 = vpop.permute.xlu1 %1222  ;;  %1779 = vrot.lane.b32.xlu0 %v437_v44, %s6209_s26  ;;  %5407 = vmatprep.subr.mxu1 %v8278_v36  ;;  %v306_v44 = vpop.f32.mrf.mxu0 }
 0x1c6   :  { %5427 = vmatpush3.xpose.msk.msra.mxu0 %vm660_vm2, %v1223_v48  ;;  %5440 = vmatprep.mubr.msk.f32.mxu0 %vm6210_vm1, %v8278_v36 }
 0x1c7   :  { %1890 = vrot.lane.b32.xlu1 %v444_v50, %s6209_s26  ;;  %v1110_v53 = vpop.permute.xlu0 %1109  ;;  %5428 = vmatprep.subr.mxu0 %v8278_v36  ;;  %v459_v50 = vmul.f32 %v6437_v63, %v6800_v58 }
 0x1c8   :  { %5408 = vmatpush3.xpose.msk.msra.mxu1 %vm660_vm2, %v1110_v53  ;;  %5421 = vmatprep.mubr.msk.f32.mxu1 %vm6210_vm1, %v8278_v36  ;;  %v6902_v53 = vadd.f32 %v6373_v37, %v306_v44 }
 0x1c9   :  { %v1221_v60 = vpop.permute.xlu1 %1220  ;;  %1777 = vrot.lane.b32.xlu0 %v436_v55, %s6209_s26  ;;  %5409 = vmatprep.subr.mxu1 %v8278_v36 }
 0x1ca   :  { %5429 = vmatpush3.xpose.msk.msra.mxu0 %vm660_vm2, %v1221_v60 }
 0x1cb   :  { %1888 = vrot.lane.b32.xlu1 %v443_v61, %s6209_s26  ;;  %v1108_v0 = vpop.permute.xlu0 %1107  ;;  %5430 = vmatprep.subr.mxu0 %v8278_v36  ;;  %v482_v61 = vmul.f32 %v6375_v38, %v6894_v46 }
 0x1cc   :  { %5410 = vmatpush3.xpose.msk.msra.mxu1 %vm660_vm2, %v1108_v0  ;;  %v474_v0 = vmul.f32 %v6375_v38, %v6902_v53  ;;  %v473_v38 = vmul.f32 %v6388_v45, %v6902_v53 }
 0x1cd   :  { %v1219_v3 = vpop.permute.xlu1 %1218  ;;  %1775 = vrot.lane.b32.xlu0 %v435_v1, %s6209_s26  ;;  %5411 = vmatprep.subr.mxu1 %v8278_v36 }
 0x1ce   :  { %5431 = vmatpush3.xpose.msk.msra.mxu0 %vm660_vm2, %v1219_v3  ;;  %v481_v3 = vmul.f32 %v6388_v45, %v6894_v46  ;;  %v472_v45 = vmul.f32 %v6393_v47, %v6902_v53 }
 0x1cf   :  { %2128 = vrot.lane.b32.xlu1 %v466_v5, %s6209_s26  ;;  %v1106_v7 = vpop.permute.xlu0 %1105  ;;  %5432 = vmatprep.subr.mxu0 %v8278_v36 }
 0x1d0   :  { %5412 = vmatpush3.xpose.msk.msra.mxu1 %vm660_vm2, %v1106_v7 }
 0x1d1   :  { %v1217_v10 = vpop.permute.xlu1 %1216  ;;  %2015 = vrot.lane.b32.xlu0 %v458_v8, %s6209_s26  ;;  %5413 = vmatprep.subr.mxu1 %v8278_v36  ;;  %v480_v8 = vmul.f32 %v6393_v47, %v6894_v46  ;;  %v471_v47 = vmul.f32 %v6404_v51, %v6902_v53 }
 0x1d2   :  { %5433 = vmatpush3.xpose.msk.msra.mxu0 %vm660_vm2, %v1217_v10 }
 0x1d3   :  { %2126 = vrot.lane.b32.xlu1 %v465_v11, %s6209_s26  ;;  %v1104_v12 = vpop.permute.xlu0 %1103  ;;  %5434 = vmatprep.subr.mxu0 %v8278_v36 }
 0x1d4   :  { %5414 = vmatpush3.xpose.msk.msra.mxu1 %vm660_vm2, %v1104_v12  ;;  %v479_v12 = vmul.f32 %v6404_v51, %v6894_v46  ;;  %v470_v51 = vmul.f32 %v6412_v54, %v6902_v53 }
 0x1d5   :  { %v1215_v14 = vpop.permute.xlu1 %1214  ;;  %2013 = vrot.lane.b32.xlu0 %v457_v13, %s6209_s26  ;;  %5415 = vmatprep.subr.mxu1 %v8278_v36 }
 0x1d6   :  { %5435 = vmatpush3.xpose.msk.msra.mxu0 %vm660_vm2, %v1215_v14 }
 0x1d7   :  { %2124 = vrot.lane.b32.xlu1 %v464_v15, %s6209_s26  ;;  %v1102_v17 = vpop.permute.xlu0 %1101  ;;  %5436 = vmatprep.subr.mxu0 %v8278_v36  ;;  %v478_v15 = vmul.f32 %v6412_v54, %v6894_v46 }
 0x1d8   :  { %5416 = vmatpush3.xpose.msk.msra.mxu1 %vm660_vm2, %v1102_v17 }
 0x1d9   :  { %v1213_v20 = vpop.permute.xlu1 %1212  ;;  %2011 = vrot.lane.b32.xlu0 %v456_v18, %s6209_s26  ;;  %5417 = vmatprep.subr.mxu1 %v8278_v36 }
 0x1da   :  { %5437 = vmatpush3.xpose.msk.msra.mxu0 %vm660_vm2, %v1213_v20  ;;  %v477_v20 = vmul.f32 %v6420_v57, %v6894_v46 }
 0x1db   :  { %2122 = vrot.lane.b32.xlu1 %v463_v21, %s6209_s26  ;;  %v1100_v23 = vpop.permute.xlu0 %1099  ;;  %5438 = vmatprep.subr.mxu0 %v8278_v36  ;;  %v469_v21 = vmul.f32 %v6420_v57, %v6902_v53 }
 0x1dc   :  { %5418 = vmatpush3.xpose.msk.msra.mxu1 %vm660_vm2, %v1100_v23 }
 0x1dd   :  { %v1211_v26 = vpop.permute.xlu1 %1210  ;;  %2009 = vrot.lane.b32.xlu0 %v455_v25, %s6209_s26  ;;  %5419 = vmatprep.subr.mxu1 %v8278_v36  ;;  %v476_v25 = vmul.f32 %v6425_v59, %v6894_v46 }
 0x1de   :  { %5439 = vmatpush3.xpose.msk.msra.mxu0 %vm660_vm2, %v1211_v26  ;;  %v468_v26 = vmul.f32 %v6425_v59, %v6902_v53  ;;  %v467_v59 = vmul.f32 %v6437_v63, %v6902_v53 }
 0x1df   :  { %2120 = vrot.lane.b32.xlu1 %v462_v27, %s6209_s26  ;;  %v1098_v28 = vpop.permute.xlu0 %1097  ;;  %5462 = vmatprep.subr.mxu0 %v8278_v36 }
 0x1e0   :  { %5420 = vmatpush3.xpose.msk.msra.mxu1 %vm660_vm2, %v1098_v28  ;;  %v475_v28 = vmul.f32 %v6437_v63, %v6894_v46 }
 0x1e1   :  { %5441 = vmatmul.mubr.msk.f32.vlgmr.msra.gmra.mxu0 %vm660_vm2, %v6497_v22  ;;  %v1451_v30 = vpop.permute.xlu1 %1450  ;;  %2007 = vrot.lane.b32.xlu0 %v454_v29, %s6209_s26 }
 0x1e2   :  { %5463 = vmatpush3.xpose.msk.msra.mxu0 %vm660_vm2, %v1451_v30  ;;  %5443 = vmatprep.subr.mxu1 %v8278_v36 }
 0x1e3   :  { %2118 = vrot.lane.b32.xlu1 %v461_v31, %s6209_s26  ;;  %5422 = vmatmul.mubr.msk.f32.vlgmr.msra.gmra.mxu1 %vm660_vm2, %v6503_v24  ;;  %v1338_v32 = vpop.permute.xlu0 %1337  ;;  %v6085_v31 = vld [vmem:[%s8271_s3 + $0x38] sm:$0xff] }
 0x1e4   :  { %5444 = vmatpush3.xpose.msk.msra.mxu1 %vm660_vm2, %v1338_v32  ;;  %5464 = vmatprep.subr.mxu0 %v8278_v36 }
 0x1e5   :  { %v1449_v35 = vpop.permute.xlu1 %1448  ;;  %2005 = vrot.lane.b32.xlu0 %v453_v33, %s6209_s26  ;;  %5445 = vmatprep.subr.mxu1 %v8278_v36  ;;  %v6086_v33 = vld [vmem:[%s8271_s3 + $0x30] sm:$0xff] }
 0x1e6   :  { %5465 = vmatpush3.xpose.msk.msra.mxu0 %vm660_vm2, %v1449_v35  ;;  %5478 = vmatprep.mubr.msk.f32.mxu0 %vm6210_vm1, %v8278_v36 }
 0x1e7   :  { %2116 = vrot.lane.b32.xlu1 %v460_v39, %s6209_s26  ;;  %v1336_v41 = vpop.permute.xlu0 %1335  ;;  %5466 = vmatprep.subr.mxu0 %v8278_v36 }
 0x1e8   :  { %5446 = vmatpush3.xpose.msk.msra.mxu1 %vm660_vm2, %v1336_v41  ;;  %5459 = vmatprep.mubr.msk.f32.mxu1 %vm6210_vm1, %v8278_v36  ;;  %v6088_v41 = vld [vmem:[%s8271_s3 + $0x18] sm:$0xff] }
 0x1e9   :  { %v1447_v48 = vpop.permute.xlu1 %1446  ;;  %2003 = vrot.lane.b32.xlu0 %v452_v43, %s6209_s26  ;;  %5447 = vmatprep.subr.mxu1 %v8278_v36  ;;  %v6089_v43 = vld [vmem:[%s8271_s3 + $0x20] sm:$0xff] }
 0x1ea   :  { %5467 = vmatpush3.xpose.msk.msra.mxu0 %vm660_vm2, %v1447_v48 }
 0x1eb   :  { %2114 = vrot.lane.b32.xlu1 %v459_v50, %s6209_s26  ;;  %v1334_v55 = vpop.permute.xlu0 %1333  ;;  %5468 = vmatprep.subr.mxu0 %v8278_v36  ;;  %v6090_v50 = vld [vmem:[%s8271_s3 + $0x8] sm:$0xff] }
 0x1ec   :  { %5448 = vmatpush3.xpose.msk.msra.mxu1 %vm660_vm2, %v1334_v55  ;;  %v6091_v55 = vld [vmem:[%s8271_s3 + $0x10] sm:$0xff] }
 0x1ed   :  { %v1445_v60 = vpop.permute.xlu1 %1444  ;;  %2001 = vrot.lane.b32.xlu0 %v451_v56, %s6209_s26  ;;  %5449 = vmatprep.subr.mxu1 %v8278_v36 }
 0x1ee   :  { %5469 = vmatpush3.xpose.msk.msra.mxu0 %vm660_vm2, %v1445_v60 }
 0x1ef   :  { %2354 = vrot.lane.b32.xlu1 %v482_v61, %s6209_s26  ;;  %v1332_v37 = vpop.permute.xlu0 %1331  ;;  %5470 = vmatprep.subr.mxu0 %v8278_v36  ;;  %v6092_v61 = vld [vmem:[%s8271_s3] sm:$0xff] }
 0x1f0   :  { %5450 = vmatpush3.xpose.msk.msra.mxu1 %vm660_vm2, %v1332_v37 }
 0x1f1   :  { %v1443_v1 = vpop.permute.xlu1 %1442  ;;  %2241 = vrot.lane.b32.xlu0 %v474_v0, %s6209_s26  ;;  %5451 = vmatprep.subr.mxu1 %v8278_v36 }
 0x1f2   :  { %5471 = vmatpush3.xpose.msk.msra.mxu0 %vm660_vm2, %v1443_v1 }
 0x1f3   :  { %2352 = vrot.lane.b32.xlu1 %v481_v3, %s6209_s26  ;;  %v1330_v5 = vpop.permute.xlu0 %1329  ;;  %5472 = vmatprep.subr.mxu0 %v8278_v36 }
 0x1f4   :  { %5452 = vmatpush3.xpose.msk.msra.mxu1 %vm660_vm2, %v1330_v5 }
 0x1f5   :  { %v1441_v7 = vpop.permute.xlu1 %1440  ;;  %2239 = vrot.lane.b32.xlu0 %v473_v38, %s6209_s26  ;;  %5453 = vmatprep.subr.mxu1 %v8278_v36 }
 0x1f6   :  { %5473 = vmatpush3.xpose.msk.msra.mxu0 %vm660_vm2, %v1441_v7 }
 0x1f7   :  { %2350 = vrot.lane.b32.xlu1 %v480_v8, %s6209_s26  ;;  %v1328_v10 = vpop.permute.xlu0 %1327  ;;  %5474 = vmatprep.subr.mxu0 %v8278_v36 }
 0x1f8   :  { %5454 = vmatpush3.xpose.msk.msra.mxu1 %vm660_vm2, %v1328_v10 }
 0x1f9   :  { %v1439_v11 = vpop.permute.xlu1 %1438  ;;  %2237 = vrot.lane.b32.xlu0 %v472_v45, %s6209_s26  ;;  %5455 = vmatprep.subr.mxu1 %v8278_v36 }
 0x1fa   :  { %5475 = vmatpush3.xpose.msk.msra.mxu0 %vm660_vm2, %v1439_v11 }
 0x1fb   :  { %2348 = vrot.lane.b32.xlu1 %v479_v12, %s6209_s26  ;;  %v1326_v13 = vpop.permute.xlu0 %1325  ;;  %5476 = vmatprep.subr.mxu0 %v8278_v36 }
 0x1fc   :  { %5456 = vmatpush3.xpose.msk.msra.mxu1 %vm660_vm2, %v1326_v13 }
 0x1fd   :  { %v1437_v14 = vpop.permute.xlu1 %1436  ;;  %2235 = vrot.lane.b32.xlu0 %v471_v47, %s6209_s26  ;;  %5457 = vmatprep.subr.mxu1 %v8278_v36 }
 0x1fe   :  { %5477 = vmatpush3.xpose.msk.msra.mxu0 %vm660_vm2, %v1437_v14 }
 0x1ff   :  { %2346 = vrot.lane.b32.xlu1 %v478_v15, %s6209_s26  ;;  %v1324_v17 = vpop.permute.xlu0 %1323  ;;  %5500 = vmatprep.subr.mxu0 %v8278_v36 }
 0x200   :  { %5458 = vmatpush3.xpose.msk.msra.mxu1 %vm660_vm2, %v1324_v17 }
 0x201   :  { %5479 = vmatmul.mubr.msk.f32.vlgmr.msra.gmra.mxu0 %vm660_vm2, %v6551_v49  ;;  %v1677_v18 = vpop.permute.xlu1 %1676  ;;  %2233 = vrot.lane.b32.xlu0 %v470_v51, %s6209_s26 }
 0x202   :  { %5501 = vmatpush3.xpose.msk.msra.mxu0 %vm660_vm2, %v1677_v18  ;;  %5481 = vmatprep.subr.mxu1 %v8278_v36 }
 0x203   :  { %2344 = vrot.lane.b32.xlu1 %v477_v20, %s6209_s26  ;;  %5460 = vmatmul.mubr.msk.f32.vlgmr.msra.gmra.mxu1 %vm660_vm2, %v6557_v52  ;;  %v1564_v54 = vpop.permute.xlu0 %1563 }
 0x204   :  { %5482 = vmatpush3.xpose.msk.msra.mxu1 %vm660_vm2, %v1564_v54  ;;  %5502 = vmatprep.subr.mxu0 %v8278_v36 }
 0x205   :  { %v1675_v23 = vpop.permute.xlu1 %1674  ;;  %2231 = vrot.lane.b32.xlu0 %v469_v21, %s6209_s26  ;;  %5483 = vmatprep.subr.mxu1 %v8278_v36 }
 0x206   :  { %5503 = vmatpush3.xpose.msk.msra.mxu0 %vm660_vm2, %v1675_v23  ;;  %5516 = vmatprep.mubr.msk.f32.mxu0 %vm6210_vm1, %v8278_v36 }
 0x207   :  { %2342 = vrot.lane.b32.xlu1 %v476_v25, %s6209_s26  ;;  %v1562_v57 = vpop.permute.xlu0 %1561  ;;  %5504 = vmatprep.subr.mxu0 %v8278_v36 }
 0x208   :  { %5484 = vmatpush3.xpose.msk.msra.mxu1 %vm660_vm2, %v1562_v57  ;;  %5497 = vmatprep.mubr.msk.f32.mxu1 %vm6210_vm1, %v8278_v36 }
 0x209   :  { %v1673_v27 = vpop.permute.xlu1 %1672  ;;  %2229 = vrot.lane.b32.xlu0 %v468_v26, %s6209_s26  ;;  %5485 = vmatprep.subr.mxu1 %v8278_v36 }
 0x20a   :  { %5505 = vmatpush3.xpose.msk.msra.mxu0 %vm660_vm2, %v1673_v27 }
 0x20b   :  { %2340 = vrot.lane.b32.xlu1 %v475_v28, %s6209_s26  ;;  %v1560_v29 = vpop.permute.xlu0 %1559  ;;  %5506 = vmatprep.subr.mxu0 %v8278_v36 }
 0x20c   :  { %5486 = vmatpush3.xpose.msk.msra.mxu1 %vm660_vm2, %v1560_v29 }
 0x20d   :  { %v1671_v30 = vpop.permute.xlu1 %1670  ;;  %2227 = vrot.lane.b32.xlu0 %v467_v59, %s6209_s26  ;;  %5487 = vmatprep.subr.mxu1 %v8278_v36 }
 0x20e   :  { %5507 = vmatpush3.xpose.msk.msra.mxu0 %vm660_vm2, %v1671_v30 }
 0x20f   :  { %497 = vrot.lane.b32.xlu1 %v6085_v31, %s6211_s27  ;;  %v1558_v32 = vpop.permute.xlu0 %1557  ;;  %5508 = vmatprep.subr.mxu0 %v8278_v36 }
 0x210   :  { %5488 = vmatpush3.xpose.msk.msra.mxu1 %vm660_vm2, %v1558_v32 }
 0x211   :  { %v1669_v63 = vpop.permute.xlu1 %1668  ;;  %495 = vrot.lane.b32.xlu0 %v6086_v33, %s6211_s27  ;;  %5489 = vmatprep.subr.mxu1 %v8278_v36 }
 0x212   :  { %5509 = vmatpush3.xpose.msk.msra.mxu0 %vm660_vm2, %v1669_v63 }
 0x213   :  { %493 = vrot.lane.b32.xlu1 %v6087_v34, %s6211_s27  ;;  %v1556_v35 = vpop.permute.xlu0 %1555  ;;  %5510 = vmatprep.subr.mxu0 %v8278_v36 }
 0x214   :  { %5490 = vmatpush3.xpose.msk.msra.mxu1 %vm660_vm2, %v1556_v35 }
 0x215   :  { %v1667_v39 = vpop.permute.xlu1 %1666  ;;  %489 = vrot.lane.b32.xlu0 %v6088_v41, %s6211_s27  ;;  %5491 = vmatprep.subr.mxu1 %v8278_v36 }
 0x216   :  { %5511 = vmatpush3.xpose.msk.msra.mxu0 %vm660_vm2, %v1667_v39 }
 0x217   :  { %491 = vrot.lane.b32.xlu1 %v6089_v43, %s6211_s27  ;;  %v1554_v44 = vpop.permute.xlu0 %1553  ;;  %5512 = vmatprep.subr.mxu0 %v8278_v36 }
 0x218   :  { %5492 = vmatpush3.xpose.msk.msra.mxu1 %vm660_vm2, %v1554_v44 }
 0x219   :  { %v1665_v48 = vpop.permute.xlu1 %1664  ;;  %485 = vrot.lane.b32.xlu0 %v6090_v50, %s6211_s27  ;;  %5493 = vmatprep.subr.mxu1 %v8278_v36 }
 0x21a   :  { %5513 = vmatpush3.xpose.msk.msra.mxu0 %vm660_vm2, %v1665_v48 }
 0x21b   :  { %487 = vrot.lane.b32.xlu1 %v6091_v55, %s6211_s27  ;;  %v1552_v56 = vpop.permute.xlu0 %1551  ;;  %5514 = vmatprep.subr.mxu0 %v8278_v36 }
 0x21c   :  { %5494 = vmatpush3.xpose.msk.msra.mxu1 %vm660_vm2, %v1552_v56 }
 0x21d   :  { %v1663_v60 = vpop.permute.xlu1 %1662  ;;  %5495 = vmatprep.subr.mxu1 %v8278_v36 }
 0x21e   :  { %5515 = vmatpush3.xpose.msk.msra.mxu0 %vm660_vm2, %v1663_v60 }
 0x21f   :  { %483 = vrot.lane.b32.xlu1 %v6092_v61, %s6211_s27  ;;  %v1550_v37 = vpop.permute.xlu0 %1549  ;;  %5538 = vmatprep.subr.mxu0 %v8278_v36 }
 0x220   :  { %5496 = vmatpush3.xpose.msk.msra.mxu1 %vm660_vm2, %v1550_v37 }
 0x221   :  { %5517 = vmatmul.mubr.msk.f32.vlgmr.msra.gmra.mxu0 %vm660_vm2, %v6612_v16  ;;  %v1903_v0 = vpop.permute.xlu1 %1902  ;;  %5519 = vmatprep.subr.mxu1 %v8278_v36 }
 0x222   :  { %5539 = vmatpush3.xpose.msk.msra.mxu0 %vm660_vm2, %v1903_v0  ;;  %5554 = vmatprep.mubr.msk.f32.mxu0 %vm6210_vm1, %v8278_v36 }
 0x223   :  { %5498 = vmatmul.mubr.msk.f32.vlgmr.msra.gmra.mxu1 %vm660_vm2, %v6620_v19  ;;  %v1790_v1 = vpop.permute.xlu0 %1789  ;;  %5540 = vmatprep.subr.mxu0 %v8278_v36 }
 0x224   :  { %5520 = vmatpush3.xpose.msk.msra.mxu1 %vm660_vm2, %v1790_v1  ;;  %5535 = vmatprep.mubr.msk.f32.mxu1 %vm6210_vm1, %v8278_v36 }
 0x225   :  { %v1901_v3 = vpop.permute.xlu1 %1900  ;;  %5521 = vmatprep.subr.mxu1 %v8278_v36 }
 0x226   :  { %5541 = vmatpush3.xpose.msk.msra.mxu0 %vm660_vm2, %v1901_v3 }
 0x227   :  { %v1788_v5 = vpop.permute.xlu0 %1787  ;;  %5542 = vmatprep.subr.mxu0 %v8278_v36 }
 0x228   :  { %5522 = vmatpush3.xpose.msk.msra.mxu1 %vm660_vm2, %v1788_v5 }
 0x229   :  { %v1899_v38 = vpop.permute.xlu1 %1898  ;;  %5523 = vmatprep.subr.mxu1 %v8278_v36 }
 0x22a   :  { %5543 = vmatpush3.xpose.msk.msra.mxu0 %vm660_vm2, %v1899_v38 }
 0x22b   :  { %v1786_v7 = vpop.permute.xlu0 %1785  ;;  %5544 = vmatprep.subr.mxu0 %v8278_v36 }
 0x22c   :  { %5524 = vmatpush3.xpose.msk.msra.mxu1 %vm660_vm2, %v1786_v7 }
 0x22d   :  { %v1897_v8 = vpop.permute.xlu1 %1896  ;;  %5525 = vmatprep.subr.mxu1 %v8278_v36 }
 0x22e   :  { %5545 = vmatpush3.xpose.msk.msra.mxu0 %vm660_vm2, %v1897_v8 }
 0x22f   :  { %v1784_v10 = vpop.permute.xlu0 %1783  ;;  %5546 = vmatprep.subr.mxu0 %v8278_v36 }
 0x230   :  { %5526 = vmatpush3.xpose.msk.msra.mxu1 %vm660_vm2, %v1784_v10 }
 0x231   :  { %v1895_v45 = vpop.permute.xlu1 %1894  ;;  %5527 = vmatprep.subr.mxu1 %v8278_v36 }
 0x232   :  { %5547 = vmatpush3.xpose.msk.msra.mxu0 %vm660_vm2, %v1895_v45 }
 0x233   :  { %v1782_v11 = vpop.permute.xlu0 %1781  ;;  %5548 = vmatprep.subr.mxu0 %v8278_v36 }
 0x234   :  { %5528 = vmatpush3.xpose.msk.msra.mxu1 %vm660_vm2, %v1782_v11 }
 0x235   :  { %v1893_v12 = vpop.permute.xlu1 %1892  ;;  %5529 = vmatprep.subr.mxu1 %v8278_v36 }
 0x236   :  { %5549 = vmatpush3.xpose.msk.msra.mxu0 %vm660_vm2, %v1893_v12 }
 0x237   :  { %v1780_v13 = vpop.permute.xlu0 %1779  ;;  %5550 = vmatprep.subr.mxu0 %v8278_v36 }
 0x238   :  { %5530 = vmatpush3.xpose.msk.msra.mxu1 %vm660_vm2, %v1780_v13 }
 0x239   :  { %v1891_v47 = vpop.permute.xlu1 %1890  ;;  %5531 = vmatprep.subr.mxu1 %v8278_v36 }
 0x23a   :  { %5551 = vmatpush3.xpose.msk.msra.mxu0 %vm660_vm2, %v1891_v47 }
 0x23b   :  { %v1778_v14 = vpop.permute.xlu0 %1777  ;;  %5552 = vmatprep.subr.mxu0 %v8278_v36 }
 0x23c   :  { %5532 = vmatpush3.xpose.msk.msra.mxu1 %vm660_vm2, %v1778_v14 }
 0x23d   :  { %v1889_v15 = vpop.permute.xlu1 %1888  ;;  %5533 = vmatprep.subr.mxu1 %v8278_v36 }
 0x23e   :  { %5553 = vmatpush3.xpose.msk.msra.mxu0 %vm660_vm2, %v1889_v15 }
 0x23f   :  { %v1776_v17 = vpop.permute.xlu0 %1775  ;;  %5576 = vmatprep.subr.mxu0 %v8278_v36 }
 0x240   :  { %5534 = vmatpush3.xpose.msk.msra.mxu1 %vm660_vm2, %v1776_v17 }
 0x241   :  { %5555 = vmatmul.mubr.msk.f32.vlgmr.msra.gmra.mxu0 %vm660_vm2, %v6706_v6  ;;  %v2129_v51 = vpop.permute.xlu1 %2128  ;;  %5557 = vmatprep.subr.mxu1 %v8278_v36 }
 0x242   :  { %5577 = vmatpush3.xpose.msk.msra.mxu0 %vm660_vm2, %v2129_v51  ;;  %5592 = vmatprep.mubr.msk.f32.mxu0 %vm6210_vm1, %v8278_v36 }
 0x243   :  { %5536 = vmatmul.mubr.msk.f32.vlgmr.msra.gmra.mxu1 %vm660_vm2, %v6714_v9  ;;  %v2016_v18 = vpop.permute.xlu0 %2015  ;;  %5578 = vmatprep.subr.mxu0 %v8278_v36 }
 0x244   :  { %5558 = vmatpush3.xpose.msk.msra.mxu1 %vm660_vm2, %v2016_v18  ;;  %5573 = vmatprep.mubr.msk.f32.mxu1 %vm6210_vm1, %v8278_v36 }
 0x245   :  { %v2127_v20 = vpop.permute.xlu1 %2126  ;;  %5559 = vmatprep.subr.mxu1 %v8278_v36 }
 0x246   :  { %5579 = vmatpush3.xpose.msk.msra.mxu0 %vm660_vm2, %v2127_v20 }
 0x247   :  { %v2014_v54 = vpop.permute.xlu0 %2013  ;;  %5580 = vmatprep.subr.mxu0 %v8278_v36 }
 0x248   :  { %5560 = vmatpush3.xpose.msk.msra.mxu1 %vm660_vm2, %v2014_v54 }
 0x249   :  { %v2125_v21 = vpop.permute.xlu1 %2124  ;;  %5561 = vmatprep.subr.mxu1 %v8278_v36 }
 0x24a   :  { %5581 = vmatpush3.xpose.msk.msra.mxu0 %vm660_vm2, %v2125_v21 }
 0x24b   :  { %v2012_v23 = vpop.permute.xlu0 %2011  ;;  %5582 = vmatprep.subr.mxu0 %v8278_v36 }
 0x24c   :  { %5562 = vmatpush3.xpose.msk.msra.mxu1 %vm660_vm2, %v2012_v23 }
 0x24d   :  { %v2123_v25 = vpop.permute.xlu1 %2122  ;;  %5563 = vmatprep.subr.mxu1 %v8278_v36 }
 0x24e   :  { %5583 = vmatpush3.xpose.msk.msra.mxu0 %vm660_vm2, %v2123_v25 }
 0x24f   :  { %v2010_v57 = vpop.permute.xlu0 %2009  ;;  %5584 = vmatprep.subr.mxu0 %v8278_v36 }
 0x250   :  { %5564 = vmatpush3.xpose.msk.msra.mxu1 %vm660_vm2, %v2010_v57 }
 0x251   :  { %v2121_v26 = vpop.permute.xlu1 %2120  ;;  %5565 = vmatprep.subr.mxu1 %v8278_v36 }
 0x252   :  { %5585 = vmatpush3.xpose.msk.msra.mxu0 %vm660_vm2, %v2121_v26 }
 0x253   :  { %v2008_v27 = vpop.permute.xlu0 %2007  ;;  %5586 = vmatprep.subr.mxu0 %v8278_v36 }
 0x254   :  { %5566 = vmatpush3.xpose.msk.msra.mxu1 %vm660_vm2, %v2008_v27 }
 0x255   :  { %v2119_v28 = vpop.permute.xlu1 %2118  ;;  %5567 = vmatprep.subr.mxu1 %v8278_v36 }
 0x256   :  { %5587 = vmatpush3.xpose.msk.msra.mxu0 %vm660_vm2, %v2119_v28 }
 0x257   :  { %v2006_v29 = vpop.permute.xlu0 %2005  ;;  %5588 = vmatprep.subr.mxu0 %v8278_v36 }
 0x258   :  { %5568 = vmatpush3.xpose.msk.msra.mxu1 %vm660_vm2, %v2006_v29 }
 0x259   :  { %v2117_v59 = vpop.permute.xlu1 %2116  ;;  %5569 = vmatprep.subr.mxu1 %v8278_v36 }
 0x25a   :  { %5589 = vmatpush3.xpose.msk.msra.mxu0 %vm660_vm2, %v2117_v59 }
 0x25b   :  { %v2004_v30 = vpop.permute.xlu0 %2003  ;;  %5590 = vmatprep.subr.mxu0 %v8278_v36 }
 0x25c   :  { %5570 = vmatpush3.xpose.msk.msra.mxu1 %vm660_vm2, %v2004_v30 }
 0x25d   :  { %v2115_v31 = vpop.permute.xlu1 %2114  ;;  %5571 = vmatprep.subr.mxu1 %v8278_v36 }
 0x25e   :  { %5591 = vmatpush3.xpose.msk.msra.mxu0 %vm660_vm2, %v2115_v31 }
 0x25f   :  { %v2002_v32 = vpop.permute.xlu0 %2001  ;;  %5614 = vmatprep.subr.mxu0 %v8278_v36 }
 0x260   :  { %5572 = vmatpush3.xpose.msk.msra.mxu1 %vm660_vm2, %v2002_v32 }
 0x261   :  { %5593 = vmatmul.mubr.msk.f32.vlgmr.msra.gmra.mxu0 %vm660_vm2, %v6800_v58  ;;  %v2355_v63 = vpop.permute.xlu1 %2354  ;;  %v7132_v33 = vpop.f32.mrf.mxu0  ;;  %5595 = vmatprep.subr.mxu1 %v8278_v36 }
 0x262   :  { %5615 = vmatpush3.xpose.msk.msra.mxu0 %vm660_vm2, %v2355_v63  ;;  %5630 = vmatprep.mubr.msk.f32.mxu0 %vm6210_vm1, %v8278_v36 }
 0x263   :  { %v7138_v34 = vpop.f32.mrf.mxu1  ;;  %v5366_v35 = vpop.f32.mrf.mxu0  ;;  %5574 = vmatmul.mubr.msk.f32.vlgmr.msra.gmra.mxu1 %vm660_vm2, %v6808_v62  ;;  %5616 = vmatprep.subr.mxu0 %v8278_v36 }
 0x264   :  { %v2242_v39 = vpop.permute.xlu0 %2241  ;;  %5611 = vmatprep.mubr.msk.f32.mxu1 %vm6210_vm1, %v8278_v36 }
 0x265   :  { %5596 = vmatpush3.xpose.msk.msra.mxu1 %vm660_vm2, %v2242_v39  ;;  %v2353_v41 = vpop.permute.xlu1 %2352  ;;  %v5347_v43 = vpop.f32.mrf.mxu1 }
 0x266   :  { %5617 = vmatpush3.xpose.msk.msra.mxu0 %vm660_vm2, %v2353_v41  ;;  %5597 = vmatprep.subr.mxu1 %v8278_v36  ;;  %v7244_v43 = vld [vmem:[#allocation5] sm:$0xff] }
 0x267   :  { %5618 = vmatprep.subr.mxu0 %v8278_v36 }
 0x268   :  { %v2240_v44 = vpop.permute.xlu0 %2239 }
 0x269   :  { %5598 = vmatpush3.xpose.msk.msra.mxu1 %vm660_vm2, %v2240_v44  ;;  %v2351_v48 = vpop.permute.xlu1 %2350  ;;  %v7248_v44 = vadd.f32 %v7138_v34, %v7244_v43 }
 0x26a   :  { %5619 = vmatpush3.xpose.msk.msra.mxu0 %vm660_vm2, %v2351_v48  ;;  %5599 = vmatprep.subr.mxu1 %v8278_v36 }
 0x26b   :  { %5620 = vmatprep.subr.mxu0 %v8278_v36 }
 0x26c   :  { %v2238_v50 = vpop.permute.xlu0 %2237 }
 0x26d   :  { %5600 = vmatpush3.xpose.msk.msra.mxu1 %vm660_vm2, %v2238_v50  ;;  %v2349_v55 = vpop.permute.xlu1 %2348  ;;  %v2446_v50 = vsel %vm2445_vm3, %v7248_v44, -inf }
 0x26e   :  { %5621 = vmatpush3.xpose.msk.msra.mxu0 %vm660_vm2, %v2349_v55  ;;  %5601 = vmatprep.subr.mxu1 %v8278_v36 }
 0x26f   :  { %5622 = vmatprep.subr.mxu0 %v8278_v36 }
 0x270   :  { %v2236_v56 = vpop.permute.xlu0 %2235 }
 0x271   :  { %5602 = vmatpush3.xpose.msk.msra.mxu1 %vm660_vm2, %v2236_v56  ;;  %v2347_v60 = vpop.permute.xlu1 %2346 }
 0x272   :  { %5623 = vmatpush3.xpose.msk.msra.mxu0 %vm660_vm2, %v2347_v60  ;;  %5603 = vmatprep.subr.mxu1 %v8278_v36  ;;  %v7262_v60 = vadd.f32 %v7132_v33, %v7244_v43  ;;  %v2549_v33 = vld [vmem:[#allocation7 + $0x38] sm:$0xff] }
 0x273   :  { %5624 = vmatprep.subr.mxu0 %v8278_v36 }
 0x274   :  { %v2234_v61 = vpop.permute.xlu0 %2233 }
 0x275   :  { %5604 = vmatpush3.xpose.msk.msra.mxu1 %vm660_vm2, %v2234_v61  ;;  %v2345_v37 = vpop.permute.xlu1 %2344 }
 0x276   :  { %5625 = vmatpush3.xpose.msk.msra.mxu0 %vm660_vm2, %v2345_v37  ;;  %5605 = vmatprep.subr.mxu1 %v8278_v36 }
 0x277   :  { %5626 = vmatprep.subr.mxu0 %v8278_v36 }
 0x278   :  { %v2232_v0 = vpop.permute.xlu0 %2231 }
 0x279   :  { %5606 = vmatpush3.xpose.msk.msra.mxu1 %vm660_vm2, %v2232_v0  ;;  %v2343_v1 = vpop.permute.xlu1 %2342 }
 0x27a   :  { %5627 = vmatpush3.xpose.msk.msra.mxu0 %vm660_vm2, %v2343_v1  ;;  %5607 = vmatprep.subr.mxu1 %v8278_v36 }
 0x27b   :  { %5628 = vmatprep.subr.mxu0 %v8278_v36 }
 0x27c   :  { %v2230_v3 = vpop.permute.xlu0 %2229 }
 0x27d   :  { %5608 = vmatpush3.xpose.msk.msra.mxu1 %vm660_vm2, %v2230_v3  ;;  %v2341_v5 = vpop.permute.xlu1 %2340  ;;  %v2449_v3 = vsel %vm2445_vm3, %v7262_v60, -inf }
 0x27e   :  { %5629 = vmatpush3.xpose.msk.msra.mxu0 %vm660_vm2, %v2341_v5  ;;  %5609 = vmatprep.subr.mxu1 %v8278_v36 }
 0x27f   :  { %5711 = vmatprep.subr.mxu0 %v8278_v36 }
 0x280   :  { %v2228_v38 = vpop.permute.xlu0 %2227 }
 0x281   :  { %5610 = vmatpush3.xpose.msk.msra.mxu1 %vm660_vm2, %v2228_v38  ;;  %5631 = vmatmul.mubr.msk.f32.vlgmr.msra.gmra.mxu0 %vm660_vm2, %v6894_v46  ;;  %v7176_v7 = vpop.permute.xlu1 %497  ;;  %v1085_v8 = vpop.f32.mrf.mxu0 }
 0x282   :  { %v514_v10 = vmul.f32 %v7176_v7, %v6381_v42  ;;  %5727 = vmatprep.mubr.msk.f32.mxu0 %vm6210_vm1, %v8278_v36  ;;  %v522_v27 = vmul.f32 %v7176_v7, %v6378_v40  ;;  %v7251_v48 = vadd.f32 %v1085_v8, %v7244_v43  ;;  %v538_v38 = vmul.f32 %v7176_v7, %v6443_v2  ;;  %v2548_v8 = vld [vmem:[#allocation7 + $0x30] sm:$0xff] }
 0x283   :  { %v972_v45 = vpop.f32.mrf.mxu1  ;;  %v5404_v11 = vpop.f32.mrf.mxu0  ;;  %5633 = vmatprep.subr.mxu1 %v2549_v33 }
 0x284   :  { %5612 = vmatmul.mubr.msk.f32.vlgmr.msra.gmra.mxu1 %vm660_vm2, %v6902_v53  ;;  %v7184_v12 = vpop.permute.xlu0 %495  ;;  %2814 = vrot.lane.b32.xlu0 %v514_v10, %s6211_s27  ;;  %v7256_v55 = vadd.f32 %v972_v45, %v7244_v43  ;;  %v2455_v56 = vsel %vm2445_vm3, %v7251_v48, -inf  ;;  %v2547_v10 = vld [vmem:[#allocation7 + $0x28] sm:$0xff]  ;;  %v2546_v45 = vld [vmem:[#allocation7 + $0x20] sm:$0xff]  ;;  %v2545_v11 = vld [vmem:[#allocation7 + $0x18] sm:$0xff] }
 0x285   :  { %v7187_v13 = vpop.permute.xlu1 %493  ;;  %v5385_v47 = vpop.f32.mrf.mxu1  ;;  %v513_v14 = vmul.f32 %v7184_v12, %v6381_v42  ;;  %v521_v28 = vmul.f32 %v7184_v12, %v6378_v40  ;;  %5634 = vmatpush3.msra.mxu1 %v2549_v33 }
 0x286   :  { %v512_v15 = vmul.f32 %v7187_v13, %v6381_v42  ;;  %v520_v29 = vmul.f32 %v7187_v13, %v6378_v40  ;;  %v2452_v1 = vsel %vm2445_vm3, %v7256_v55, -inf  ;;  %5635 = vmatprep.subr.mxu1 %v2548_v8  ;;  %v530_v47 = vmul.f32 %v7176_v7, %v6449_v4 }
 0x287   :  { %2812 = vrot.lane.b32.xlu1 %v513_v14, %s6211_s27  ;;  %5636 = vmatpush3.msra.mxu1 %v2548_v8  ;;  %v2544_v14 = vld [vmem:[#allocation7 + $0x10] sm:$0xff] }
 0x288   :  { %v7194_v17 = vpop.permute.xlu0 %489  ;;  %2810 = vrot.lane.b32.xlu0 %v512_v15, %s6211_s27  ;;  %5637 = vmatprep.subr.mxu1 %v2547_v10 }
 0x289   :  { %v7197_v51 = vpop.permute.xlu1 %491  ;;  %v510_v20 = vmul.f32 %v7194_v17, %v6381_v42  ;;  %v518_v59 = vmul.f32 %v7194_v17, %v6378_v40  ;;  %5638 = vmatpush3.msra.mxu1 %v2547_v10 }
 0x28a   :  { %v511_v18 = vmul.f32 %v7197_v51, %v6381_v42  ;;  %5639 = vmatprep.subr.mxu1 %v2546_v45 }
 0x28b   :  { %5640 = vmatpush3.msra.mxu1 %v2546_v45 }
 0x28c   :  { %v7203_v54 = vpop.permute.xlu0 %485  ;;  %2808 = vrot.lane.b32.xlu1 %v511_v18, %s6211_s27  ;;  %2806 = vrot.lane.b32.xlu0 %v510_v20, %s6211_s27  ;;  %v2543_v18 = vld [vmem:[#allocation7 + $0x8] sm:$0xff] }
 0x28d   :  { %v7207_v21 = vpop.permute.xlu1 %487  ;;  %v508_v25 = vmul.f32 %v7203_v54, %v6381_v42  ;;  %v516_v31 = vmul.f32 %v7203_v54, %v6378_v40  ;;  %5641 = vmatprep.subr.mxu1 %v2545_v11 }
 0x28e   :  { %v509_v23 = vmul.f32 %v7207_v21, %v6381_v42  ;;  %v517_v30 = vmul.f32 %v7207_v21, %v6378_v40  ;;  %5642 = vmatpush3.msra.mxu1 %v2545_v11 }
 0x28f   :  { %5643 = vmatprep.subr.mxu1 %v2544_v14 }
 0x290   :  { %2804 = vrot.lane.b32.xlu1 %v509_v23, %s6211_s27  ;;  %2802 = vrot.lane.b32.xlu0 %v508_v25, %s6211_s27  ;;  %v2542_v25 = vld [vmem:[#allocation7] sm:$0xff] }
 0x291   :  { %v7215_v57 = vpop.permute.xlu1 %483  ;;  %5644 = vmatpush3.msra.mxu1 %v2544_v14 }
 0x292   :  { %v507_v26 = vmul.f32 %v7215_v57, %v6381_v42  ;;  %v519_v42 = vmul.f32 %v7197_v51, %v6378_v40  ;;  %v515_v63 = vmul.f32 %v7215_v57, %v6378_v40  ;;  %5645 = vmatprep.subr.mxu1 %v2543_v18 }
 0x293   :  { %5646 = vmatpush3.msra.mxu1 %v2543_v18 }
 0x294   :  { %2800 = vrot.lane.b32.xlu1 %v507_v26, %s6211_s27  ;;  %2919 = vrot.lane.b32.xlu0 %v522_v27, %s6211_s27 }
 0x295   :  { %5647 = vmatprep.subr.mxu1 %v2542_v25 }
 0x296   :  { %5648 = vmatpush3.msra.mxu1 %v2542_v25 }
 0x297   :  { %5673 = vmatprep.subr.mxu1 %v8278_v36 }
 0x298   :  { %2917 = vrot.lane.b32.xlu1 %v521_v28, %s6211_s27  ;;  %2915 = vrot.lane.b32.xlu0 %v520_v29, %s6211_s27 }
 0x29c   :  { %2913 = vrot.lane.b32.xlu1 %v519_v42, %s6211_s27  ;;  %2911 = vrot.lane.b32.xlu0 %v518_v59, %s6211_s27 }
 0x2a0   :  { %2909 = vrot.lane.b32.xlu1 %v517_v30, %s6211_s27  ;;  %2907 = vrot.lane.b32.xlu0 %v516_v31, %s6211_s27 }
 0x2a1   :  { %v1311_v32 = vpop.f32.mrf.mxu0 }
 0x2a2   :  { %v7265_v0 = vadd.f32 %v1311_v32, %v7244_v43 }
 0x2a3   :  { %v1198_v35 = vpop.f32.mrf.mxu1  ;;  %v5442_v39 = vpop.f32.mrf.mxu0 }
 0x2a4   :  { %2905 = vrot.lane.b32.xlu1 %v515_v63, %s6211_s27  ;;  %v2461_v5 = vsel %vm2445_vm3, %v7265_v0, -inf  ;;  %v7281_v27 = vadd.f32 %v1198_v35, %v7244_v43 }
 0x2a5   :  { %v5423_v41 = vpop.f32.mrf.mxu1 }
 0x2a6   :  { %v2458_v42 = vsel %vm2445_vm3, %v7281_v27, -inf }
 0x2bf   :  { %2447 = vmax.xlane.f32.xlu0 %v2446_v50 }
 0x2c1   :  { %v1537_v40 = vpop.f32.mrf.mxu0 }
 0x2c2   :  { %v7284_v28 = vadd.f32 %v1537_v40, %v7244_v43 }
 0x2c3   :  { %v1424_v34 = vpop.f32.mrf.mxu1  ;;  %v5480_v61 = vpop.f32.mrf.mxu0  ;;  %2456 = vmax.xlane.f32.xlu0 %v2455_v56 }
 0x2c4   :  { %v7287_v29 = vadd.f32 %v1424_v34, %v7244_v43  ;;  %v2467_v30 = vsel %vm2445_vm3, %v7284_v28, -inf }
 0x2c5   :  { %v5461_v37 = vpop.f32.mrf.mxu1 }
 0x2c6   :  { %v2464_v32 = vsel %vm2445_vm3, %v7287_v29, -inf }
 0x2c7   :  { %2453 = vmax.xlane.f32.xlu0 %v2452_v1  ;;  %v537_v1 = vmul.f32 %v7184_v12, %v6443_v2 }
 0x2c8   :  { %2450 = vmax.xlane.f32.xlu1 %v2449_v3 }
 0x2cb   :  { %2462 = vmax.xlane.f32.xlu0 %v2461_v5 }
 0x2d9   :  { %3129 = vrot.lane.b32.xlu1 %v538_v38, %s6211_s27 }
 0x2e1   :  { %v1763_v15 = vpop.f32.mrf.mxu0  ;;  %3024 = vrot.lane.b32.xlu0 %v530_v47, %s6211_s27 }
 0x2e2   :  { %v7292_v59 = vadd.f32 %v1763_v15, %v7244_v43 }
 0x2e3   :  { %v1650_v20 = vpop.f32.mrf.mxu1  ;;  %v5518_v23 = vpop.f32.mrf.mxu0 }
 0x2e4   :  { %v7297_v31 = vadd.f32 %v1650_v20, %v7244_v43  ;;  %v2473_v50 = vsel %vm2445_vm3, %v7292_v59, -inf }
 0x2e5   :  { %v5499_v26 = vpop.f32.mrf.mxu1 }
 0x2e6   :  { %v2470_v56 = vsel %vm2445_vm3, %v7297_v31, -inf }
 0x2f6   :  { %v7317_v3 = vpop.permute.xlu0 %2814 }
 0x2f9   :  { %v2813_v11 = vpop.permute.xlu1 %2812 }
 0x2fa   :  { %v7320_v5 = vpop.permute.xlu0 %2810 }
 0x2fd   :  { %2459 = vmax.xlane.f32.xlu1 %v2458_v42 }
 0x2fe   :  { %v2807_v14 = vpop.permute.xlu0 %2806  ;;  %v2809_v15 = vpop.permute.xlu1 %2808 }
 0x300   :  { %2468 = vmax.xlane.f32.xlu0 %v2467_v30  ;;  %v529_v30 = vmul.f32 %v7184_v12, %v6449_v4 }
 0x301   :  { %v1989_v63 = vpop.f32.mrf.mxu0  ;;  %2465 = vmax.xlane.f32.xlu1 %v2464_v32 }
 0x302   :  { %v7302_v35 = vadd.f32 %v1989_v63, %v7244_v43  ;;  %v7327_v18 = vpop.permute.xlu0 %2802  ;;  %v7329_v20 = vpop.permute.xlu1 %2804 }
 0x303   :  { %v1876_v39 = vpop.f32.mrf.mxu1  ;;  %v5556_v41 = vpop.f32.mrf.mxu0 }
 0x304   :  { %v7307_v40 = vadd.f32 %v1876_v39, %v7244_v43  ;;  %2474 = vmax.xlane.f32.xlu0 %v2473_v50  ;;  %v2479_v61 = vsel %vm2445_vm3, %v7302_v35, -inf }
 0x305   :  { %v5537_v34 = vpop.f32.mrf.mxu1  ;;  %2471 = vmax.xlane.f32.xlu1 %v2470_v56 }
 0x306   :  { %v2476_v37 = vsel %vm2445_vm3, %v7307_v40, -inf  ;;  %v7331_v23 = vpop.permute.xlu0 %2919  ;;  %v7333_v25 = vpop.permute.xlu1 %2800 }
 0x308   :  { %2480 = vmax.xlane.f32.xlu0 %v2479_v61 }
 0x309   :  { %2477 = vmax.xlane.f32.xlu1 %v2476_v37 }
 0x30a   :  { %v7335_v26 = vpop.permute.xlu0 %2915  ;;  %v7342_v32 = vpop.permute.xlu1 %2917 }
 0x30e   :  { %v7347_v39 = vpop.permute.xlu0 %2911  ;;  %v7349_v41 = vpop.permute.xlu1 %2913 }
 0x312   :  { %v7351_v34 = vpop.permute.xlu0 %2907 }
 0x313   :  { %8289 = vst [vmem:[#allocation15_spill] sm:$0xff] %v7351_v34 }
 0x31a   :  { %3127 = vrot.lane.b32.xlu1 %v537_v1, %s6211_s27  ;;  %v7353_v1 = vpop.permute.xlu1 %2909 }
 0x31b   :  { %8290 = vst [vmem:[#allocation16_spill] sm:$0xff] %v7353_v1 }
 0x321   :  { %v2215_v33 = vpop.f32.mrf.mxu0 }
 0x322   :  { %v7323_v38 = vadd.f32 %v2215_v33, %v7244_v43 }
 0x323   :  { %v2102_v8 = vpop.f32.mrf.mxu1  ;;  %v5594_v10 = vpop.f32.mrf.mxu0 }
 0x324   :  { %v2485_v45 = vsel %vm2445_vm3, %v7323_v38, -inf  ;;  %v7338_v42 = vadd.f32 %v2102_v8, %v7244_v43 }
 0x325   :  { %v5575_v47 = vpop.f32.mrf.mxu1  ;;  %2486 = vmax.xlane.f32.xlu0 %v2485_v45 }
 0x326   :  { %v2482_v63 = vsel %vm2445_vm3, %v7338_v42, -inf  ;;  %v7356_v47 = vpop.permute.xlu1 %2905 }
 0x327   :  { %8291 = vst [vmem:[#allocation17_spill] sm:$0xff] %v7356_v47 }
 0x33b   :  { %3022 = vrot.lane.b32.xlu0 %v529_v30, %s6211_s27  ;;  %v536_v30 = vmul.f32 %v7187_v13, %v6443_v2 }
 0x33e   :  { %2483 = vmax.xlane.f32.xlu1 %v2482_v63 }
 0x341   :  { %v2441_v50 = vpop.f32.mrf.mxu0 }
 0x343   :  { %v5632_v56 = vpop.f32.mrf.mxu0 }
 0x344   :  { %v2328_v61 = vpop.f32.mrf.mxu1 }
 0x346   :  { %v5613_v37 = vpop.f32.mrf.mxu1 }
 0x348   :  { %v2448_v33 = vpop.xlane.xlu0 %2447 }
 0x349   :  { %v2494_v8 = vsub.f32 %v7248_v44, %v2448_v33 }
 0x34b   :  { %v2510_v10 = vmul.f32 1.442695, %v2494_v8  ;;  %v7365_v8 = vadd.f32 %v2441_v50, %v7244_v43 }
 0x34c   :  { %v2457_v45 = vpop.xlane.xlu0 %2456 }
 0x34d   :  { %6021 = vpow2.f32 %v2510_v10  ;;  %v2497_v37 = vsub.f32 %v7251_v48, %v2457_v45  ;;  %v8292_v48 = vmov 0.0   ;;  %v534_v45 = vmul.f32 %v7194_v17, %v6443_v2 }
 0x34f   :  { %3125 = vrot.lane.b32.xlu1 %v536_v30, %s6211_s27  ;;  %v2516_v10 = vmul.f32 1.442695, %v2497_v37  ;;  %v2491_v30 = vsel %vm2445_vm3, %v7365_v8, -inf }
 0x350   :  { %v2454_v63 = vpop.xlane.xlu0 %2453 }
 0x351   :  { %v2496_v56 = vsub.f32 %v7256_v55, %v2454_v63  ;;  %v2451_v36 = vpop.xlane.xlu1 %2450 }
 0x352   :  { %v2495_v34 = vsub.f32 %v7262_v60, %v2451_v36 }
 0x353   :  { %v2514_v1 = vmul.f32 1.442695, %v2496_v56 }
 0x354   :  { %v2512_v44 = vmul.f32 1.442695, %v2495_v34  ;;  %v2463_v33 = vpop.xlane.xlu0 %2462  ;;  %v523_v34 = vmul.f32 %v7215_v57, %v6449_v4 }
 0x356   :  { %6023 = vpow2.f32 %v2512_v44 }
 0x357   :  { %6025 = vpow2.f32 %v2514_v1 }
 0x358   :  { %v3025_v47 = vpop.permute.xlu0 %3024  ;;  %6027 = vpow2.f32 %v2516_v10  ;;  %v545_v10 = vmul.f32 %v7184_v12, %v6503_v24 }
 0x359   :  { %5712 = vmatpush3.msra.mxu0 %v3025_v47  ;;  %v546_v47 = vmul.f32 %v7176_v7, %v6503_v24 }
 0x35a   :  { %v7369_v55 = vpop.eup %6021  ;;  %2492 = vmax.xlane.f32.xlu0 %v2491_v30  ;;  %5713 = vmatprep.subr.mxu0 %v8292_v48 }
 0x35b   :  { %5649 = vmatprep.mubr.msk.f32.mxu1 %vm2445_vm3, %v7369_v55 }
 0x363   :  { %v7374_v36 = vpop.eup %6023 }
 0x364   :  { %v7376_v60 = vpop.eup %6025  ;;  %5650 = vmatmul.mubr.msk.f32.vlgmr.msra.gmra.mxu1 %vm2445_vm3, %v7374_v36 }
 0x365   :  { %5674 = vmatpush3.msra.mxu1 %v7317_v3  ;;  %5652 = vmatprep.mubr.msk.f32.mxu1 %vm2445_vm3, %v7376_v60  ;;  %v7384_v50 = vpop.eup %6027  ;;  %v7393_v3 = vadd.f32 %v2328_v61, %v7244_v43  ;;  %v527_v43 = vmul.f32 %v7197_v51, %v6449_v4  ;;  %v2499_v61 = vsub.f32 %v7265_v0, %v2463_v33 }
 0x366   :  { %5675 = vmatprep.subr.mxu1 %v8292_v48  ;;  %v533_v33 = vmul.f32 %v7207_v21, %v6443_v2 }
 0x367   :  { %5676 = vmatpush3.msra.mxu1 %v2813_v11  ;;  %v528_v11 = vmul.f32 %v7187_v13, %v6449_v4  ;;  %v2520_v56 = vmul.f32 1.442695, %v2499_v61 }
 0x368   :  { %5677 = vmatprep.subr.mxu1 %v8292_v48  ;;  %5653 = vmatmul.mubr.msk.f32.gmra.mxu1 %vm2445_vm3, %v7384_v50 }
 0x369   :  { %5678 = vmatpush3.msra.mxu1 %v7320_v5  ;;  %v2488_v5 = vsel %vm2445_vm3, %v7393_v3, -inf }
 0x36a   :  { %5679 = vmatprep.subr.mxu1 %v8292_v48 }
 0x36b   :  { %5680 = vmatpush3.msra.mxu1 %v2809_v15  ;;  %v525_v15 = vmul.f32 %v7207_v21, %v6449_v4 }
 0x36c   :  { %5681 = vmatprep.subr.mxu1 %v8292_v48 }
 0x36d   :  { %5682 = vmatpush3.msra.mxu1 %v2807_v14  ;;  %v526_v14 = vmul.f32 %v7194_v17, %v6449_v4 }
 0x36e   :  { %5683 = vmatprep.subr.mxu1 %v8292_v48 }
 0x36f   :  { %5684 = vmatpush3.msra.mxu1 %v7329_v20  ;;  %v7419_v20 = vpop.permute.xlu1 %3129 }
 0x370   :  { %5685 = vmatprep.subr.mxu1 %v8292_v48  ;;  %3020 = vrot.lane.b32.xlu0 %v528_v11, %s6211_s27 }
 0x371   :  { %5686 = vmatpush3.msra.mxu1 %v7327_v18  ;;  %v524_v18 = vmul.f32 %v7203_v54, %v6449_v4 }
 0x372   :  { %5687 = vmatprep.subr.mxu1 %v8292_v48 }
 0x373   :  { %5688 = vmatpush3.msra.mxu1 %v7333_v25  ;;  %2489 = vmax.xlane.f32.xlu1 %v2488_v5  ;;  %v535_v25 = vmul.f32 %v7197_v51, %v6443_v2 }
 0x374   :  { %3018 = vrot.lane.b32.xlu0 %v527_v43, %s6211_s27  ;;  %5692 = vmatprep.subr.mxu1 %v8292_v48 }
 0x378   :  { %3016 = vrot.lane.b32.xlu0 %v526_v14, %s6211_s27  ;;  %v532_v14 = vmul.f32 %v7203_v54, %v6443_v2 }
 0x37c   :  { %3014 = vrot.lane.b32.xlu0 %v525_v15, %s6211_s27  ;;  %v544_v15 = vmul.f32 %v7187_v13, %v6503_v24 }
 0x380   :  { %3012 = vrot.lane.b32.xlu0 %v524_v18, %s6211_s27 }
 0x384   :  { %3123 = vrot.lane.b32.xlu1 %v535_v25, %s6211_s27  ;;  %3010 = vrot.lane.b32.xlu0 %v523_v34, %s6211_s27 }
 0x386   :  { %v2460_v1 = vpop.xlane.xlu1 %2459 }
 0x387   :  { %v2498_v63 = vsub.f32 %v7281_v27, %v2460_v1  ;;  %v531_v1 = vmul.f32 %v7215_v57, %v6443_v2 }
 0x388   :  { %3121 = vrot.lane.b32.xlu1 %v534_v45, %s6211_s27  ;;  %3234 = vrot.lane.b32.xlu0 %v546_v47, %s6211_s27  ;;  %v543_v45 = vmul.f32 %v7197_v51, %v6503_v24 }
 0x389   :  { %v2518_v4 = vmul.f32 1.442695, %v2498_v63  ;;  %v2469_v0 = vpop.xlane.xlu0 %2468 }
 0x38a   :  { %v2501_v37 = vsub.f32 %v7284_v28, %v2469_v0  ;;  %v2466_v44 = vpop.xlane.xlu1 %2465  ;;  %v541_v0 = vmul.f32 %v7207_v21, %v6503_v24 }
 0x38b   :  { %6029 = vpow2.f32 %v2518_v4  ;;  %v2500_v30 = vsub.f32 %v7287_v29, %v2466_v44  ;;  %v553_v4 = vmul.f32 %v7184_v12, %v6497_v22 }
 0x38c   :  { %6031 = vpow2.f32 %v2520_v56  ;;  %v2524_v27 = vmul.f32 1.442695, %v2501_v37  ;;  %3119 = vrot.lane.b32.xlu1 %v533_v33, %s6211_s27  ;;  %3232 = vrot.lane.b32.xlu0 %v545_v10, %s6211_s27  ;;  %v542_v56 = vmul.f32 %v7194_v17, %v6503_v24  ;;  %v552_v33 = vmul.f32 %v7187_v13, %v6497_v22 }
 0x38d   :  { %v2522_v11 = vmul.f32 1.442695, %v2500_v30  ;;  %v2475_v5 = vpop.xlane.xlu0 %2474  ;;  %v540_v10 = vmul.f32 %v7203_v54, %v6503_v24 }
 0x38e   :  { %v2503_v28 = vsub.f32 %v7292_v59, %v2475_v5  ;;  %v2472_v43 = vpop.xlane.xlu1 %2471  ;;  %v539_v5 = vmul.f32 %v7215_v57, %v6503_v24  ;;  %v562_v24 = vmul.f32 %v7176_v7, %v6557_v52 }
 0x38f   :  { %6033 = vpow2.f32 %v2522_v11  ;;  %v2502_v29 = vsub.f32 %v7297_v31, %v2472_v43  ;;  %v551_v11 = vmul.f32 %v7197_v51, %v6497_v22 }
 0x390   :  { %6035 = vpow2.f32 %v2524_v27  ;;  %v2528_v18 = vmul.f32 1.442695, %v2503_v28  ;;  %3117 = vrot.lane.b32.xlu1 %v532_v14, %s6211_s27  ;;  %3230 = vrot.lane.b32.xlu0 %v544_v15, %s6211_s27  ;;  %v550_v14 = vmul.f32 %v7194_v17, %v6497_v22  ;;  %v549_v15 = vmul.f32 %v7207_v21, %v6497_v22 }
 0x391   :  { %v2526_v25 = vmul.f32 1.442695, %v2502_v29  ;;  %v2481_v34 = vpop.xlane.xlu0 %2480  ;;  %v561_v29 = vmul.f32 %v7184_v12, %v6557_v52 }
 0x392   :  { %v2505_v59 = vsub.f32 %v7302_v35, %v2481_v34  ;;  %v2478_v61 = vpop.xlane.xlu1 %2477  ;;  %v554_v35 = vmul.f32 %v7176_v7, %v6497_v22  ;;  %v560_v34 = vmul.f32 %v7187_v13, %v6557_v52 }
 0x393   :  { %6037 = vpow2.f32 %v2526_v25  ;;  %v2504_v31 = vsub.f32 %v7307_v40, %v2478_v61  ;;  %v548_v25 = vmul.f32 %v7203_v54, %v6497_v22  ;;  %v547_v61 = vmul.f32 %v7215_v57, %v6497_v22 }
 0x394   :  { %6039 = vpow2.f32 %v2528_v18  ;;  %v2532_v47 = vmul.f32 1.442695, %v2505_v59  ;;  %3115 = vrot.lane.b32.xlu1 %v531_v1, %s6211_s27  ;;  %3228 = vrot.lane.b32.xlu0 %v543_v45, %s6211_s27  ;;  %v559_v1 = vmul.f32 %v7197_v51, %v6557_v52  ;;  %v570_v45 = vmul.f32 %v7176_v7, %v6551_v49 }
 0x395   :  { %v2530_v63 = vmul.f32 1.442695, %v2504_v31  ;;  %v558_v31 = vmul.f32 %v7194_v17, %v6557_v52  ;;  %v569_v22 = vmul.f32 %v7184_v12, %v6551_v49 }
 0x397   :  { %6041 = vpow2.f32 %v2530_v63  ;;  %v568_v63 = vmul.f32 %v7187_v13, %v6551_v49 }
 0x398   :  { %v7463_v2 = vpop.eup %6029  ;;  %6043 = vpow2.f32 %v2532_v47  ;;  %3339 = vrot.lane.b32.xlu1 %v554_v35, %s6211_s27  ;;  %3226 = vrot.lane.b32.xlu0 %v542_v56, %s6211_s27  ;;  %v557_v47 = vmul.f32 %v7207_v21, %v6557_v52  ;;  %v556_v35 = vmul.f32 %v7203_v54, %v6557_v52  ;;  %v567_v56 = vmul.f32 %v7197_v51, %v6551_v49 }
 0x399   :  { %v7467_v40 = vpop.eup %6031  ;;  %5655 = vmatprep.mubr.msk.f32.mxu1 %vm2445_vm3, %v7463_v2 }
 0x39a   :  { %5656 = vmatmul.mubr.msk.f32.gmra.mxu1 %vm2445_vm3, %v7467_v40 }
 0x39c   :  { %v7477_v37 = vpop.eup %6033  ;;  %3337 = vrot.lane.b32.xlu1 %v553_v4, %s6211_s27  ;;  %3224 = vrot.lane.b32.xlu0 %v541_v0, %s6211_s27  ;;  %v555_v4 = vmul.f32 %v7215_v57, %v6557_v52  ;;  %v7562_v0 = vpop.permute.xlu1 %3127 }
 0x39d   :  { %8293 = vst [vmem:[#allocation18_spill] sm:$0xff] %v7477_v37  ;;  %v7481_v44 = vpop.eup %6035  ;;  %5658 = vmatprep.mubr.msk.f32.mxu1 %vm2445_vm3, %v7477_v37 }
 0x39e   :  { %5659 = vmatmul.mubr.msk.f32.gmra.mxu1 %vm2445_vm3, %v7481_v44 }
 0x3a0   :  { %v7491_v30 = vpop.eup %6037  ;;  %3335 = vrot.lane.b32.xlu1 %v552_v33, %s6211_s27  ;;  %3222 = vrot.lane.b32.xlu0 %v540_v10, %s6211_s27  ;;  %v566_v10 = vmul.f32 %v7194_v17, %v6551_v49 }
 0x3a1   :  { %8294 = vst [vmem:[#allocation19_spill] sm:$0xff] %v7491_v30  ;;  %v7495_v27 = vpop.eup %6039  ;;  %5661 = vmatprep.mubr.msk.f32.mxu1 %vm2445_vm3, %v7491_v30 }
 0x3a2   :  { %8295 = vst [vmem:[#allocation20_spill] sm:$0xff] %v7495_v27  ;;  %5662 = vmatmul.mubr.msk.f32.gmra.mxu1 %vm2445_vm3, %v7495_v27  ;;  %v622_v27 = vmul.f32 %v7194_v17, %v6902_v53 }
 0x3a4   :  { %v7505_v28 = vpop.eup %6041  ;;  %3333 = vrot.lane.b32.xlu1 %v551_v11, %s6211_s27  ;;  %3220 = vrot.lane.b32.xlu0 %v539_v5, %s6211_s27  ;;  %v578_v11 = vmul.f32 %v7176_v7, %v6620_v19 }
 0x3a5   :  { %8296 = vst [vmem:[#allocation21_spill] sm:$0xff] %v7505_v28  ;;  %v7509_v43 = vpop.eup %6043  ;;  %5664 = vmatprep.mubr.msk.f32.mxu1 %vm2445_vm3, %v7505_v28 }
 0x3a6   :  { %8297 = vst [vmem:[#allocation22_spill] sm:$0xff] %v7509_v43  ;;  %5665 = vmatmul.mubr.msk.f32.gmra.mxu1 %vm2445_vm3, %v7509_v43 }
 0x3a8   :  { %3331 = vrot.lane.b32.xlu1 %v550_v14, %s6211_s27  ;;  %3444 = vrot.lane.b32.xlu0 %v562_v24, %s6211_s27 }
 0x3ac   :  { %3329 = vrot.lane.b32.xlu1 %v549_v15, %s6211_s27  ;;  %3442 = vrot.lane.b32.xlu0 %v561_v29, %s6211_s27  ;;  %v565_v15 = vmul.f32 %v7207_v21, %v6551_v49  ;;  %v576_v29 = vmul.f32 %v7187_v13, %v6620_v19 }
 0x3ae   :  { %v2487_v18 = vpop.xlane.xlu0 %2486 }
 0x3af   :  { %v2507_v33 = vsub.f32 %v7323_v38, %v2487_v18  ;;  %v577_v38 = vmul.f32 %v7184_v12, %v6620_v19  ;;  %v563_v18 = vmul.f32 %v7215_v57, %v6551_v49 }
 0x3b0   :  { %3327 = vrot.lane.b32.xlu1 %v548_v25, %s6211_s27  ;;  %3440 = vrot.lane.b32.xlu0 %v560_v34, %s6211_s27  ;;  %v575_v25 = vmul.f32 %v7197_v51, %v6620_v19  ;;  %v586_v34 = vmul.f32 %v7176_v7, %v6612_v16 }
 0x3b1   :  { %v2536_v52 = vmul.f32 1.442695, %v2507_v33 }
 0x3b2   :  { %v3023_v59 = vpop.permute.xlu0 %3022 }
 0x3b3   :  { %5714 = vmatpush3.msra.mxu0 %v3023_v59  ;;  %v574_v59 = vmul.f32 %v7194_v17, %v6620_v19 }
 0x3b4   :  { %3325 = vrot.lane.b32.xlu1 %v547_v61, %s6211_s27  ;;  %3438 = vrot.lane.b32.xlu0 %v559_v1, %s6211_s27  ;;  %v585_v1 = vmul.f32 %v7184_v12, %v6612_v16 }
 0x3b5   :  { %5715 = vmatprep.subr.mxu0 %v8292_v48 }
 0x3b8   :  { %3549 = vrot.lane.b32.xlu1 %v570_v45, %s6211_s27  ;;  %3436 = vrot.lane.b32.xlu0 %v558_v31, %s6211_s27  ;;  %v573_v45 = vmul.f32 %v7207_v21, %v6620_v19  ;;  %v584_v31 = vmul.f32 %v7187_v13, %v6612_v16 }
 0x3bc   :  { %3547 = vrot.lane.b32.xlu1 %v569_v22, %s6211_s27  ;;  %3434 = vrot.lane.b32.xlu0 %v557_v47, %s6211_s27  ;;  %v572_v22 = vmul.f32 %v7203_v54, %v6620_v19  ;;  %v583_v47 = vmul.f32 %v7197_v51, %v6612_v16 }
 0x3c0   :  { %3545 = vrot.lane.b32.xlu1 %v568_v63, %s6211_s27  ;;  %3432 = vrot.lane.b32.xlu0 %v556_v35, %s6211_s27  ;;  %v571_v63 = vmul.f32 %v7215_v57, %v6620_v19  ;;  %v581_v19 = vmul.f32 %v7207_v21, %v6612_v16 }
 0x3c4   :  { %3543 = vrot.lane.b32.xlu1 %v567_v56, %s6211_s27  ;;  %3430 = vrot.lane.b32.xlu0 %v555_v4, %s6211_s27  ;;  %v582_v56 = vmul.f32 %v7194_v17, %v6612_v16  ;;  %v594_v4 = vmul.f32 %v7176_v7, %v6714_v9 }
 0x3c7   :  { %v2484_v5 = vpop.xlane.xlu1 %2483 }
 0x3c8   :  { %v2506_v14 = vsub.f32 %v7338_v42, %v2484_v5  ;;  %3541 = vrot.lane.b32.xlu1 %v566_v10, %s6211_s27  ;;  %3654 = vrot.lane.b32.xlu0 %v578_v11, %s6211_s27  ;;  %v564_v42 = vmul.f32 %v7203_v54, %v6551_v49  ;;  %v593_v10 = vmul.f32 %v7184_v12, %v6714_v9 }
 0x3c9   :  { %v580_v5 = vmul.f32 %v7203_v54, %v6612_v16 }
 0x3ca   :  { %v2534_v24 = vmul.f32 1.442695, %v2506_v14  ;;  %v592_v14 = vmul.f32 %v7187_v13, %v6714_v9 }
 0x3cc   :  { %6045 = vpow2.f32 %v2534_v24  ;;  %3539 = vrot.lane.b32.xlu1 %v565_v15, %s6211_s27  ;;  %3652 = vrot.lane.b32.xlu0 %v577_v38, %s6211_s27  ;;  %v579_v24 = vmul.f32 %v7215_v57, %v6612_v16  ;;  %v591_v15 = vmul.f32 %v7197_v51, %v6714_v9  ;;  %v601_v16 = vmul.f32 %v7184_v12, %v6706_v6 }
 0x3cd   :  { %6047 = vpow2.f32 %v2536_v52 }
 0x3d0   :  { %3537 = vrot.lane.b32.xlu1 %v564_v42, %s6211_s27  ;;  %3650 = vrot.lane.b32.xlu0 %v576_v29, %s6211_s27  ;;  %v602_v42 = vmul.f32 %v7176_v7, %v6706_v6  ;;  %v590_v29 = vmul.f32 %v7194_v17, %v6714_v9 }
 0x3d4   :  { %3535 = vrot.lane.b32.xlu1 %v563_v18, %s6211_s27  ;;  %3648 = vrot.lane.b32.xlu0 %v575_v25, %s6211_s27  ;;  %v7656_v25 = vpop.permute.xlu1 %3125 }
 0x3d8   :  { %3759 = vrot.lane.b32.xlu1 %v586_v34, %s6211_s27  ;;  %3646 = vrot.lane.b32.xlu0 %v574_v59, %s6211_s27  ;;  %v589_v34 = vmul.f32 %v7207_v21, %v6714_v9 }
 0x3d9   :  { %v7598_v61 = vpop.eup %6045 }
 0x3da   :  { %8298 = vst [vmem:[#allocation23_spill] sm:$0xff] %v7598_v61  ;;  %v7600_v49 = vpop.eup %6047  ;;  %5667 = vmatprep.mubr.msk.f32.mxu1 %vm2445_vm3, %v7598_v61 }
 0x3db   :  { %8299 = vst [vmem:[#allocation24_spill] sm:$0xff] %v7600_v49  ;;  %5668 = vmatmul.mubr.msk.f32.gmra.mxu1 %vm2445_vm3, %v7600_v49 }
 0x3dc   :  { %3757 = vrot.lane.b32.xlu1 %v585_v1, %s6211_s27  ;;  %3644 = vrot.lane.b32.xlu0 %v573_v45, %s6211_s27 }
 0x3e0   :  { %3755 = vrot.lane.b32.xlu1 %v584_v31, %s6211_s27  ;;  %3642 = vrot.lane.b32.xlu0 %v572_v22, %s6211_s27  ;;  %v600_v22 = vmul.f32 %v7187_v13, %v6706_v6 }
 0x3e3   :  { %v2493_v35 = vpop.xlane.xlu0 %2492 }
 0x3e4   :  { %3753 = vrot.lane.b32.xlu1 %v583_v47, %s6211_s27  ;;  %3640 = vrot.lane.b32.xlu0 %v571_v63, %s6211_s27  ;;  %v2509_v59 = vsub.f32 %v7365_v8, %v2493_v35  ;;  %v588_v47 = vmul.f32 %v7203_v54, %v6714_v9 }
 0x3e6   :  { %v2540_v63 = vmul.f32 1.442695, %v2509_v59  ;;  %v595_v59 = vmul.f32 %v7215_v57, %v6706_v6 }
 0x3e7   :  { %v3021_v33 = vpop.permute.xlu0 %3020 }
 0x3e8   :  { %3751 = vrot.lane.b32.xlu1 %v582_v56, %s6211_s27  ;;  %3864 = vrot.lane.b32.xlu0 %v594_v4, %s6211_s27  ;;  %v587_v4 = vmul.f32 %v7215_v57, %v6714_v9  ;;  %v597_v9 = vmul.f32 %v7207_v21, %v6706_v6 }
 0x3e9   :  { %5716 = vmatpush3.msra.mxu0 %v3021_v33 }
 0x3ea   :  { %5717 = vmatprep.subr.mxu0 %v8292_v48 }
 0x3eb   :  { %v3019_v11 = vpop.permute.xlu0 %3018 }
 0x3ec   :  { %3749 = vrot.lane.b32.xlu1 %v581_v19, %s6211_s27  ;;  %3862 = vrot.lane.b32.xlu0 %v593_v10, %s6211_s27  ;;  %v598_v10 = vmul.f32 %v7194_v17, %v6706_v6 }
 0x3ed   :  { %5718 = vmatpush3.msra.mxu0 %v3019_v11  ;;  %v610_v11 = vmul.f32 %v7176_v7, %v6808_v62 }
 0x3ee   :  { %5719 = vmatprep.subr.mxu0 %v8292_v48 }
 0x3ef   :  { %v3017_v52 = vpop.permute.xlu0 %3016 }
 0x3f0   :  { %3747 = vrot.lane.b32.xlu1 %v580_v5, %s6211_s27  ;;  %3860 = vrot.lane.b32.xlu0 %v592_v14, %s6211_s27 }
 0x3f1   :  { %5720 = vmatpush3.msra.mxu0 %v3017_v52  ;;  %v609_v52 = vmul.f32 %v7184_v12, %v6808_v62 }
 0x3f2   :  { %5721 = vmatprep.subr.mxu0 %v8292_v48 }
 0x3f3   :  { %v3015_v38 = vpop.permute.xlu0 %3014 }
 0x3f4   :  { %3745 = vrot.lane.b32.xlu1 %v579_v24, %s6211_s27  ;;  %3858 = vrot.lane.b32.xlu0 %v591_v15, %s6211_s27 }
 0x3f5   :  { %5722 = vmatpush3.msra.mxu0 %v3015_v38 }
 0x3f6   :  { %5723 = vmatprep.subr.mxu0 %v8292_v48 }
 0x3f7   :  { %v3013_v18 = vpop.permute.xlu0 %3012 }
 0x3f8   :  { %3969 = vrot.lane.b32.xlu1 %v602_v42, %s6211_s27  ;;  %3856 = vrot.lane.b32.xlu0 %v590_v29, %s6211_s27  ;;  %v596_v42 = vmul.f32 %v7203_v54, %v6706_v6  ;;  %v608_v29 = vmul.f32 %v7187_v13, %v6808_v62 }
 0x3f9   :  { %5724 = vmatpush3.msra.mxu0 %v3013_v18 }
 0x3fa   :  { %5725 = vmatprep.subr.mxu0 %v8292_v48 }
 0x3fb   :  { %v3011_v1 = vpop.permute.xlu0 %3010 }
 0x3fc   :  { %v2490_v45 = vpop.xlane.xlu1 %2489  ;;  %3967 = vrot.lane.b32.xlu1 %v601_v16, %s6211_s27  ;;  %3854 = vrot.lane.b32.xlu0 %v589_v34, %s6211_s27 }
 0x3fd   :  { %v2508_v31 = vsub.f32 %v7393_v3, %v2490_v45  ;;  %5726 = vmatpush3.msra.mxu0 %v3011_v1  ;;  %v599_v3 = vmul.f32 %v7197_v51, %v6706_v6  ;;  %v607_v1 = vmul.f32 %v7197_v51, %v6808_v62  ;;  %v606_v6 = vmul.f32 %v7194_v17, %v6808_v62 }
 0x3fe   :  { %5749 = vmatprep.subr.mxu0 %v8292_v48 }
 0x3ff   :  { %v2538_v56 = vmul.f32 1.442695, %v2508_v31  ;;  %v7674_v8 = vpop.permute.xlu0 %3234 }
 0x400   :  { %v7676_v35 = vpop.permute.xlu1 %3123  ;;  %3965 = vrot.lane.b32.xlu1 %v600_v22, %s6211_s27  ;;  %3852 = vrot.lane.b32.xlu0 %v588_v47, %s6211_s27  ;;  %v618_v22 = vmul.f32 %v7176_v7, %v6800_v58 }
 0x401   :  { %6049 = vpow2.f32 %v2538_v56  ;;  %v617_v56 = vmul.f32 %v7184_v12, %v6800_v58 }
 0x402   :  { %6051 = vpow2.f32 %v2540_v63 }
 0x403   :  { %v7684_v33 = vpop.permute.xlu0 %3232 }
 0x404   :  { %v7686_v19 = vpop.permute.xlu1 %3121  ;;  %3963 = vrot.lane.b32.xlu1 %v599_v3, %s6211_s27  ;;  %3850 = vrot.lane.b32.xlu0 %v587_v4, %s6211_s27  ;;  %v605_v3 = vmul.f32 %v7207_v21, %v6808_v62 }
 0x407   :  { %v7694_v5 = vpop.permute.xlu0 %3230 }
 0x408   :  { %v7696_v14 = vpop.permute.xlu1 %3119  ;;  %3961 = vrot.lane.b32.xlu1 %v598_v10, %s6211_s27  ;;  %4074 = vrot.lane.b32.xlu0 %v610_v11, %s6211_s27  ;;  %v616_v11 = vmul.f32 %v7187_v13, %v6800_v58 }
 0x40b   :  { %v7704_v24 = vpop.permute.xlu0 %3228 }
 0x40c   :  { %3959 = vrot.lane.b32.xlu1 %v597_v9, %s6211_s27  ;;  %v7707_v15 = vpop.permute.xlu1 %3117  ;;  %4072 = vrot.lane.b32.xlu0 %v609_v52, %s6211_s27  ;;  %v604_v9 = vmul.f32 %v7203_v54, %v6808_v62 }
 0x40e   :  { %v7710_v38 = vpop.eup %6049 }
 0x40f   :  { %8300 = vst [vmem:[#allocation25_spill] sm:$0xff] %v7710_v38  ;;  %5670 = vmatprep.mubr.msk.f32.mxu1 %vm2445_vm3, %v7710_v38  ;;  %v7718_v18 = vpop.permute.xlu0 %3226  ;;  %v7720_v16 = vpop.eup %6051 }
 0x410   :  { %8301 = vst [vmem:[#allocation26_spill] sm:$0xff] %v7720_v16  ;;  %3957 = vrot.lane.b32.xlu1 %v596_v42, %s6211_s27  ;;  %v7723_v34 = vpop.permute.xlu1 %3115  ;;  %4070 = vrot.lane.b32.xlu0 %v608_v29, %s6211_s27  ;;  %v615_v29 = vmul.f32 %v7197_v51, %v6800_v58 }
 0x411   :  { %5671 = vmatmul.mubr.msk.f32.gmra.mxu1 %vm2445_vm3, %v7720_v16  ;;  %v625_v16 = vmul.f32 %v7184_v12, %v6902_v53 }
 0x412   :  { %5689 = vmatprep.mubr.msk.f32.mxu1 %vm6210_vm1, %v8292_v48 }
 0x413   :  { %v7734_v45 = vpop.permute.xlu0 %3224 }
 0x414   :  { %3955 = vrot.lane.b32.xlu1 %v595_v59, %s6211_s27  ;;  %v7737_v31 = vpop.permute.xlu1 %3339  ;;  %4068 = vrot.lane.b32.xlu0 %v607_v1, %s6211_s27  ;;  %v603_v59 = vmul.f32 %v7215_v57, %v6808_v62 }
 0x417   :  { %v7744_v47 = vpop.permute.xlu0 %3222 }
 0x418   :  { %4179 = vrot.lane.b32.xlu1 %v618_v22, %s6211_s27  ;;  %v7747_v63 = vpop.permute.xlu1 %3337  ;;  %4066 = vrot.lane.b32.xlu0 %v606_v6, %s6211_s27 }
 0x41b   :  { %v7754_v4 = vpop.permute.xlu0 %3220 }
 0x41c   :  { %4177 = vrot.lane.b32.xlu1 %v617_v56, %s6211_s27  ;;  %v7757_v10 = vpop.permute.xlu1 %3335  ;;  %4064 = vrot.lane.b32.xlu0 %v605_v3, %s6211_s27  ;;  %v614_v3 = vmul.f32 %v7194_v17, %v6800_v58 }
 0x41f   :  { %v7764_v52 = vpop.permute.xlu0 %3444 }
 0x420   :  { %4175 = vrot.lane.b32.xlu1 %v616_v11, %s6211_s27  ;;  %v7767_v42 = vpop.permute.xlu1 %3333  ;;  %4062 = vrot.lane.b32.xlu0 %v604_v9, %s6211_s27  ;;  %v626_v11 = vmul.f32 %v7176_v7, %v6902_v53 }
 0x423   :  { %v7774_v1 = vpop.permute.xlu0 %3442 }
 0x424   :  { %4173 = vrot.lane.b32.xlu1 %v615_v29, %s6211_s27  ;;  %v7777_v22 = vpop.permute.xlu1 %3331  ;;  %v5651_v6 = vpop.f32.mrf.mxu1  ;;  %4060 = vrot.lane.b32.xlu0 %v603_v59, %s6211_s27  ;;  %v613_v59 = vmul.f32 %v7207_v21, %v6800_v58 }
 0x426   :  { %v2664_v56 = vpop.f32.mrf.mxu1 }
 0x427   :  { %6053 = vrcp.f32 %v2664_v56  ;;  %v7784_v9 = vpop.permute.xlu0 %3440 }
 0x428   :  { %4171 = vrot.lane.b32.xlu1 %v614_v3, %s6211_s27  ;;  %v7787_v62 = vpop.permute.xlu1 %3329  ;;  %v7789_v29 = vpop.f32.mrf.mxu1  ;;  %4284 = vrot.lane.b32.xlu0 %v626_v11, %s6211_s27  ;;  %v612_v3 = vmul.f32 %v7203_v54, %v6800_v58  ;;  %v624_v11 = vmul.f32 %v7187_v13, %v6902_v53 }
 0x42a   :  { %v2674_v38 = vpop.f32.mrf.mxu1 }
 0x42b   :  { %6055 = vrcp.f32 %v2674_v38  ;;  %v7796_v49 = vpop.permute.xlu0 %3438  ;;  %v611_v38 = vmul.f32 %v7215_v57, %v6800_v58  ;;  %v634_v58 = vmul.f32 %v7176_v7, %v6894_v46  ;;  %v633_v7 = vmul.f32 %v7184_v12, %v6894_v46 }
 0x42c   :  { %4169 = vrot.lane.b32.xlu1 %v613_v59, %s6211_s27  ;;  %v7799_v56 = vpop.permute.xlu1 %3327  ;;  %4282 = vrot.lane.b32.xlu0 %v625_v16, %s6211_s27  ;;  %v623_v16 = vmul.f32 %v7197_v51, %v6902_v53  ;;  %6057 = vrcp.f32 %v5651_v6 }
 0x42d   :  { %6059 = vrcp.f32 %v7789_v29 }
 0x42f   :  { %v7806_v61 = vpop.permute.xlu0 %3436 }
 0x430   :  { %4167 = vrot.lane.b32.xlu1 %v612_v3, %s6211_s27  ;;  %v7809_v28 = vpop.permute.xlu1 %3325  ;;  %4280 = vrot.lane.b32.xlu0 %v624_v11, %s6211_s27  ;;  %v7826_v11 = vld [vmem:[%s8269_s1] sm:$0xff] }
 0x433   :  { %v7816_v59 = vpop.permute.xlu0 %3434 }
 0x434   :  { %8302 = vst [vmem:[#allocation27_spill] sm:$0xff] %v7816_v59  ;;  %v6054_v43 = vpop.eup %6053  ;;  %4165 = vrot.lane.b32.xlu1 %v611_v38, %s6211_s27  ;;  %v7819_v30 = vpop.permute.xlu1 %3549  ;;  %4278 = vrot.lane.b32.xlu0 %v623_v16, %s6211_s27  ;;  %v621_v16 = vmul.f32 %v7207_v21, %v6902_v53 }
 0x435   :  { %v2759_v3 = vmul.f32 %v6054_v43, %v7369_v55 }
 0x437   :  { %v2776_v38 = vmul.f32 %v7826_v11, %v2759_v3  ;;  %v7833_v37 = vpop.permute.xlu0 %3432  ;;  %v619_v3 = vmul.f32 %v7215_v57, %v6902_v53 }
 0x438   :  { %v6056_v59 = vpop.eup %6055  ;;  %4389 = vrot.lane.b32.xlu1 %v634_v58, %s6211_s27  ;;  %v7836_v55 = vpop.permute.xlu1 %3547  ;;  %4276 = vrot.lane.b32.xlu0 %v622_v27, %s6211_s27 }
 0x439   :  { %5690 = vmatmul.mubr.msk.f32.vlgmr.msra.gmra.mxu1 %vm2445_vm3, %v2776_v38  ;;  %v2761_v43 = vmul.f32 %v6056_v59, %v7376_v60  ;;  %v8303_v59 = vld [vmem:[#allocation16_spill] sm:$0xff] }
 0x43a   :  { %5693 = vmatpush3.msra.mxu1 %v7331_v23  ;;  %5708 = vmatprep.mubr.msk.f32.mxu1 %vm6210_vm1, %v8292_v48 }
 0x43b   :  { %5694 = vmatprep.subr.mxu1 %v8292_v48  ;;  %v7847_v6 = vpop.permute.xlu0 %3430  ;;  %v2778_v27 = vmul.f32 %v7826_v11, %v2761_v43 }
 0x43c   :  { %5695 = vmatpush3.msra.mxu1 %v7342_v32  ;;  %4387 = vrot.lane.b32.xlu1 %v633_v7, %s6211_s27  ;;  %v7854_v23 = vpop.permute.xlu1 %3545  ;;  %v632_v32 = vmul.f32 %v7187_v13, %v6894_v46 }
 0x43d   :  { %5696 = vmatprep.subr.mxu1 %v8292_v48  ;;  %4274 = vrot.lane.b32.xlu0 %v621_v16, %s6211_s27 }
 0x43e   :  { %5697 = vmatpush3.msra.mxu1 %v7335_v26  ;;  %5728 = vmatmul.mubr.msk.f32.vlgmr.msra.gmra.mxu0 %vm2445_vm3, %v2778_v27  ;;  %v620_v26 = vmul.f32 %v7203_v54, %v6902_v53  ;;  %v630_v53 = vmul.f32 %v7194_v17, %v6894_v46  ;;  %v629_v17 = vmul.f32 %v7207_v21, %v6894_v46 }
 0x43f   :  { %5750 = vmatpush3.msra.mxu0 %v7674_v8  ;;  %5698 = vmatprep.subr.mxu1 %v8292_v48  ;;  %v7862_v12 = vpop.permute.xlu0 %3654  ;;  %v6058_v8 = vpop.eup %6057  ;;  %v628_v21 = vmul.f32 %v7203_v54, %v6894_v46  ;;  %v627_v54 = vmul.f32 %v7215_v57, %v6894_v46 }
 0x440   :  { %5751 = vmatprep.subr.mxu0 %v8292_v48  ;;  %5699 = vmatpush3.msra.mxu1 %v7349_v41  ;;  %v7868_v60 = vpop.permute.xlu1 %3543  ;;  %v631_v41 = vmul.f32 %v7197_v51, %v6894_v46 }
 0x441   :  { %5752 = vmatpush3.msra.mxu0 %v7684_v33  ;;  %4385 = vrot.lane.b32.xlu1 %v632_v32, %s6211_s27 }
 0x442   :  { %5700 = vmatprep.subr.mxu1 %v8292_v48  ;;  %4272 = vrot.lane.b32.xlu0 %v620_v26, %s6211_s27 }
 0x443   :  { %5753 = vmatprep.subr.mxu0 %v8292_v48  ;;  %5701 = vmatpush3.msra.mxu1 %v7347_v39  ;;  %v7878_v13 = vpop.permute.xlu0 %3652  ;;  %v2760_v39 = vmul.f32 %v6058_v8, %v7374_v36  ;;  %v8305_v36 = vld [vmem:[#allocation17_spill] sm:$0xff] }
 0x444   :  { %5754 = vmatpush3.msra.mxu0 %v7694_v5  ;;  %5702 = vmatprep.subr.mxu1 %v8292_v48  ;;  %v7884_v33 = vpop.permute.xlu1 %3541  ;;  %v8304_v5 = vld [vmem:[#allocation15_spill] sm:$0xff] }
 0x445   :  { %5755 = vmatprep.subr.mxu0 %v8292_v48  ;;  %5703 = vmatpush3.msra.mxu1 %v8303_v59 }
 0x446   :  { %5756 = vmatpush3.msra.mxu0 %v7704_v24  ;;  %4383 = vrot.lane.b32.xlu1 %v631_v41, %s6211_s27  ;;  %v2777_v24 = vmul.f32 %v7826_v11, %v2760_v39 }
 0x447   :  { %5704 = vmatprep.subr.mxu1 %v8292_v48  ;;  %4270 = vrot.lane.b32.xlu0 %v619_v3, %s6211_s27  ;;  %v7896_v51 = vpop.permute.xlu0 %3650 }
 0x448   :  { %5757 = vmatprep.subr.mxu0 %v8292_v48  ;;  %5705 = vmatpush3.msra.mxu1 %v8304_v5  ;;  %v7900_v58 = vpop.permute.xlu1 %3539 }
 0x449   :  { %5758 = vmatpush3.msra.mxu0 %v7718_v18  ;;  %5706 = vmatprep.subr.mxu1 %v8292_v48 }
 0x44a   :  { %5759 = vmatprep.subr.mxu0 %v8292_v48  ;;  %5707 = vmatpush3.msra.mxu1 %v8305_v36 }
 0x44b   :  { %5760 = vmatpush3.msra.mxu0 %v7734_v45  ;;  %4381 = vrot.lane.b32.xlu1 %v630_v53, %s6211_s27  ;;  %v7911_v29 = vpop.permute.xlu0 %3648 }
 0x44c   :  { %5709 = vmatmul.mubr.msk.f32.vlgmr.msra.gmra.mxu1 %vm2445_vm3, %v2777_v24  ;;  %5730 = vmatprep.subr.mxu1 %v8292_v48  ;;  %v7915_v18 = vpop.permute.xlu1 %3537 }
 0x44d   :  { %5761 = vmatprep.subr.mxu0 %v8292_v48  ;;  %5731 = vmatpush3.msra.mxu1 %v7419_v20 }
 0x44e   :  { %5762 = vmatpush3.msra.mxu0 %v7744_v47  ;;  %5732 = vmatprep.subr.mxu1 %v8292_v48 }
 0x44f   :  { %5763 = vmatprep.subr.mxu0 %v8292_v48  ;;  %5733 = vmatpush3.msra.mxu1 %v7562_v0  ;;  %v7925_v45 = vpop.permute.xlu0 %3646  ;;  %v6060_v0 = vpop.eup %6059 }
 0x450   :  { %5764 = vmatpush3.msra.mxu0 %v7754_v4  ;;  %4379 = vrot.lane.b32.xlu1 %v629_v17, %s6211_s27  ;;  %v7929_v38 = vpop.permute.xlu1 %3535  ;;  %v2762_v4 = vmul.f32 %v6060_v0, %v7384_v50 }
 0x451   :  { %5734 = vmatprep.subr.mxu1 %v8292_v48  ;;  %5746 = vmatprep.mubr.msk.f32.mxu1 %vm6210_vm1, %v8292_v48 }
 0x452   :  { %5735 = vmatpush3.msra.mxu1 %v7656_v25  ;;  %5765 = vmatprep.mubr.msk.f32.mxu0 %vm6210_vm1, %v8292_v48  ;;  %v2779_v46 = vmul.f32 %v7826_v11, %v2762_v4 }
 0x453   :  { %5736 = vmatprep.subr.mxu1 %v8292_v48  ;;  %v7940_v20 = vpop.permute.xlu0 %3644  ;;  %5787 = vmatprep.subr.mxu0 %v8292_v48 }
 0x454   :  { %5737 = vmatpush3.msra.mxu1 %v7676_v35  ;;  %4377 = vrot.lane.b32.xlu1 %v628_v21, %s6211_s27  ;;  %v7945_v47 = vpop.permute.xlu1 %3759 }
 0x455   :  { %5738 = vmatprep.subr.mxu1 %v8292_v48 }
 0x456   :  { %5739 = vmatpush3.msra.mxu1 %v7686_v19 }
 0x457   :  { %5740 = vmatprep.subr.mxu1 %v8292_v48  ;;  %v7952_v25 = vpop.permute.xlu0 %3642 }
 0x458   :  { %5741 = vmatpush3.msra.mxu1 %v7696_v14  ;;  %4375 = vrot.lane.b32.xlu1 %v627_v54, %s6211_s27  ;;  %v7957_v35 = vpop.permute.xlu1 %3757 }
 0x459   :  { %5742 = vmatprep.subr.mxu1 %v8292_v48 }
 0x45a   :  { %5743 = vmatpush3.msra.mxu1 %v7707_v15  ;;  %v5657_v19 = vpop.f32.mrf.mxu1 }
 0x45b   :  { %5744 = vmatprep.subr.mxu1 %v8292_v48  ;;  %6061 = vrcp.f32 %v5657_v19  ;;  %v7963_v57 = vpop.permute.xlu0 %3640 }
 0x45c   :  { %5745 = vmatpush3.msra.mxu1 %v7723_v34  ;;  %v7966_v50 = vpop.permute.xlu1 %3755  ;;  %v2684_v14 = vpop.f32.mrf.mxu1 }
 0x45d   :  { %5747 = vmatmul.mubr.msk.f32.vlgmr.msra.gmra.mxu1 %vm2445_vm3, %v2779_v46  ;;  %5768 = vmatprep.subr.mxu1 %v8292_v48  ;;  %6063 = vrcp.f32 %v2684_v14 }
 0x45e   :  { %5769 = vmatpush3.msra.mxu1 %v7737_v31  ;;  %5784 = vmatprep.mubr.msk.f32.mxu1 %vm6210_vm1, %v8292_v48  ;;  %v5660_v43 = vpop.f32.mrf.mxu1 }
 0x45f   :  { %5770 = vmatprep.subr.mxu1 %v8292_v48  ;;  %v7974_v15 = vpop.permute.xlu0 %3864  ;;  %6065 = vrcp.f32 %v5660_v43 }
 0x460   :  { %5771 = vmatpush3.msra.mxu1 %v7747_v63  ;;  %v7977_v34 = vpop.permute.xlu1 %3753  ;;  %v2694_v63 = vpop.f32.mrf.mxu1 }
 0x461   :  { %5772 = vmatprep.subr.mxu1 %v8292_v48  ;;  %6067 = vrcp.f32 %v2694_v63 }
 0x462   :  { %5773 = vmatpush3.msra.mxu1 %v7757_v10 }
 0x463   :  { %5774 = vmatprep.subr.mxu1 %v8292_v48  ;;  %v7982_v7 = vpop.permute.xlu0 %3862 }
 0x464   :  { %5775 = vmatpush3.msra.mxu1 %v7767_v42  ;;  %v7985_v31 = vpop.permute.xlu1 %3751 }
 0x465   :  { %5776 = vmatprep.subr.mxu1 %v8292_v48 }
 0x466   :  { %5777 = vmatpush3.msra.mxu1 %v7777_v22 }
 0x467   :  { %5778 = vmatprep.subr.mxu1 %v8292_v48  ;;  %v7990_v16 = vpop.permute.xlu0 %3860 }
 0x468   :  { %v6062_v10 = vpop.eup %6061  ;;  %5779 = vmatpush3.msra.mxu1 %v7787_v62  ;;  %v7993_v27 = vpop.permute.xlu1 %3749 }
 0x469   :  { %5780 = vmatprep.subr.mxu1 %v8292_v48  ;;  %v2764_v42 = vmul.f32 %v6062_v10, %v7467_v40 }
 0x46a   :  { %v6064_v32 = vpop.eup %6063  ;;  %5781 = vmatpush3.msra.mxu1 %v7799_v56 }
 0x46b   :  { %5782 = vmatprep.subr.mxu1 %v8292_v48  ;;  %v7999_v22 = vpop.permute.xlu0 %3858  ;;  %v2781_v26 = vmul.f32 %v7826_v11, %v2764_v42  ;;  %v2763_v8 = vmul.f32 %v6064_v32, %v7463_v2 }
 0x46c   :  { %5783 = vmatpush3.msra.mxu1 %v7809_v28  ;;  %v8004_v62 = vpop.permute.xlu1 %3747  ;;  %v6066_v56 = vpop.eup %6065 }
 0x46d   :  { %5806 = vmatprep.subr.mxu1 %v8292_v48  ;;  %5785 = vmatmul.mubr.msk.f32.vlgmr.msra.gmra.mxu1 %vm2445_vm3, %v2781_v26  ;;  %v2780_v40 = vmul.f32 %v7826_v11, %v2763_v8 }
 0x46e   :  { %5807 = vmatpush3.msra.mxu1 %v7819_v30  ;;  %5822 = vmatprep.mubr.msk.f32.mxu1 %vm6210_vm1, %v8292_v48 }
 0x46f   :  { %5808 = vmatprep.subr.mxu1 %v8292_v48  ;;  %5766 = vmatmul.mubr.msk.f32.vlgmr.msra.gmra.mxu0 %vm2445_vm3, %v2780_v40  ;;  %v8014_v2 = vpop.permute.xlu0 %3856 }
 0x470   :  { %5788 = vmatpush3.msra.mxu0 %v7764_v52  ;;  %5809 = vmatpush3.msra.mxu1 %v7836_v55  ;;  %v8018_v28 = vpop.permute.xlu1 %3745  ;;  %v5663_v55 = vpop.f32.mrf.mxu1 }
 0x471   :  { %5789 = vmatprep.subr.mxu0 %v8292_v48  ;;  %5810 = vmatprep.subr.mxu1 %v8292_v48  ;;  %6069 = vrcp.f32 %v5663_v55 }
 0x472   :  { %5790 = vmatpush3.msra.mxu0 %v7774_v1  ;;  %5811 = vmatpush3.msra.mxu1 %v7854_v23  ;;  %v6068_v1 = vpop.eup %6067  ;;  %v2704_v41 = vpop.f32.mrf.mxu1 }
 0x473   :  { %5791 = vmatprep.subr.mxu0 %v8292_v48  ;;  %5812 = vmatprep.subr.mxu1 %v8292_v48  ;;  %v8026_v30 = vpop.permute.xlu0 %3854  ;;  %6071 = vrcp.f32 %v2704_v41 }
 0x474   :  { %5792 = vmatpush3.msra.mxu0 %v7784_v9  ;;  %5813 = vmatpush3.msra.mxu1 %v7868_v60  ;;  %v8030_v52 = vpop.permute.xlu1 %3969  ;;  %v2766_v9 = vmul.f32 %v6066_v56, %v7481_v44  ;;  %v5666_v53 = vpop.f32.mrf.mxu1 }
 0x475   :  { %5793 = vmatprep.subr.mxu0 %v8292_v48  ;;  %5814 = vmatprep.subr.mxu1 %v8292_v48  ;;  %6073 = vrcp.f32 %v5666_v53 }
 0x476   :  { %5794 = vmatpush3.msra.mxu0 %v7796_v49  ;;  %5815 = vmatpush3.msra.mxu1 %v7884_v33  ;;  %v8306_v49 = vld [vmem:[#allocation27_spill] sm:$0xff]  ;;  %v8307_v33 = vld [vmem:[#allocation18_spill] sm:$0xff] }
 0x477   :  { %5795 = vmatprep.subr.mxu0 %v8292_v48  ;;  %5816 = vmatprep.subr.mxu1 %v8292_v48  ;;  %v8038_v23 = vpop.permute.xlu0 %3852  ;;  %v2765_v59 = vmul.f32 %v6068_v1, %v8307_v33 }
 0x478   :  { %5796 = vmatpush3.msra.mxu0 %v7806_v61  ;;  %5817 = vmatpush3.msra.mxu1 %v7900_v58  ;;  %v8043_v60 = vpop.permute.xlu1 %3967  ;;  %v2783_v61 = vmul.f32 %v7826_v11, %v2766_v9 }
 0x479   :  { %5797 = vmatprep.subr.mxu0 %v8292_v48  ;;  %5818 = vmatprep.subr.mxu1 %v8292_v48  ;;  %v2782_v39 = vmul.f32 %v7826_v11, %v2765_v59 }
 0x47a   :  { %5798 = vmatpush3.msra.mxu0 %v8306_v49  ;;  %5819 = vmatpush3.msra.mxu1 %v7915_v18 }
 0x47b   :  { %5799 = vmatprep.subr.mxu0 %v8292_v48  ;;  %5820 = vmatprep.subr.mxu1 %v8292_v48  ;;  %v8052_v44 = vpop.permute.xlu0 %3850 }
 0x47c   :  { %5800 = vmatpush3.msra.mxu0 %v7833_v37  ;;  %5821 = vmatpush3.msra.mxu1 %v7929_v38  ;;  %v8057_v3 = vpop.permute.xlu1 %3965 }
 0x47d   :  { %5801 = vmatprep.subr.mxu0 %v8292_v48  ;;  %5823 = vmatmul.mubr.msk.f32.vlgmr.msra.gmra.mxu1 %vm2445_vm3, %v2783_v61 }
 0x47e   :  { %5844 = vmatprep.subr.mxu1 %v8292_v48  ;;  %5802 = vmatpush3.msra.mxu0 %v7847_v6 }
 0x47f   :  { %5803 = vmatprep.mubr.msk.f32.mxu0 %vm6210_vm1, %v8292_v48  ;;  %5845 = vmatpush3.msra.mxu1 %v7945_v47  ;;  %v8067_v37 = vpop.permute.xlu0 %4074 }
 0x480   :  { %5804 = vmatmul.mubr.msk.f32.vlgmr.msra.gmra.mxu0 %vm2445_vm3, %v2782_v39  ;;  %5825 = vmatprep.subr.mxu0 %v8292_v48  ;;  %v8071_v5 = vpop.permute.xlu1 %3963 }
 0x481   :  { %5846 = vmatprep.subr.mxu1 %v8292_v48  ;;  %5826 = vmatpush3.msra.mxu0 %v7862_v12  ;;  %v6070_v12 = vpop.eup %6069 }
 0x482   :  { %5847 = vmatpush3.msra.mxu1 %v7957_v35  ;;  %5827 = vmatprep.subr.mxu0 %v8292_v48  ;;  %v6072_v24 = vpop.eup %6071 }
 0x483   :  { %5848 = vmatprep.subr.mxu1 %v8292_v48  ;;  %5828 = vmatpush3.msra.mxu0 %v7878_v13  ;;  %v8079_v6 = vpop.permute.xlu0 %4072  ;;  %v6074_v19 = vpop.eup %6073 }
 0x484   :  { %5849 = vmatpush3.msra.mxu1 %v7966_v50  ;;  %5829 = vmatprep.subr.mxu0 %v8292_v48  ;;  %v8083_v58 = vpop.permute.xlu1 %3961 }
 0x485   :  { %5850 = vmatprep.subr.mxu1 %v8292_v48  ;;  %5830 = vmatpush3.msra.mxu0 %v7896_v51  ;;  %v8308_v51 = vld [vmem:[#allocation20_spill] sm:$0xff] }
 0x486   :  { %5851 = vmatpush3.msra.mxu1 %v7977_v34  ;;  %5831 = vmatprep.subr.mxu0 %v8292_v48  ;;  %v2768_v18 = vmul.f32 %v6070_v12, %v8308_v51 }
 0x487   :  { %5852 = vmatprep.subr.mxu1 %v8292_v48  ;;  %5832 = vmatpush3.msra.mxu0 %v7911_v29  ;;  %v8091_v13 = vpop.permute.xlu0 %4070  ;;  %v2714_v29 = vpop.f32.mrf.mxu1 }
 0x488   :  { %5853 = vmatpush3.msra.mxu1 %v7985_v31  ;;  %5833 = vmatprep.subr.mxu0 %v8292_v48  ;;  %v3960_v36 = vpop.permute.xlu1 %3959  ;;  %v2785_v0 = vmul.f32 %v7826_v11, %v2768_v18  ;;  %6075 = vrcp.f32 %v2714_v29  ;;  %v8311_v31 = vld [vmem:[#allocation21_spill] sm:$0xff] }
 0x489   :  { %5854 = vmatprep.subr.mxu1 %v8292_v48  ;;  %5834 = vmatpush3.msra.mxu0 %v7925_v45  ;;  %v8309_v45 = vld [vmem:[#allocation19_spill] sm:$0xff]  ;;  %v8315_v29 = vld [vmem:[#allocation25_spill] sm:$0xff] }
 0x48a   :  { %5855 = vmatpush3.msra.mxu1 %v7993_v27  ;;  %5835 = vmatprep.subr.mxu0 %v8292_v48  ;;  %v2767_v21 = vmul.f32 %v6072_v24, %v8309_v45  ;;  %v4474_v45 = vld [vmem:[#allocation8 + $0x10] sm:$0xff] }
 0x48b   :  { %5856 = vmatprep.subr.mxu1 %v8292_v48  ;;  %5836 = vmatpush3.msra.mxu0 %v7940_v20  ;;  %v8102_v17 = vpop.permute.xlu0 %4068 }
 0x48c   :  { %5857 = vmatpush3.msra.mxu1 %v8004_v62  ;;  %5837 = vmatprep.subr.mxu0 %v8292_v48  ;;  %v3958_v38 = vpop.permute.xlu1 %3957  ;;  %v2784_v47 = vmul.f32 %v7826_v11, %v2767_v21  ;;  %v4472_v21 = vld [vmem:[#allocation8] sm:$0xff] }
 0x48d   :  { %5858 = vmatprep.subr.mxu1 %v8292_v48  ;;  %5838 = vmatpush3.msra.mxu0 %v7952_v25 }
 0x48e   :  { %5859 = vmatpush3.msra.mxu1 %v8018_v28  ;;  %5860 = vmatprep.mubr.msk.f32.mxu1 %vm6210_vm1, %v8292_v48  ;;  %v8312_v28 = vld [vmem:[#allocation23_spill] sm:$0xff] }
 0x48f   :  { %5839 = vmatprep.subr.mxu0 %v8292_v48  ;;  %5861 = vmatmul.mubr.msk.f32.vlgmr.msra.gmra.mxu1 %vm2445_vm3, %v2785_v0  ;;  %v8115_v20 = vpop.permute.xlu0 %4066 }
 0x490   :  { %5882 = vmatprep.subr.mxu1 %v8292_v48  ;;  %5840 = vmatpush3.msra.mxu0 %v7963_v57  ;;  %v3956_v54 = vpop.permute.xlu1 %3955 }
 0x491   :  { %5841 = vmatprep.mubr.msk.f32.mxu0 %vm6210_vm1, %v8292_v48  ;;  %5883 = vmatpush3.msra.mxu1 %v8030_v52 }
 0x492   :  { %5842 = vmatmul.mubr.msk.f32.vlgmr.msra.gmra.mxu0 %vm2445_vm3, %v2784_v47  ;;  %5863 = vmatprep.subr.mxu0 %v8292_v48 }
 0x493   :  { %5884 = vmatprep.subr.mxu1 %v8292_v48  ;;  %5864 = vmatpush3.msra.mxu0 %v7974_v15  ;;  %v8127_v25 = vpop.permute.xlu0 %4064  ;;  %v8310_v15 = vld [vmem:[#allocation22_spill] sm:$0xff] }
 0x494   :  { %5885 = vmatpush3.msra.mxu1 %v8043_v60  ;;  %5865 = vmatprep.subr.mxu0 %v8292_v48  ;;  %v4180_v4 = vpop.permute.xlu1 %4179  ;;  %v2770_v34 = vmul.f32 %v6074_v19, %v8310_v15 }
 0x495   :  { %5886 = vmatprep.subr.mxu1 %v8292_v48  ;;  %5866 = vmatpush3.msra.mxu0 %v7982_v7  ;;  %v6076_v57 = vpop.eup %6075 }
 0x496   :  { %5887 = vmatpush3.msra.mxu1 %v8057_v3  ;;  %5867 = vmatprep.subr.mxu0 %v8292_v48  ;;  %v2769_v63 = vmul.f32 %v6076_v57, %v8311_v31  ;;  %v4475_v3 = vld [vmem:[#allocation8 + $0x18] sm:$0xff] }
 0x497   :  { %5888 = vmatprep.subr.mxu1 %v8292_v48  ;;  %5868 = vmatpush3.msra.mxu0 %v7990_v16  ;;  %v8137_v35 = vpop.permute.xlu0 %4062  ;;  %v2787_v16 = vmul.f32 %v7826_v11, %v2770_v34 }
 0x498   :  { %5889 = vmatpush3.msra.mxu1 %v8071_v5  ;;  %5869 = vmatprep.subr.mxu0 %v8292_v48  ;;  %v4178_v46 = vpop.permute.xlu1 %4177  ;;  %v2786_v42 = vmul.f32 %v7826_v11, %v2769_v63 }
 0x499   :  { %5890 = vmatprep.subr.mxu1 %v8292_v48  ;;  %5870 = vmatpush3.msra.mxu0 %v7999_v22 }
 0x49a   :  { %5891 = vmatpush3.msra.mxu1 %v8083_v58  ;;  %5871 = vmatprep.subr.mxu0 %v8292_v48 }
 0x49b   :  { %5892 = vmatprep.subr.mxu1 %v8292_v48  ;;  %5872 = vmatpush3.msra.mxu0 %v8014_v2  ;;  %v5669_v50 = vpop.f32.mrf.mxu1  ;;  %v8147_v14 = vpop.permute.xlu0 %4060 }
 0x49c   :  { %5893 = vmatpush3.msra.mxu1 %v3960_v36  ;;  %5873 = vmatprep.subr.mxu0 %v8292_v48  ;;  %v4176_v43 = vpop.permute.xlu1 %4175  ;;  %v8314_v36 = vld [vmem:[#allocation26_spill] sm:$0xff] }
 0x49d   :  { %5894 = vmatprep.subr.mxu1 %v8292_v48  ;;  %5874 = vmatpush3.msra.mxu0 %v8026_v30  ;;  %v2724_v7 = vpop.f32.mrf.mxu1 }
 0x49e   :  { %5895 = vmatpush3.msra.mxu1 %v3958_v38  ;;  %5875 = vmatprep.subr.mxu0 %v8292_v48  ;;  %6077 = vrcp.f32 %v2724_v7 }
 0x49f   :  { %5896 = vmatprep.subr.mxu1 %v8292_v48  ;;  %5876 = vmatpush3.msra.mxu0 %v8038_v23  ;;  %v4285_v10 = vpop.permute.xlu0 %4284  ;;  %6079 = vrcp.f32 %v5669_v50  ;;  %v8313_v23 = vld [vmem:[#allocation24_spill] sm:$0xff] }
 0x4a0   :  { %5897 = vmatpush3.msra.mxu1 %v3956_v54  ;;  %5898 = vmatprep.mubr.msk.f32.mxu1 %vm6210_vm1, %v8292_v48  ;;  %v4174_v27 = vpop.permute.xlu1 %4173 }
 0x4a1   :  { %5877 = vmatprep.subr.mxu0 %v8292_v48  ;;  %5899 = vmatmul.mubr.msk.f32.vlgmr.msra.gmra.mxu1 %vm2445_vm3, %v2787_v16 }
 0x4a2   :  { %5920 = vmatprep.subr.mxu1 %v8292_v48  ;;  %5878 = vmatpush3.msra.mxu0 %v8052_v44 }
 0x4a3   :  { %5879 = vmatprep.mubr.msk.f32.mxu0 %vm6210_vm1, %v8292_v48  ;;  %5921 = vmatpush3.msra.mxu1 %v4180_v4  ;;  %v4283_v32 = vpop.permute.xlu0 %4282 }
 0x4a4   :  { %5880 = vmatmul.mubr.msk.f32.vlgmr.msra.gmra.mxu0 %vm2445_vm3, %v2786_v42  ;;  %5901 = vmatprep.subr.mxu0 %v8292_v48  ;;  %v4172_v22 = vpop.permute.xlu1 %4171 }
 0x4a5   :  { %5922 = vmatprep.subr.mxu1 %v8292_v48  ;;  %5902 = vmatpush3.msra.mxu0 %v8067_v37 }
 0x4a6   :  { %5923 = vmatpush3.msra.mxu1 %v4178_v46  ;;  %5903 = vmatprep.subr.mxu0 %v8292_v48 }
 0x4a7   :  { %5924 = vmatprep.subr.mxu1 %v8292_v48  ;;  %5904 = vmatpush3.msra.mxu0 %v8079_v6  ;;  %v4281_v26 = vpop.permute.xlu0 %4280 }
 0x4a8   :  { %5925 = vmatpush3.msra.mxu1 %v4176_v43  ;;  %5905 = vmatprep.subr.mxu0 %v8292_v48  ;;  %v4170_v8 = vpop.permute.xlu1 %4169 }
 0x4a9   :  { %5926 = vmatprep.subr.mxu1 %v8292_v48  ;;  %5906 = vmatpush3.msra.mxu0 %v8091_v13 }
 0x4aa   :  { %5927 = vmatpush3.msra.mxu1 %v4174_v27  ;;  %5907 = vmatprep.subr.mxu0 %v8292_v48 }
 0x4ab   :  { %v6078_v62 = vpop.eup %6077  ;;  %5928 = vmatprep.subr.mxu1 %v8292_v48  ;;  %5908 = vmatpush3.msra.mxu0 %v8102_v17  ;;  %v4279_v40 = vpop.permute.xlu0 %4278 }
 0x4ac   :  { %5929 = vmatpush3.msra.mxu1 %v4172_v22  ;;  %5909 = vmatprep.subr.mxu0 %v8292_v48  ;;  %v4168_v2 = vpop.permute.xlu1 %4167  ;;  %v2771_v30 = vmul.f32 %v6078_v62, %v8312_v28  ;;  %v6080_v56 = vpop.eup %6079 }
 0x4ad   :  { %5910 = vmatpush3.msra.mxu0 %v8115_v20  ;;  %5930 = vmatprep.subr.mxu1 %v8292_v48  ;;  %v2772_v9 = vmul.f32 %v6080_v56, %v8313_v23  ;;  %v4904_v56 = vld [vmem:[%s8276_s8] ss:$0 sm:$0xff]  ;;  %s6212_s8 = smov [#allocation10]  }
 0x4ae   :  { %5911 = vmatprep.subr.mxu0 %v8292_v48  ;;  %5931 = vmatpush3.msra.mxu1 %v4170_v8  ;;  %v2788_v1 = vmul.f32 %v7826_v11, %v2771_v30  ;;  %s4697_s23 = sshll.u32 %s6212_s8, 4  ;;  %s4698_s23 = int_to_ptr.vmem [resolvable:$true] %s4697_s23 }
 0x4af   :  { %5912 = vmatpush3.msra.mxu0 %v8127_v25  ;;  %5932 = vmatprep.subr.mxu1 %v8292_v48  ;;  %v4277_v52 = vpop.permute.xlu0 %4276  ;;  %v2789_v60 = vmul.f32 %v7826_v11, %v2772_v9  ;;  %s6173_s2 = scalar_lea.vmem %s4698_s23, 2048  ;;  %p6178_p7 = scmp.lt.s32.totalorder %s4698_s23, %s4698_s23 }
 0x4b0   :  { %5913 = vmatprep.subr.mxu0 %v8292_v48  ;;  %5933 = vmatpush3.msra.mxu1 %v4168_v2  ;;  %v4166_v55 = vpop.permute.xlu1 %4165  ;;  %p6174_p6 = scmp.ne.s32.totalorder %s4698_s23, %s6173_s2  ;;  %p6179_p8 = scmp.lt.s32.totalorder %s6173_s2, %s6173_s2 }
 0x4b1   :  { %5914 = vmatpush3.msra.mxu0 %v8137_v35  ;;  %5917 = vmatprep.mubr.msk.f32.mxu0 %vm6210_vm1, %v8292_v48 }
 0x4b2   :  { %5915 = vmatprep.subr.mxu0 %v8292_v48  ;;  %5934 = vmatprep.subr.mxu1 %v8292_v48  ;;  %p6180_p9 = por %p6179_p8, %p6178_p7 }
 0x4b3   :  { %5916 = vmatpush3.msra.mxu0 %v8147_v14  ;;  %5935 = vmatpush3.msra.mxu1 %v4166_v55  ;;  %v4275_v49 = vpop.permute.xlu0 %4274 }
 0x4b4   :  { %5939 = vmatprep.subr.mxu0 %v8292_v48  ;;  %5918 = vmatmul.mubr.msk.f32.vlgmr.msra.gmra.mxu0 %vm2445_vm3, %v2788_v1  ;;  %v4390_v41 = vpop.permute.xlu1 %4389  ;;  %p6181_p10 = pnand %p6180_p9, %p6174_p6 }
 0x4b5   :  { %5940 = vmatpush3.msra.mxu0 %v4285_v10  ;;  %5936 = vmatprep.mubr.msk.f32.mxu1 %vm6210_vm1, %v8292_v48 }
 0x4b6   :  { %5941 = vmatprep.subr.mxu0 %v8292_v48  ;;  %5937 = vmatmul.mubr.msk.f32.vlgmr.msra.gmra.mxu1 %vm2445_vm3, %v2789_v60 }
 0x4b7   :  { %5942 = vmatpush3.msra.mxu0 %v4283_v32  ;;  %5958 = vmatprep.subr.mxu1 %v8292_v48  ;;  %v4273_v59 = vpop.permute.xlu0 %4272 }
 0x4b8   :  { %5943 = vmatprep.subr.mxu0 %v8292_v48  ;;  %5959 = vmatpush3.msra.mxu1 %v4390_v41  ;;  %v4388_v33 = vpop.permute.xlu1 %4387 }
 0x4b9   :  { %5944 = vmatpush3.msra.mxu0 %v4281_v26  ;;  %5960 = vmatprep.subr.mxu1 %v8292_v48 }
 0x4ba   :  { %5945 = vmatprep.subr.mxu0 %v8292_v48  ;;  %5961 = vmatpush3.msra.mxu1 %v4388_v33 }
 0x4bb   :  { %5946 = vmatpush3.msra.mxu0 %v4279_v40  ;;  %5962 = vmatprep.subr.mxu1 %v8292_v48  ;;  %v4271_v39 = vpop.permute.xlu0 %4270 }
 0x4bc   :  { %5947 = vmatprep.subr.mxu0 %v8292_v48  ;;  %v4386_v44 = vpop.permute.xlu1 %4385  ;;  %5974 = vmatprep.mubr.msk.f32.mxu1 %vm6210_vm1, %v8292_v48 }
 0x4bd   :  { %5948 = vmatpush3.msra.mxu0 %v4277_v52  ;;  %5963 = vmatpush3.msra.mxu1 %v4386_v44 }
 0x4be   :  { %5949 = vmatprep.subr.mxu0 %v8292_v48  ;;  %5964 = vmatprep.subr.mxu1 %v8292_v48 }
 0x4bf   :  { %5950 = vmatpush3.msra.mxu0 %v4275_v49  ;;  %5955 = vmatprep.mubr.msk.f32.mxu0 %vm6210_vm1, %v8292_v48 }
 0x4c0   :  { %5951 = vmatprep.subr.mxu0 %v8292_v48  ;;  %v4384_v61 = vpop.permute.xlu1 %4383 }
 0x4c1   :  { %5952 = vmatpush3.msra.mxu0 %v4273_v59  ;;  %5965 = vmatpush3.msra.mxu1 %v4384_v61 }
 0x4c2   :  { %5953 = vmatprep.subr.mxu0 %v8292_v48  ;;  %5966 = vmatprep.subr.mxu1 %v8292_v48 }
 0x4c3   :  { %5954 = vmatpush3.msra.mxu0 %v4271_v39 }
 0x4c4   :  { %v4382_v37 = vpop.permute.xlu1 %4381  ;;  %5977 = vmatprep.subr.mxu0 %v4475_v3 }
 0x4c5   :  { %5967 = vmatpush3.msra.mxu1 %v4382_v37 }
 0x4c6   :  { %5968 = vmatprep.subr.mxu1 %v8292_v48 }
 0x4c8   :  { %v4380_v5 = vpop.permute.xlu1 %4379 }
 0x4c9   :  { %5969 = vmatpush3.msra.mxu1 %v4380_v5 }
 0x4ca   :  { %5970 = vmatprep.subr.mxu1 %v8292_v48 }
 0x4cc   :  { %v4378_v6 = vpop.permute.xlu1 %4377 }
 0x4cd   :  { %5971 = vmatpush3.msra.mxu1 %v4378_v6 }
 0x4ce   :  { %5972 = vmatprep.subr.mxu1 %v8292_v48  ;;  %v4473_v48 = vld [vmem:[#allocation8 + $0x8] sm:$0xff] }
 0x4d0   :  { %v4376_v58 = vpop.permute.xlu1 %4375 }
 0x4d1   :  { %v5672_v12 = vpop.f32.mrf.mxu1  ;;  %5973 = vmatpush3.msra.mxu1 %v4376_v58 }
 0x4d2   :  { %6081 = vrcp.f32 %v5672_v12 }
 0x4d3   :  { %v2734_v53 = vpop.f32.mrf.mxu1 }
 0x4d4   :  { %6083 = vrcp.f32 %v2734_v53 }
 0x4df   :  { %v6082_v13 = vpop.eup %6081 }
 0x4e0   :  { %v2774_v24 = vmul.f32 %v6082_v13, %v8314_v36 }
 0x4e1   :  { %v6084_v51 = vpop.eup %6083 }
 0x4e2   :  { %v2791_v18 = vmul.f32 %v7826_v11, %v2774_v24  ;;  %v2773_v17 = vmul.f32 %v6084_v51, %v8315_v29 }
 0x4e4   :  { %5975 = vmatmul.mubr.msk.f32.vlgmr.msra.gmra.mxu1 %vm2445_vm3, %v2791_v18  ;;  %v2790_v38 = vmul.f32 %v7826_v11, %v2773_v17 }
 0x4e6   :  { %5956 = vmatmul.mubr.msk.f32.vlgmr.msra.gmra.mxu0 %vm2445_vm3, %v2790_v38 }
 0x4e7   :  { %5978 = vmatpush3.msra.mxu0 %v4475_v3 }
 0x4e8   :  { %5979 = vmatprep.subr.mxu0 %v4474_v45 }
 0x4e9   :  { %5980 = vmatpush3.msra.mxu0 %v4474_v45 }
 0x4ea   :  { %5981 = vmatprep.subr.mxu0 %v4473_v48 }
 0x4eb   :  { %5982 = vmatpush3.msra.mxu0 %v4473_v48 }
 0x4ec   :  { %5983 = vmatprep.subr.mxu0 %v4472_v21 }
 0x4ed   :  { %5984 = vmatpush3.msra.mxu0 %v4472_v21 }
 0x4f9   :  { %v2893_v0 = vpop.f32.mrf.mxu1 }
 0x4fa   :  { %5985 = vmatprep.mubr.msk.f32.mxu0 %vm660_vm2, %v2893_v0 }
 0x4fb   :  { %v5691_v20 = vpop.f32.mrf.mxu1 }
 0x4fe   :  { %v3103_v47 = vpop.f32.mrf.mxu0 }
 0x500   :  { %v5729_v54 = vpop.f32.mrf.mxu0 }
 0x50c   :  { %v2998_v25 = vpop.f32.mrf.mxu1 }
 0x50d   :  { %5986 = vmatmul.mubr.msk.f32.vlgmr.msra.gmra.mxu0 %vm660_vm2, %v2998_v25 }
 0x50e   :  { %v5710_v11 = vpop.f32.mrf.mxu1  ;;  %5988 = vmatprep.mubr.msk.f32.mxu0 %vm660_vm2, %v3103_v47 }
 0x51d   :  { %v3208_v4 = vpop.f32.mrf.mxu1 }
 0x51e   :  { %5989 = vmatmul.mubr.msk.f32.gmra.mxu0 %vm660_vm2, %v3208_v4 }
 0x51f   :  { %v5748_v35 = vpop.f32.mrf.mxu1 }
 0x52d   :  { %v3418_v19 = vpop.f32.mrf.mxu1 }
 0x52f   :  { %v3313_v46 = vpop.f32.mrf.mxu0  ;;  %v5786_v57 = vpop.f32.mrf.mxu1 }
 0x530   :  { %5991 = vmatprep.mubr.msk.f32.mxu0 %vm660_vm2, %v3313_v46 }
 0x531   :  { %v5767_v50 = vpop.f32.mrf.mxu0  ;;  %5992 = vmatmul.mubr.msk.f32.gmra.mxu0 %vm660_vm2, %v3418_v19 }
 0x53d   :  { %v3628_v14 = vpop.f32.mrf.mxu1 }
 0x53f   :  { %v5824_v15 = vpop.f32.mrf.mxu1 }
 0x540   :  { %v3523_v34 = vpop.f32.mrf.mxu0 }
 0x541   :  { %5994 = vmatprep.mubr.msk.f32.mxu0 %vm660_vm2, %v3523_v34 }
 0x542   :  { %v5805_v43 = vpop.f32.mrf.mxu0  ;;  %5995 = vmatmul.mubr.msk.f32.gmra.mxu0 %vm660_vm2, %v3628_v14 }
 0x54f   :  { %v3838_v7 = vpop.f32.mrf.mxu1 }
 0x551   :  { %v5862_v31 = vpop.f32.mrf.mxu1 }
 0x552   :  { %v3733_v63 = vpop.f32.mrf.mxu0 }
 0x553   :  { %5997 = vmatprep.mubr.msk.f32.mxu0 %vm660_vm2, %v3733_v63 }
 0x554   :  { %v5843_v16 = vpop.f32.mrf.mxu0  ;;  %5998 = vmatmul.mubr.msk.f32.gmra.mxu0 %vm660_vm2, %v3838_v7 }
 0x561   :  { %v4048_v10 = vpop.f32.mrf.mxu1 }
 0x563   :  { %v5900_v27 = vpop.f32.mrf.mxu1 }
 0x564   :  { %v3943_v42 = vpop.f32.mrf.mxu0 }
 0x565   :  { %6000 = vmatprep.mubr.msk.f32.mxu0 %vm660_vm2, %v3943_v42 }
 0x566   :  { %v5881_v32 = vpop.f32.mrf.mxu0  ;;  %6001 = vmatmul.mubr.msk.f32.gmra.mxu0 %vm660_vm2, %v4048_v10 }
 0x574   :  { %v4153_v22 = vpop.f32.mrf.mxu0 }
 0x575   :  { %6003 = vmatprep.mubr.msk.f32.mxu0 %vm660_vm2, %v4153_v22 }
 0x576   :  { %v5919_v26 = vpop.f32.mrf.mxu0  ;;  %v4258_v8 = vpop.f32.mrf.mxu1 }
 0x577   :  { %6004 = vmatmul.mubr.msk.f32.gmra.mxu0 %vm660_vm2, %v4258_v8 }
 0x578   :  { %v5938_v62 = vpop.f32.mrf.mxu1 }
 0x5a4   :  { %v4468_v40 = vpop.f32.mrf.mxu1 }
 0x5a6   :  { %v4363_v2 = vpop.f32.mrf.mxu0  ;;  %v5976_v28 = vpop.f32.mrf.mxu1 }
 0x5a7   :  { %6006 = vmatprep.mubr.msk.f32.mxu0 %vm660_vm2, %v4363_v2 }
 0x5a8   :  { %v5957_v30 = vpop.f32.mrf.mxu0  ;;  %6007 = vmatmul.mubr.msk.f32.gmra.mxu0 %vm660_vm2, %v4468_v40 }
 0x5cd   :  { %v5987_v52 = vpop.f32.mrf.mxu0 }
 0x5ce   :  { %v4603_v55 = vadd.f32 %v5987_v52, %v4904_v56 }
 0x5cf   :  { %v4597_v1 = vpop.f32.mrf.mxu0 }
 0x5d0   :  { %4677 = vst.msk [vmem:[#allocation10 + $0x8] sm:$0xff] %vm660_vm2, %v4603_v55  ;;  %v4598_v23 = vadd.f32 %v4904_v56, %v4597_v1 }
 0x5d2   :  { %4676 = vst.msk [vmem:[#allocation10] sm:$0xff] %vm660_vm2, %v4598_v23 }
 0x5de   :  { %v5990_v9 = vpop.f32.mrf.mxu0 }
 0x5df   :  { %v4613_v60 = vadd.f32 %v5990_v9, %v4904_v56 }
 0x5e0   :  { %v4607_v41 = vpop.f32.mrf.mxu0 }
 0x5e1   :  { %4679 = vst.msk [vmem:[#allocation10 + $0x18] sm:$0xff] %vm660_vm2, %v4613_v60  ;;  %v4608_v49 = vadd.f32 %v4904_v56, %v4607_v41 }
 0x5e3   :  { %4678 = vst.msk [vmem:[#allocation10 + $0x10] sm:$0xff] %vm660_vm2, %v4608_v49 }
 0x5f1   :  { %v5993_v33 = vpop.f32.mrf.mxu0 }
 0x5f2   :  { %v4623_v59 = vadd.f32 %v5993_v33, %v4904_v56 }
 0x5f3   :  { %v4617_v44 = vpop.f32.mrf.mxu0 }
 0x5f4   :  { %4681 = vst.msk [vmem:[#allocation10 + $0x28] sm:$0xff] %vm660_vm2, %v4623_v59  ;;  %v4618_v61 = vadd.f32 %v4904_v56, %v4617_v44 }
 0x5f6   :  { %4680 = vst.msk [vmem:[#allocation10 + $0x20] sm:$0xff] %vm660_vm2, %v4618_v61 }
 0x602   :  { %v5996_v3 = vpop.f32.mrf.mxu0 }
 0x603   :  { %v4633_v39 = vadd.f32 %v5996_v3, %v4904_v56 }
 0x604   :  { %v4627_v37 = vpop.f32.mrf.mxu0 }
 0x605   :  { %4683 = vst.msk [vmem:[#allocation10 + $0x38] sm:$0xff] %vm660_vm2, %v4633_v39  ;;  %v4628_v5 = vadd.f32 %v4904_v56, %v4627_v37 }
 0x607   :  { %4682 = vst.msk [vmem:[#allocation10 + $0x30] sm:$0xff] %vm660_vm2, %v4628_v5 }
 0x614   :  { %v5999_v6 = vpop.f32.mrf.mxu0 }
 0x615   :  { %v4643_v58 = vadd.f32 %v5999_v6, %v4904_v56 }
 0x616   :  { %v4637_v12 = vpop.f32.mrf.mxu0 }
 0x617   :  { %4685 = vst.msk [vmem:[#allocation10 + $0x48] sm:$0xff] %vm660_vm2, %v4643_v58  ;;  %v4638_v53 = vadd.f32 %v4904_v56, %v4637_v12 }
 0x619   :  { %4684 = vst.msk [vmem:[#allocation10 + $0x40] sm:$0xff] %vm660_vm2, %v4638_v53 }
 0x626   :  { %v6002_v13 = vpop.f32.mrf.mxu0 }
 0x627   :  { %v4653_v36 = vadd.f32 %v6002_v13, %v4904_v56 }
 0x628   :  { %v4647_v24 = vpop.f32.mrf.mxu0 }
 0x629   :  { %4687 = vst.msk [vmem:[#allocation10 + $0x58] sm:$0xff] %vm660_vm2, %v4653_v36  ;;  %v4648_v51 = vadd.f32 %v4904_v56, %v4647_v24 }
 0x62b   :  { %4686 = vst.msk [vmem:[#allocation10 + $0x50] sm:$0xff] %vm660_vm2, %v4648_v51 }
 0x637   :  { %v6005_v18 = vpop.f32.mrf.mxu0 }
 0x638   :  { %v4663_v29 = vadd.f32 %v6005_v18, %v4904_v56 }
 0x639   :  { %v4657_v17 = vpop.f32.mrf.mxu0 }
 0x63a   :  { %4689 = vst.msk [vmem:[#allocation10 + $0x68] sm:$0xff] %vm660_vm2, %v4663_v29  ;;  %v4658_v38 = vadd.f32 %v4904_v56, %v4657_v17 }
 0x63c   :  { %4688 = vst.msk [vmem:[#allocation10 + $0x60] sm:$0xff] %vm660_vm2, %v4658_v38 }
 0x668   :  { %v6008_v45 = vpop.f32.mrf.mxu0 }
 0x669   :  { %v4673_v48 = vadd.f32 %v6008_v45, %v4904_v56 }
 0x66a   :  { %v4667_v21 = vpop.f32.mrf.mxu0 }
 0x66b   :  { %4691 = vst.msk [vmem:[#allocation10 + $0x78] sm:$0xff] %vm660_vm2, %v4673_v48  ;;  %v4668_v0 = vadd.f32 %v4904_v56, %v4667_v21 }
 0x66d   :  { %4690 = vst.msk [vmem:[#allocation10 + $0x70] sm:$0xff] %vm660_vm2, %v4668_v0 }
 0x66e   :  { %6184 = shalt.err (!%p6181_p10)
}
 0x66f   :  { %4703 = dma.vmem_to_hbm [thread:$0]  %s4698_s23, 2048, %s8277_s9, [#allocation4], %s6203_s17, %s6203_s17, %s6204_s18  }
 0x670   :  { %6199 = dma.done.wait [#allocation4], 2048  }
 0x671   :  { %6200 = vsyncadd [#allocation4], 4294965248 }
 0x672   :  { %4707 = vsyncpa [#allocation3], 1 }
 0x673   :  { %4708 = vsyncpa [#allocation6], 1 }
 0x674   :  { %4709 = vsyncpa [#allocation9], 1 }
 0x675   :  { %4710 = vsyncpa [#allocation4], 1 }

</bundles_post_ra>
